<compile_context>
chip_gen: v7x
topology: tpu7x:2x2x1
jax: 0.10.0
libtpu: 0.0.40
codegen_flags: <defaults>
</compile_context>

<pallas_src>
import functools

import jax
import jax.numpy as jnp
from jax import lax
from jax.experimental import pallas as pl
from jax.experimental.pallas import tpu as pltpu


# ----------------------------------------------------------------------------
# Fused blur path:  filter2D(SR, mixed_kernel) -> simulation(.., PSF) -> ::4
# ----------------------------------------------------------------------------
def _reflect_fill(dst_ref, interior, p):
    """Write `interior` into dst_ref's centre and reflect-fill a p-wide border.

    dst_ref: VMEM scratch ref (C, Hi + 2p, Wi + 2p); interior: (C, Hi, Wi) value.
    Matches F.pad(mode='reflect') (rows first, then columns -> correct corners).
    """
    _, hi, wi = interior.shape
    dst_ref[:, p:p + hi, p:p + wi] = interior
    for r in range(p):
        # top:   padded row (p-1-r)  = interior row (1+r)
        dst_ref[:, p - 1 - r:p - r, :] = dst_ref[:, p + 1 + r:p + 2 + r, :]
        # bottom: padded row (p+hi+r) = interior row (hi-2-r)
        dst_ref[:, p + hi + r:p + hi + r + 1, :] = (
            dst_ref[:, p + hi - 2 - r:p + hi - 1 - r, :])
    for c in range(p):
        dst_ref[:, :, p - 1 - c:p - c] = dst_ref[:, :, p + 1 + c:p + 2 + c]
        dst_ref[:, :, p + wi + c:p + wi + c + 1] = (
            dst_ref[:, :, p + wi - 2 - c:p + wi - 1 - c])


def _fused_blur_kernel(mk_ref, psf_ref, x_ref, o_ref, xpad_ref, spad_ref,
                       *, k1, k2, scale):
    b = pl.program_id(0)
    _, C, H, W = x_ref.shape
    p1, p2 = k1 // 2, k2 // 2
    Ho, Wo = H // scale, W // scale

    # ---- in-kernel reflect pad of the input sample (no jnp.pad HBM pass) ----
    _reflect_fill(xpad_ref, x_ref[0], p1)

    # ---- stage 1: per-sample depthwise correlation (basicsr filter2D) -------
    # One VMEM band load per row tap; the k column shifts reuse the in-register
    # band (k loads instead of k^2).
    acc1 = jnp.zeros((C, H, W), jnp.float32)
    for i in range(k1):
        band = xpad_ref[:, i:i + H, :]                       # (C, H, W + 2p1)
        for j in range(k1):
            acc1 = acc1 + band[:, :, j:j + W] * mk_ref[b, i, j]

    # ---- reflect pad the intermediate entirely in VMEM (never hits HBM) -----
    # TODO(synk): `simulation` source not in the snippet; modeled as
    # reflect-padded depthwise correlation with the PSF.
    _reflect_fill(spad_ref, acc1, p2)

    # ---- stage 2: PSF correlation -------------------------------------------
    acc2 = jnp.zeros((C, H, W), jnp.float32)
    for i in range(k2):
        band = spad_ref[:, i:i + H, :]                       # (C, H, W + 2p2)
        for j in range(k2):
            acc2 = acc2 + band[:, :, j:j + W] * psf_ref[i, j]

    # ---- fold the ::scale decimation in via MXU selection matmuls -----------
    r_sel = (lax.broadcasted_iota(jnp.int32, (Ho, H), 1)
             == scale * lax.broadcasted_iota(jnp.int32, (Ho, H), 0)
             ).astype(jnp.float32)                           # (Ho, H)
    c_sel = (lax.broadcasted_iota(jnp.int32, (W, Wo), 0)
             == scale * lax.broadcasted_iota(jnp.int32, (W, Wo), 1)
             ).astype(jnp.float32)                           # (W, Wo)
    for c in range(C):
        t = jnp.dot(acc2[c], c_sel, preferred_element_type=jnp.float32)
        o_ref[0, c] = jnp.dot(r_sel, t, preferred_element_type=jnp.float32)


def fused_blur_downsample(x, mixed_kernel, psf, scale=4):
    """filter2D(x, mixed_kernel) -> reflect-padded PSF blur -> [:, :, ::s, ::s]."""
    B, C, H, W = x.shape
    k1 = int(mixed_kernel.shape[-1])
    k2 = int(psf.shape[-1])
    p1, p2 = k1 // 2, k2 // 2
    Ho, Wo = H // scale, W // scale
    kernel = functools.partial(_fused_blur_kernel, k1=k1, k2=k2, scale=scale)
    return pl.pallas_call(
        kernel,
        out_shape=jax.ShapeDtypeStruct((B, C, Ho, Wo), jnp.float32),
        grid_spec=pltpu.PrefetchScalarGridSpec(
            num_scalar_prefetch=2,
            grid=(B,),
            in_specs=[pl.BlockSpec((1, C, H, W), lambda b, mk, ps: (b, 0, 0, 0))],
            out_specs=pl.BlockSpec((1, C, Ho, Wo), lambda b, mk, ps: (b, 0, 0, 0)),
            scratch_shapes=[
                pltpu.VMEM((C, H + 2 * p1, W + 2 * p1), jnp.float32),
                pltpu.VMEM((C, H + 2 * p2, W + 2 * p2), jnp.float32),
            ]),
        compiler_params=pltpu.CompilerParams(
            dimension_semantics=("parallel",),        # shards over batch (v7x 2 TCs)
            vmem_limit_bytes=32 * 1024 * 1024),
    )(mixed_kernel.astype(jnp.float32), psf.astype(jnp.float32),
      x.astype(jnp.float32))


# ----------------------------------------------------------------------------
# Streamed L1 reductions over pairs of equally-sized tensors
# ----------------------------------------------------------------------------
def _l1sum_kernel(*refs, n_pairs):
    pid = pl.program_id(0)
    in_refs = refs[:2 * n_pairs]
    out_refs = refs[2 * n_pairs:]
    for p in range(n_pairs):
        a = in_refs[2 * p][...]
        b = in_refs[2 * p + 1][...]
        s = jnp.sum(jnp.abs(a - b))
        o = out_refs[p]

        @pl.when(pid == 0)
        def _init(o=o):
            o[...] = jnp.zeros_like(o)

        o[...] = o[...] + s


def _to_lane_tiles(x, rows_per_chunk):
    """Flatten to a lane-dense (rows, 128) layout, zero-padded to whole chunks."""
    n = int(x.size)
    lane = 128
    chunk = rows_per_chunk * lane
    padded = ((n + chunk - 1) // chunk) * chunk
    xf = jnp.ravel(x).astype(jnp.float32)
    if padded != n:
        xf = jnp.pad(xf, (0, padded - n))
    return xf.reshape(-1, lane)


def _l1_pair_sums(pairs, *, max_rows_per_chunk=512):
    """Return [sum |a-b|] for each (a, b) pair; all pairs must have equal size."""
    n = int(pairs[0][0].size)
    nat_rows = (n + 127) // 128
    rows = min(max_rows_per_chunk, ((nat_rows + 7) // 8) * 8)
    flat = []
    for a, b in pairs:
        assert int(a.size) == n and int(b.size) == n
        flat.append(_to_lane_tiles(a, rows))
        flat.append(_to_lane_tiles(b, rows))
    total_rows = flat[0].shape[0]
    grid = (total_rows // rows,)
    npairs = len(pairs)
    outs = pl.pallas_call(
        functools.partial(_l1sum_kernel, n_pairs=npairs),
        grid=grid,
        in_specs=[pl.BlockSpec((rows, 128), lambda i: (i, 0))
                  for _ in range(2 * npairs)],
        out_specs=tuple(pl.BlockSpec((1, 1), lambda i: (0, 0))
                        for _ in range(npairs)),
        out_shape=tuple(jax.ShapeDtypeStruct((1, 1), jnp.float32)
                        for _ in range(npairs)),
        compiler_params=pltpu.CompilerParams(
            dimension_semantics=("arbitrary",),       # resident accumulators
            vmem_limit_bytes=32 * 1024 * 1024),
    )(*flat)
    return [o[0, 0] for o in outs]


# ----------------------------------------------------------------------------
# TV loss partial sums (per-(b, c) plane grid, resident scalar accumulators)
# ----------------------------------------------------------------------------
def _tv_kernel(x_ref, h_ref, w_ref):
    pid = pl.program_id(0)
    x = x_ref[0]                                   # (H, W) plane
    dh = x[1:, :] - x[:-1, :]
    dw = x[:, 1:] - x[:, :-1]
    h_part = jnp.sum(dh * dh)
    w_part = jnp.sum(dw * dw)

    @pl.when(pid == 0)
    def _():
        h_ref[...] = jnp.zeros_like(h_ref)
        w_ref[...] = jnp.zeros_like(w_ref)

    h_ref[...] = h_ref[...] + h_part
    w_ref[...] = w_ref[...] + w_part


def tv_partial_sums(sr):
    B, C, H, W = sr.shape
    planes = sr.reshape(B * C, H, W).astype(jnp.float32)
    h_s, w_s = pl.pallas_call(
        _tv_kernel,
        grid=(B * C,),
        in_specs=[pl.BlockSpec((1, H, W), lambda i: (i, 0, 0))],
        out_specs=(pl.BlockSpec((1, 1), lambda i: (0, 0)),
                   pl.BlockSpec((1, 1), lambda i: (0, 0))),
        out_shape=(jax.ShapeDtypeStruct((1, 1), jnp.float32),
                   jax.ShapeDtypeStruct((1, 1), jnp.float32)),
        compiler_params=pltpu.CompilerParams(
            dimension_semantics=("arbitrary",),
            vmem_limit_bytes=32 * 1024 * 1024),
    )(planes)
    return h_s[0, 0], w_s[0, 0]


# ----------------------------------------------------------------------------
# get_loss forward
# ----------------------------------------------------------------------------
def get_loss(input_data, output_data):
    psf = input_data["psf"]                    # (kp, kp)
    gt = input_data["gt"]                      # (B, C, H, W)
    mixed_kernel = input_data["mixed_kernel"]  # (B, k, k)
    input_clean = input_data["input_clean"]    # (B, C, H//4, W//4)
    sr = output_data["sr"]                     # (B, C, H, W)
    clean = output_data["clean"]               # (B, C, H//4, W//4)

    B, C, H, W = sr.shape
    scale = 4

    gt = gt.astype(jnp.float32)
    sr = sr.astype(jnp.float32)
    input_clean = input_clean.astype(jnp.float32)
    clean = clean.astype(jnp.float32)

    # Fused blur path: sinc_SR never leaves VMEM; only the ::4 output is written.
    outputs = fused_blur_downsample(sr, mixed_kernel, psf, scale=scale)

    # FFT features: fft2 has no Pallas equivalent (stays in XLA); real/imag are
    # passed as separate contiguous arrays into the tiled Pallas L1 reduction.
    f_gt = jnp.fft.fft2(gt)
    f_sr = jnp.fft.fft2(sr)
    f_out = jnp.fft.fft2(outputs)
    f_ic = jnp.fft.fft2(input_clean)

    l1_gt_sr, fft_big_re, fft_big_im = _l1_pair_sums([
        (gt, sr),
        (jnp.real(f_gt), jnp.real(f_sr)),
        (jnp.imag(f_gt), jnp.imag(f_sr)),
    ])
    l1_ic_cl, l1_out_ic, fft_sm_re, fft_sm_im = _l1_pair_sums([
        (input_clean, clean),
        (outputs, input_clean),
        (jnp.real(f_out), jnp.real(f_ic)),
        (jnp.imag(f_out), jnp.imag(f_ic)),
    ])

    h_tv, w_tv = tv_partial_sums(sr)

    # Final weighted combination: host-side reciprocals, one multiply per term.
    n_small = float(input_clean.size)
    n_big = float(sr.size)
    count_h = float(C * (H - 1) * W)    # TVLoss._tensor_size excludes batch dim
    count_w = float(C * H * (W - 1))

    tv = 2.0 * (h_tv * (1.0 / count_h) + w_tv * (1.0 / count_w)) * (1.0 / B)
    loss = (l1_ic_cl * (1.0 / n_small)
            + tv
            + (fft_big_re + fft_big_im) * (1.0 / (2.0 * n_big))
            + l1_gt_sr * (1.0 / n_big)
            + (fft_sm_re + fft_sm_im) * (1.0 / (2.0 * n_small))
            + l1_out_ic * (1.0 / n_small))
    return loss


if __name__ == "__main__":
    key = jax.random.PRNGKey(0)
    B, C, H, W = 2, 4, 16, 16
    scale = 4
    k_mix, k_psf = 5, 5
    keys = jax.random.split(key, 6)

    gt = jax.random.normal(keys[0], (B, C, H, W), jnp.float32)
    sr = jax.random.normal(keys[1], (B, C, H, W), jnp.float32)
    input_clean = jax.random.normal(keys[2], (B, C, H // scale, W // scale), jnp.float32)
    clean = jax.random.normal(keys[3], (B, C, H // scale, W // scale), jnp.float32)

    mixed_kernel = jax.random.uniform(keys[4], (B, k_mix, k_mix), jnp.float32)
    mixed_kernel = mixed_kernel / jnp.sum(mixed_kernel, axis=(-2, -1), keepdims=True)
    psf = jax.random.uniform(keys[5], (k_psf, k_psf), jnp.float32)
    psf = psf / jnp.sum(psf)

    input_data = {"psf": psf, "gt": gt, "mixed_kernel": mixed_kernel,
                  "input_clean": input_clean}
    output_data = {"sr": sr, "clean": clean}

    loss = get_loss(input_data, output_data)
    jax.block_until_ready(loss)
    print("KERNEL_OK")
</pallas_src>

<mosaic_0001>
module attributes {stable_mosaic.version = 11 : i64} {
  func.func @_fused_blur_kernel(%arg0: i32, %arg1: memref<2x5x5xf32, #tpu.memory_space<smem>>, %arg2: memref<5x5xf32, #tpu.memory_space<smem>>, %arg3: memref<1x4x16x16xf32, #tpu.memory_space<vmem>>, %arg4: memref<1x4x4x4xf32, #tpu.memory_space<vmem>>, %arg5: memref<4x20x20xf32, #tpu.memory_space<vmem>>, %arg6: memref<4x20x20xf32, #tpu.memory_space<vmem>>) attributes {dimension_semantics = [#tpu.dimension_semantics<parallel>], iteration_bounds = array<i64: 2>, scalar_prefetch = 2 : i64, scratch_operands = 2 : i64, tpu.core_type = #tpu.core_type<tc>, window_params = [{transform_indices = @transform_0, window_bounds = array<i64: 1, 4, 16, 16>}, {transform_indices = @transform_1, window_bounds = array<i64: 1, 4, 4, 4>}]} {
    %c0 = arith.constant 0 : index
    %c0_0 = arith.constant 0 : index
    %c0_1 = arith.constant 0 : index
    %c0_2 = arith.constant 0 : index
    %0 = vector.load %arg3[%c0, %c0_0, %c0_1, %c0_2] : memref<1x4x16x16xf32, #tpu.memory_space<vmem>>, vector<1x4x16x16xf32>
    %1 = vector.shape_cast %0 : vector<1x4x16x16xf32> to vector<4x16x16xf32>
    %c0_3 = arith.constant 0 : index
    %c2 = arith.constant 2 : index
    %c2_4 = arith.constant 2 : index
    %2 = vector.load %arg5[%c0_3, %c2, %c2_4] : memref<4x20x20xf32, #tpu.memory_space<vmem>>, vector<4x16x16xf32>
    tpu.vector_store %arg5[%c0_3, %c2, %c2_4], %1 {strides = array<i32>} : memref<4x20x20xf32, #tpu.memory_space<vmem>>, vector<4x16x16xf32>,
    %c0_5 = arith.constant 0 : index
    %c3 = arith.constant 3 : index
    %c0_6 = arith.constant 0 : index
    %3 = vector.load %arg5[%c0_5, %c3, %c0_6] : memref<4x20x20xf32, #tpu.memory_space<vmem>>, vector<4x1x20xf32>
    %c0_7 = arith.constant 0 : index
    %c1 = arith.constant 1 : index
    %c0_8 = arith.constant 0 : index
    %4 = vector.load %arg5[%c0_7, %c1, %c0_8] : memref<4x20x20xf32, #tpu.memory_space<vmem>>, vector<4x1x20xf32>
    tpu.vector_store %arg5[%c0_7, %c1, %c0_8], %3 {strides = array<i32>} : memref<4x20x20xf32, #tpu.memory_space<vmem>>, vector<4x1x20xf32>,
    %c0_9 = arith.constant 0 : index
    %c16 = arith.constant 16 : index
    %c0_10 = arith.constant 0 : index
    %5 = vector.load %arg5[%c0_9, %c16, %c0_10] : memref<4x20x20xf32, #tpu.memory_space<vmem>>, vector<4x1x20xf32>
    %c0_11 = arith.constant 0 : index
    %c18 = arith.constant 18 : index
    %c0_12 = arith.constant 0 : index
    %6 = vector.load %arg5[%c0_11, %c18, %c0_12] : memref<4x20x20xf32, #tpu.memory_space<vmem>>, vector<4x1x20xf32>
    tpu.vector_store %arg5[%c0_11, %c18, %c0_12], %5 {strides = array<i32>} : memref<4x20x20xf32, #tpu.memory_space<vmem>>, vector<4x1x20xf32>,
    %c0_13 = arith.constant 0 : index
    %c4 = arith.constant 4 : index
    %c0_14 = arith.constant 0 : index
    %7 = vector.load %arg5[%c0_13, %c4, %c0_14] : memref<4x20x20xf32, #tpu.memory_space<vmem>>, vector<4x1x20xf32>
    %c0_15 = arith.constant 0 : index
    %c0_16 = arith.constant 0 : index
    %c0_17 = arith.constant 0 : index
    %8 = vector.load %arg5[%c0_15, %c0_16, %c0_17] : memref<4x20x20xf32, #tpu.memory_space<vmem>>, vector<4x1x20xf32>
    tpu.vector_store %arg5[%c0_15, %c0_16, %c0_17], %7 {strides = array<i32>} : memref<4x20x20xf32, #tpu.memory_space<vmem>>, vector<4x1x20xf32>,
    %c0_18 = arith.constant 0 : index
    %c15 = arith.constant 15 : index
    %c0_19 = arith.constant 0 : index
    %9 = vector.load %arg5[%c0_18, %c15, %c0_19] : memref<4x20x20xf32, #tpu.memory_space<vmem>>, vector<4x1x20xf32>
    %c0_20 = arith.constant 0 : index
    %c19 = arith.constant 19 : index
    %c0_21 = arith.constant 0 : index
    %10 = vector.load %arg5[%c0_20, %c19, %c0_21] : memref<4x20x20xf32, #tpu.memory_space<vmem>>, vector<4x1x20xf32>
    tpu.vector_store %arg5[%c0_20, %c19, %c0_21], %9 {strides = array<i32>} : memref<4x20x20xf32, #tpu.memory_space<vmem>>, vector<4x1x20xf32>,
    %c0_22 = arith.constant 0 : index
    %c0_23 = arith.constant 0 : index
    %c3_24 = arith.constant 3 : index
    %11 = vector.load %arg5[%c0_22, %c0_23, %c3_24] : memref<4x20x20xf32, #tpu.memory_space<vmem>>, vector<4x20x1xf32>
    %c0_25 = arith.constant 0 : index
    %c0_26 = arith.constant 0 : index
    %c1_27 = arith.constant 1 : index
    %12 = vector.load %arg5[%c0_25, %c0_26, %c1_27] : memref<4x20x20xf32, #tpu.memory_space<vmem>>, vector<4x20x1xf32>
    tpu.vector_store %arg5[%c0_25, %c0_26, %c1_27], %11 {strides = array<i32>} : memref<4x20x20xf32, #tpu.memory_space<vmem>>, vector<4x20x1xf32>,
    %c0_28 = arith.constant 0 : index
    %c0_29 = arith.constant 0 : index
    %c16_30 = arith.constant 16 : index
    %13 = vector.load %arg5[%c0_28, %c0_29, %c16_30] : memref<4x20x20xf32, #tpu.memory_space<vmem>>, vector<4x20x1xf32>
    %c0_31 = arith.constant 0 : index
    %c0_32 = arith.constant 0 : index
    %c18_33 = arith.constant 18 : index
    %14 = vector.load %arg5[%c0_31, %c0_32, %c18_33] : memref<4x20x20xf32, #tpu.memory_space<vmem>>, vector<4x20x1xf32>
    tpu.vector_store %arg5[%c0_31, %c0_32, %c18_33], %13 {strides = array<i32>} : memref<4x20x20xf32, #tpu.memory_space<vmem>>, vector<4x20x1xf32>,
    %c0_34 = arith.constant 0 : index
    %c0_35 = arith.constant 0 : index
    %c4_36 = arith.constant 4 : index
    %15 = vector.load %arg5[%c0_34, %c0_35, %c4_36] : memref<4x20x20xf32, #tpu.memory_space<vmem>>, vector<4x20x1xf32>
    %c0_37 = arith.constant 0 : index
    %c0_38 = arith.constant 0 : index
    %c0_39 = arith.constant 0 : index
    %16 = vector.load %arg5[%c0_37, %c0_38, %c0_39] : memref<4x20x20xf32, #tpu.memory_space<vmem>>, vector<4x20x1xf32>
    tpu.vector_store %arg5[%c0_37, %c0_38, %c0_39], %15 {strides = array<i32>} : memref<4x20x20xf32, #tpu.memory_space<vmem>>, vector<4x20x1xf32>,
    %c0_40 = arith.constant 0 : index
    %c0_41 = arith.constant 0 : index
    %c15_42 = arith.constant 15 : index
    %17 = vector.load %arg5[%c0_40, %c0_41, %c15_42] : memref<4x20x20xf32, #tpu.memory_space<vmem>>, vector<4x20x1xf32>
    %c0_43 = arith.constant 0 : index
    %c0_44 = arith.constant 0 : index
    %c19_45 = arith.constant 19 : index
    %18 = vector.load %arg5[%c0_43, %c0_44, %c19_45] : memref<4x20x20xf32, #tpu.memory_space<vmem>>, vector<4x20x1xf32>
    tpu.vector_store %arg5[%c0_43, %c0_44, %c19_45], %17 {strides = array<i32>} : memref<4x20x20xf32, #tpu.memory_space<vmem>>, vector<4x20x1xf32>,
    %cst = arith.constant 0.000000e+00 : f32
    %19 = vector.broadcast %cst : f32 to vector<4x16x16xf32>
    %c0_46 = arith.constant 0 : index
    %c0_47 = arith.constant 0 : index
    %c0_48 = arith.constant 0 : index
    %20 = vector.load %arg5[%c0_46, %c0_47, %c0_48] : memref<4x20x20xf32, #tpu.memory_space<vmem>>, vector<4x16x20xf32>
    %21 = vector.extract_strided_slice %20 {offsets = [0, 0, 0], sizes = [4, 16, 16], strides = [1, 1, 1]} : vector<4x16x20xf32> to vector<4x16x16xf32>
    %22 = arith.index_cast %arg0 : i32 to index
    %c0_49 = arith.constant 0 : index
    %c0_50 = arith.constant 0 : index
    %23 = memref.load %arg1[%22, %c0_49, %c0_50] : memref<2x5x5xf32, #tpu.memory_space<smem>>
    %24 = vector.broadcast %23 : f32 to vector<4x16x16xf32>
    %25 = arith.mulf %21, %24 : vector<4x16x16xf32>
    %26 = arith.addf %19, %25 : vector<4x16x16xf32>
    %27 = vector.extract_strided_slice %20 {offsets = [0, 0, 1], sizes = [4, 16, 16], strides = [1, 1, 1]} : vector<4x16x20xf32> to vector<4x16x16xf32>
    %28 = arith.index_cast %arg0 : i32 to index
    %c0_51 = arith.constant 0 : index
    %c1_52 = arith.constant 1 : index
    %29 = memref.load %arg1[%28, %c0_51, %c1_52] : memref<2x5x5xf32, #tpu.memory_space<smem>>
    %30 = vector.broadcast %29 : f32 to vector<4x16x16xf32>
    %31 = arith.mulf %27, %30 : vector<4x16x16xf32>
    %32 = arith.addf %26, %31 : vector<4x16x16xf32>
    %33 = vector.extract_strided_slice %20 {offsets = [0, 0, 2], sizes = [4, 16, 16], strides = [1, 1, 1]} : vector<4x16x20xf32> to vector<4x16x16xf32>
    %34 = arith.index_cast %arg0 : i32 to index
    %c0_53 = arith.constant 0 : index
    %c2_54 = arith.constant 2 : index
    %35 = memref.load %arg1[%34, %c0_53, %c2_54] : memref<2x5x5xf32, #tpu.memory_space<smem>>
    %36 = vector.broadcast %35 : f32 to vector<4x16x16xf32>
    %37 = arith.mulf %33, %36 : vector<4x16x16xf32>
    %38 = arith.addf %32, %37 : vector<4x16x16xf32>
    %39 = vector.extract_strided_slice %20 {offsets = [0, 0, 3], sizes = [4, 16, 16], strides = [1, 1, 1]} : vector<4x16x20xf32> to vector<4x16x16xf32>
    %40 = arith.index_cast %arg0 : i32 to index
    %c0_55 = arith.constant 0 : index
    %c3_56 = arith.constant 3 : index
    %41 = memref.load %arg1[%40, %c0_55, %c3_56] : memref<2x5x5xf32, #tpu.memory_space<smem>>
    %42 = vector.broadcast %41 : f32 to vector<4x16x16xf32>
    %43 = arith.mulf %39, %42 : vector<4x16x16xf32>
    %44 = arith.addf %38, %43 : vector<4x16x16xf32>
    %45 = vector.extract_strided_slice %20 {offsets = [0, 0, 4], sizes = [4, 16, 16], strides = [1, 1, 1]} : vector<4x16x20xf32> to vector<4x16x16xf32>
    %46 = arith.index_cast %arg0 : i32 to index
    %c0_57 = arith.constant 0 : index
    %c4_58 = arith.constant 4 : index
    %47 = memref.load %arg1[%46, %c0_57, %c4_58] : memref<2x5x5xf32, #tpu.memory_space<smem>>
    %48 = vector.broadcast %47 : f32 to vector<4x16x16xf32>
    %49 = arith.mulf %45, %48 : vector<4x16x16xf32>
    %50 = arith.addf %44, %49 : vector<4x16x16xf32>
    %c0_59 = arith.constant 0 : index
    %c1_60 = arith.constant 1 : index
    %c0_61 = arith.constant 0 : index
    %51 = vector.load %arg5[%c0_59, %c1_60, %c0_61] : memref<4x20x20xf32, #tpu.memory_space<vmem>>, vector<4x16x20xf32>
    %52 = vector.extract_strided_slice %51 {offsets = [0, 0, 0], sizes = [4, 16, 16], strides = [1, 1, 1]} : vector<4x16x20xf32> to vector<4x16x16xf32>
    %53 = arith.index_cast %arg0 : i32 to index
    %c1_62 = arith.constant 1 : index
    %c0_63 = arith.constant 0 : index
    %54 = memref.load %arg1[%53, %c1_62, %c0_63] : memref<2x5x5xf32, #tpu.memory_space<smem>>
    %55 = vector.broadcast %54 : f32 to vector<4x16x16xf32>
    %56 = arith.mulf %52, %55 : vector<4x16x16xf32>
    %57 = arith.addf %50, %56 : vector<4x16x16xf32>
    %58 = vector.extract_strided_slice %51 {offsets = [0, 0, 1], sizes = [4, 16, 16], strides = [1, 1, 1]} : vector<4x16x20xf32> to vector<4x16x16xf32>
    %59 = arith.index_cast %arg0 : i32 to index
    %c1_64 = arith.constant 1 : index
    %c1_65 = arith.constant 1 : index
    %60 = memref.load %arg1[%59, %c1_64, %c1_65] : memref<2x5x5xf32, #tpu.memory_space<smem>>
    %61 = vector.broadcast %60 : f32 to vector<4x16x16xf32>
    %62 = arith.mulf %58, %61 : vector<4x16x16xf32>
    %63 = arith.addf %57, %62 : vector<4x16x16xf32>
    %64 = vector.extract_strided_slice %51 {offsets = [0, 0, 2], sizes = [4, 16, 16], strides = [1, 1, 1]} : vector<4x16x20xf32> to vector<4x16x16xf32>
    %65 = arith.index_cast %arg0 : i32 to index
    %c1_66 = arith.constant 1 : index
    %c2_67 = arith.constant 2 : index
    %66 = memref.load %arg1[%65, %c1_66, %c2_67] : memref<2x5x5xf32, #tpu.memory_space<smem>>
    %67 = vector.broadcast %66 : f32 to vector<4x16x16xf32>
    %68 = arith.mulf %64, %67 : vector<4x16x16xf32>
    %69 = arith.addf %63, %68 : vector<4x16x16xf32>
    %70 = vector.extract_strided_slice %51 {offsets = [0, 0, 3], sizes = [4, 16, 16], strides = [1, 1, 1]} : vector<4x16x20xf32> to vector<4x16x16xf32>
    %71 = arith.index_cast %arg0 : i32 to index
    %c1_68 = arith.constant 1 : index
    %c3_69 = arith.constant 3 : index
    %72 = memref.load %arg1[%71, %c1_68, %c3_69] : memref<2x5x5xf32, #tpu.memory_space<smem>>
    %73 = vector.broadcast %72 : f32 to vector<4x16x16xf32>
    %74 = arith.mulf %70, %73 : vector<4x16x16xf32>
    %75 = arith.addf %69, %74 : vector<4x16x16xf32>
    %76 = vector.extract_strided_slice %51 {offsets = [0, 0, 4], sizes = [4, 16, 16], strides = [1, 1, 1]} : vector<4x16x20xf32> to vector<4x16x16xf32>
    %77 = arith.index_cast %arg0 : i32 to index
    %c1_70 = arith.constant 1 : index
    %c4_71 = arith.constant 4 : index
    %78 = memref.load %arg1[%77, %c1_70, %c4_71] : memref<2x5x5xf32, #tpu.memory_space<smem>>
    %79 = vector.broadcast %78 : f32 to vector<4x16x16xf32>
    %80 = arith.mulf %76, %79 : vector<4x16x16xf32>
    %81 = arith.addf %75, %80 : vector<4x16x16xf32>
    %c0_72 = arith.constant 0 : index
    %c2_73 = arith.constant 2 : index
    %c0_74 = arith.constant 0 : index
    %82 = vector.load %arg5[%c0_72, %c2_73, %c0_74] : memref<4x20x20xf32, #tpu.memory_space<vmem>>, vector<4x16x20xf32>
    %83 = vector.extract_strided_slice %82 {offsets = [0, 0, 0], sizes = [4, 16, 16], strides = [1, 1, 1]} : vector<4x16x20xf32> to vector<4x16x16xf32>
    %84 = arith.index_cast %arg0 : i32 to index
    %c2_75 = arith.constant 2 : index
    %c0_76 = arith.constant 0 : index
    %85 = memref.load %arg1[%84, %c2_75, %c0_76] : memref<2x5x5xf32, #tpu.memory_space<smem>>
    %86 = vector.broadcast %85 : f32 to vector<4x16x16xf32>
    %87 = arith.mulf %83, %86 : vector<4x16x16xf32>
    %88 = arith.addf %81, %87 : vector<4x16x16xf32>
    %89 = vector.extract_strided_slice %82 {offsets = [0, 0, 1], sizes = [4, 16, 16], strides = [1, 1, 1]} : vector<4x16x20xf32> to vector<4x16x16xf32>
    %90 = arith.index_cast %arg0 : i32 to index
    %c2_77 = arith.constant 2 : index
    %c1_78 = arith.constant 1 : index
    %91 = memref.load %arg1[%90, %c2_77, %c1_78] : memref<2x5x5xf32, #tpu.memory_space<smem>>
    %92 = vector.broadcast %91 : f32 to vector<4x16x16xf32>
    %93 = arith.mulf %89, %92 : vector<4x16x16xf32>
    %94 = arith.addf %88, %93 : vector<4x16x16xf32>
    %95 = vector.extract_strided_slice %82 {offsets = [0, 0, 2], sizes = [4, 16, 16], strides = [1, 1, 1]} : vector<4x16x20xf32> to vector<4x16x16xf32>
    %96 = arith.index_cast %arg0 : i32 to index
    %c2_79 = arith.constant 2 : index
    %c2_80 = arith.constant 2 : index
    %97 = memref.load %arg1[%96, %c2_79, %c2_80] : memref<2x5x5xf32, #tpu.memory_space<smem>>
    %98 = vector.broadcast %97 : f32 to vector<4x16x16xf32>
    %99 = arith.mulf %95, %98 : vector<4x16x16xf32>
    %100 = arith.addf %94, %99 : vector<4x16x16xf32>
    %101 = vector.extract_strided_slice %82 {offsets = [0, 0, 3], sizes = [4, 16, 16], strides = [1, 1, 1]} : vector<4x16x20xf32> to vector<4x16x16xf32>
    %102 = arith.index_cast %arg0 : i32 to index
    %c2_81 = arith.constant 2 : index
    %c3_82 = arith.constant 3 : index
    %103 = memref.load %arg1[%102, %c2_81, %c3_82] : memref<2x5x5xf32, #tpu.memory_space<smem>>
    %104 = vector.broadcast %103 : f32 to vector<4x16x16xf32>
    %105 = arith.mulf %101, %104 : vector<4x16x16xf32>
    %106 = arith.addf %100, %105 : vector<4x16x16xf32>
    %107 = vector.extract_strided_slice %82 {offsets = [0, 0, 4], sizes = [4, 16, 16], strides = [1, 1, 1]} : vector<4x16x20xf32> to vector<4x16x16xf32>
    %108 = arith.index_cast %arg0 : i32 to index
    %c2_83 = arith.constant 2 : index
    %c4_84 = arith.constant 4 : index
    %109 = memref.load %arg1[%108, %c2_83, %c4_84] : memref<2x5x5xf32, #tpu.memory_space<smem>>
    %110 = vector.broadcast %109 : f32 to vector<4x16x16xf32>
    %111 = arith.mulf %107, %110 : vector<4x16x16xf32>
    %112 = arith.addf %106, %111 : vector<4x16x16xf32>
    %c0_85 = arith.constant 0 : index
    %c3_86 = arith.constant 3 : index
    %c0_87 = arith.constant 0 : index
    %113 = vector.load %arg5[%c0_85, %c3_86, %c0_87] : memref<4x20x20xf32, #tpu.memory_space<vmem>>, vector<4x16x20xf32>
    %114 = vector.extract_strided_slice %113 {offsets = [0, 0, 0], sizes = [4, 16, 16], strides = [1, 1, 1]} : vector<4x16x20xf32> to vector<4x16x16xf32>
    %115 = arith.index_cast %arg0 : i32 to index
    %c3_88 = arith.constant 3 : index
    %c0_89 = arith.constant 0 : index
    %116 = memref.load %arg1[%115, %c3_88, %c0_89] : memref<2x5x5xf32, #tpu.memory_space<smem>>
    %117 = vector.broadcast %116 : f32 to vector<4x16x16xf32>
    %118 = arith.mulf %114, %117 : vector<4x16x16xf32>
    %119 = arith.addf %112, %118 : vector<4x16x16xf32>
    %120 = vector.extract_strided_slice %113 {offsets = [0, 0, 1], sizes = [4, 16, 16], strides = [1, 1, 1]} : vector<4x16x20xf32> to vector<4x16x16xf32>
    %121 = arith.index_cast %arg0 : i32 to index
    %c3_90 = arith.constant 3 : index
    %c1_91 = arith.constant 1 : index
    %122 = memref.load %arg1[%121, %c3_90, %c1_91] : memref<2x5x5xf32, #tpu.memory_space<smem>>
    %123 = vector.broadcast %122 : f32 to vector<4x16x16xf32>
    %124 = arith.mulf %120, %123 : vector<4x16x16xf32>
    %125 = arith.addf %119, %124 : vector<4x16x16xf32>
    %126 = vector.extract_strided_slice %113 {offsets = [0, 0, 2], sizes = [4, 16, 16], strides = [1, 1, 1]} : vector<4x16x20xf32> to vector<4x16x16xf32>
    %127 = arith.index_cast %arg0 : i32 to index
    %c3_92 = arith.constant 3 : index
    %c2_93 = arith.constant 2 : index
    %128 = memref.load %arg1[%127, %c3_92, %c2_93] : memref<2x5x5xf32, #tpu.memory_space<smem>>
    %129 = vector.broadcast %128 : f32 to vector<4x16x16xf32>
    %130 = arith.mulf %126, %129 : vector<4x16x16xf32>
    %131 = arith.addf %125, %130 : vector<4x16x16xf32>
    %132 = vector.extract_strided_slice %113 {offsets = [0, 0, 3], sizes = [4, 16, 16], strides = [1, 1, 1]} : vector<4x16x20xf32> to vector<4x16x16xf32>
    %133 = arith.index_cast %arg0 : i32 to index
    %c3_94 = arith.constant 3 : index
    %c3_95 = arith.constant 3 : index
    %134 = memref.load %arg1[%133, %c3_94, %c3_95] : memref<2x5x5xf32, #tpu.memory_space<smem>>
    %135 = vector.broadcast %134 : f32 to vector<4x16x16xf32>
    %136 = arith.mulf %132, %135 : vector<4x16x16xf32>
    %137 = arith.addf %131, %136 : vector<4x16x16xf32>
    %138 = vector.extract_strided_slice %113 {offsets = [0, 0, 4], sizes = [4, 16, 16], strides = [1, 1, 1]} : vector<4x16x20xf32> to vector<4x16x16xf32>
    %139 = arith.index_cast %arg0 : i32 to index
    %c3_96 = arith.constant 3 : index
    %c4_97 = arith.constant 4 : index
    %140 = memref.load %arg1[%139, %c3_96, %c4_97] : memref<2x5x5xf32, #tpu.memory_space<smem>>
    %141 = vector.broadcast %140 : f32 to vector<4x16x16xf32>
    %142 = arith.mulf %138, %141 : vector<4x16x16xf32>
    %143 = arith.addf %137, %142 : vector<4x16x16xf32>
    %c0_98 = arith.constant 0 : index
    %c4_99 = arith.constant 4 : index
    %c0_100 = arith.constant 0 : index
    %144 = vector.load %arg5[%c0_98, %c4_99, %c0_100] : memref<4x20x20xf32, #tpu.memory_space<vmem>>, vector<4x16x20xf32>
    %145 = vector.extract_strided_slice %144 {offsets = [0, 0, 0], sizes = [4, 16, 16], strides = [1, 1, 1]} : vector<4x16x20xf32> to vector<4x16x16xf32>
    %146 = arith.index_cast %arg0 : i32 to index
    %c4_101 = arith.constant 4 : index
    %c0_102 = arith.constant 0 : index
    %147 = memref.load %arg1[%146, %c4_101, %c0_102] : memref<2x5x5xf32, #tpu.memory_space<smem>>
    %148 = vector.broadcast %147 : f32 to vector<4x16x16xf32>
    %149 = arith.mulf %145, %148 : vector<4x16x16xf32>
    %150 = arith.addf %143, %149 : vector<4x16x16xf32>
    %151 = vector.extract_strided_slice %144 {offsets = [0, 0, 1], sizes = [4, 16, 16], strides = [1, 1, 1]} : vector<4x16x20xf32> to vector<4x16x16xf32>
    %152 = arith.index_cast %arg0 : i32 to index
    %c4_103 = arith.constant 4 : index
    %c1_104 = arith.constant 1 : index
    %153 = memref.load %arg1[%152, %c4_103, %c1_104] : memref<2x5x5xf32, #tpu.memory_space<smem>>
    %154 = vector.broadcast %153 : f32 to vector<4x16x16xf32>
    %155 = arith.mulf %151, %154 : vector<4x16x16xf32>
    %156 = arith.addf %150, %155 : vector<4x16x16xf32>
    %157 = vector.extract_strided_slice %144 {offsets = [0, 0, 2], sizes = [4, 16, 16], strides = [1, 1, 1]} : vector<4x16x20xf32> to vector<4x16x16xf32>
    %158 = arith.index_cast %arg0 : i32 to index
    %c4_105 = arith.constant 4 : index
    %c2_106 = arith.constant 2 : index
    %159 = memref.load %arg1[%158, %c4_105, %c2_106] : memref<2x5x5xf32, #tpu.memory_space<smem>>
    %160 = vector.broadcast %159 : f32 to vector<4x16x16xf32>
    %161 = arith.mulf %157, %160 : vector<4x16x16xf32>
    %162 = arith.addf %156, %161 : vector<4x16x16xf32>
    %163 = vector.extract_strided_slice %144 {offsets = [0, 0, 3], sizes = [4, 16, 16], strides = [1, 1, 1]} : vector<4x16x20xf32> to vector<4x16x16xf32>
    %164 = arith.index_cast %arg0 : i32 to index
    %c4_107 = arith.constant 4 : index
    %c3_108 = arith.constant 3 : index
    %165 = memref.load %arg1[%164, %c4_107, %c3_108] : memref<2x5x5xf32, #tpu.memory_space<smem>>
    %166 = vector.broadcast %165 : f32 to vector<4x16x16xf32>
    %167 = arith.mulf %163, %166 : vector<4x16x16xf32>
    %168 = arith.addf %162, %167 : vector<4x16x16xf32>
    %169 = vector.extract_strided_slice %144 {offsets = [0, 0, 4], sizes = [4, 16, 16], strides = [1, 1, 1]} : vector<4x16x20xf32> to vector<4x16x16xf32>
    %170 = arith.index_cast %arg0 : i32 to index
    %c4_109 = arith.constant 4 : index
    %c4_110 = arith.constant 4 : index
    %171 = memref.load %arg1[%170, %c4_109, %c4_110] : memref<2x5x5xf32, #tpu.memory_space<smem>>
    %172 = vector.broadcast %171 : f32 to vector<4x16x16xf32>
    %173 = arith.mulf %169, %172 : vector<4x16x16xf32>
    %174 = arith.addf %168, %173 : vector<4x16x16xf32>
    %c0_111 = arith.constant 0 : index
    %c2_112 = arith.constant 2 : index
    %c2_113 = arith.constant 2 : index
    %175 = vector.load %arg6[%c0_111, %c2_112, %c2_113] : memref<4x20x20xf32, #tpu.memory_space<vmem>>, vector<4x16x16xf32>
    tpu.vector_store %arg6[%c0_111, %c2_112, %c2_113], %174 {strides = array<i32>} : memref<4x20x20xf32, #tpu.memory_space<vmem>>, vector<4x16x16xf32>,
    %c0_114 = arith.constant 0 : index
    %c3_115 = arith.constant 3 : index
    %c0_116 = arith.constant 0 : index
    %176 = vector.load %arg6[%c0_114, %c3_115, %c0_116] : memref<4x20x20xf32, #tpu.memory_space<vmem>>, vector<4x1x20xf32>
    %c0_117 = arith.constant 0 : index
    %c1_118 = arith.constant 1 : index
    %c0_119 = arith.constant 0 : index
    %177 = vector.load %arg6[%c0_117, %c1_118, %c0_119] : memref<4x20x20xf32, #tpu.memory_space<vmem>>, vector<4x1x20xf32>
    tpu.vector_store %arg6[%c0_117, %c1_118, %c0_119], %176 {strides = array<i32>} : memref<4x20x20xf32, #tpu.memory_space<vmem>>, vector<4x1x20xf32>,
    %c0_120 = arith.constant 0 : index
    %c16_121 = arith.constant 16 : index
    %c0_122 = arith.constant 0 : index
    %178 = vector.load %arg6[%c0_120, %c16_121, %c0_122] : memref<4x20x20xf32, #tpu.memory_space<vmem>>, vector<4x1x20xf32>
    %c0_123 = arith.constant 0 : index
    %c18_124 = arith.constant 18 : index
    %c0_125 = arith.constant 0 : index
    %179 = vector.load %arg6[%c0_123, %c18_124, %c0_125] : memref<4x20x20xf32, #tpu.memory_space<vmem>>, vector<4x1x20xf32>
    tpu.vector_store %arg6[%c0_123, %c18_124, %c0_125], %178 {strides = array<i32>} : memref<4x20x20xf32, #tpu.memory_space<vmem>>, vector<4x1x20xf32>,
    %c0_126 = arith.constant 0 : index
    %c4_127 = arith.constant 4 : index
    %c0_128 = arith.constant 0 : index
    %180 = vector.load %arg6[%c0_126, %c4_127, %c0_128] : memref<4x20x20xf32, #tpu.memory_space<vmem>>, vector<4x1x20xf32>
    %c0_129 = arith.constant 0 : index
    %c0_130 = arith.constant 0 : index
    %c0_131 = arith.constant 0 : index
    %181 = vector.load %arg6[%c0_129, %c0_130, %c0_131] : memref<4x20x20xf32, #tpu.memory_space<vmem>>, vector<4x1x20xf32>
    tpu.vector_store %arg6[%c0_129, %c0_130, %c0_131], %180 {strides = array<i32>} : memref<4x20x20xf32, #tpu.memory_space<vmem>>, vector<4x1x20xf32>,
    %c0_132 = arith.constant 0 : index
    %c15_133 = arith.constant 15 : index
    %c0_134 = arith.constant 0 : index
    %182 = vector.load %arg6[%c0_132, %c15_133, %c0_134] : memref<4x20x20xf32, #tpu.memory_space<vmem>>, vector<4x1x20xf32>
    %c0_135 = arith.constant 0 : index
    %c19_136 = arith.constant 19 : index
    %c0_137 = arith.constant 0 : index
    %183 = vector.load %arg6[%c0_135, %c19_136, %c0_137] : memref<4x20x20xf32, #tpu.memory_space<vmem>>, vector<4x1x20xf32>
    tpu.vector_store %arg6[%c0_135, %c19_136, %c0_137], %182 {strides = array<i32>} : memref<4x20x20xf32, #tpu.memory_space<vmem>>, vector<4x1x20xf32>,
    %c0_138 = arith.constant 0 : index
    %c0_139 = arith.constant 0 : index
    %c3_140 = arith.constant 3 : index
    %184 = vector.load %arg6[%c0_138, %c0_139, %c3_140] : memref<4x20x20xf32, #tpu.memory_space<vmem>>, vector<4x20x1xf32>
    %c0_141 = arith.constant 0 : index
    %c0_142 = arith.constant 0 : index
    %c1_143 = arith.constant 1 : index
    %185 = vector.load %arg6[%c0_141, %c0_142, %c1_143] : memref<4x20x20xf32, #tpu.memory_space<vmem>>, vector<4x20x1xf32>
    tpu.vector_store %arg6[%c0_141, %c0_142, %c1_143], %184 {strides = array<i32>} : memref<4x20x20xf32, #tpu.memory_space<vmem>>, vector<4x20x1xf32>,
    %c0_144 = arith.constant 0 : index
    %c0_145 = arith.constant 0 : index
    %c16_146 = arith.constant 16 : index
    %186 = vector.load %arg6[%c0_144, %c0_145, %c16_146] : memref<4x20x20xf32, #tpu.memory_space<vmem>>, vector<4x20x1xf32>
    %c0_147 = arith.constant 0 : index
    %c0_148 = arith.constant 0 : index
    %c18_149 = arith.constant 18 : index
    %187 = vector.load %arg6[%c0_147, %c0_148, %c18_149] : memref<4x20x20xf32, #tpu.memory_space<vmem>>, vector<4x20x1xf32>
    tpu.vector_store %arg6[%c0_147, %c0_148, %c18_149], %186 {strides = array<i32>} : memref<4x20x20xf32, #tpu.memory_space<vmem>>, vector<4x20x1xf32>,
    %c0_150 = arith.constant 0 : index
    %c0_151 = arith.constant 0 : index
    %c4_152 = arith.constant 4 : index
    %188 = vector.load %arg6[%c0_150, %c0_151, %c4_152] : memref<4x20x20xf32, #tpu.memory_space<vmem>>, vector<4x20x1xf32>
    %c0_153 = arith.constant 0 : index
    %c0_154 = arith.constant 0 : index
    %c0_155 = arith.constant 0 : index
    %189 = vector.load %arg6[%c0_153, %c0_154, %c0_155] : memref<4x20x20xf32, #tpu.memory_space<vmem>>, vector<4x20x1xf32>
    tpu.vector_store %arg6[%c0_153, %c0_154, %c0_155], %188 {strides = array<i32>} : memref<4x20x20xf32, #tpu.memory_space<vmem>>, vector<4x20x1xf32>,
    %c0_156 = arith.constant 0 : index
    %c0_157 = arith.constant 0 : index
    %c15_158 = arith.constant 15 : index
    %190 = vector.load %arg6[%c0_156, %c0_157, %c15_158] : memref<4x20x20xf32, #tpu.memory_space<vmem>>, vector<4x20x1xf32>
    %c0_159 = arith.constant 0 : index
    %c0_160 = arith.constant 0 : index
    %c19_161 = arith.constant 19 : index
    %191 = vector.load %arg6[%c0_159, %c0_160, %c19_161] : memref<4x20x20xf32, #tpu.memory_space<vmem>>, vector<4x20x1xf32>
    tpu.vector_store %arg6[%c0_159, %c0_160, %c19_161], %190 {strides = array<i32>} : memref<4x20x20xf32, #tpu.memory_space<vmem>>, vector<4x20x1xf32>,
    %cst_162 = arith.constant 0.000000e+00 : f32
    %192 = vector.broadcast %cst_162 : f32 to vector<4x16x16xf32>
    %c0_163 = arith.constant 0 : index
    %c0_164 = arith.constant 0 : index
    %c0_165 = arith.constant 0 : index
    %193 = vector.load %arg6[%c0_163, %c0_164, %c0_165] : memref<4x20x20xf32, #tpu.memory_space<vmem>>, vector<4x16x20xf32>
    %194 = vector.extract_strided_slice %193 {offsets = [0, 0, 0], sizes = [4, 16, 16], strides = [1, 1, 1]} : vector<4x16x20xf32> to vector<4x16x16xf32>
    %c0_166 = arith.constant 0 : index
    %c0_167 = arith.constant 0 : index
    %195 = memref.load %arg2[%c0_166, %c0_167] : memref<5x5xf32, #tpu.memory_space<smem>>
    %196 = vector.broadcast %195 : f32 to vector<4x16x16xf32>
    %197 = arith.mulf %194, %196 : vector<4x16x16xf32>
    %198 = arith.addf %192, %197 : vector<4x16x16xf32>
    %199 = vector.extract_strided_slice %193 {offsets = [0, 0, 1], sizes = [4, 16, 16], strides = [1, 1, 1]} : vector<4x16x20xf32> to vector<4x16x16xf32>
    %c0_168 = arith.constant 0 : index
    %c1_169 = arith.constant 1 : index
    %200 = memref.load %arg2[%c0_168, %c1_169] : memref<5x5xf32, #tpu.memory_space<smem>>
    %201 = vector.broadcast %200 : f32 to vector<4x16x16xf32>
    %202 = arith.mulf %199, %201 : vector<4x16x16xf32>
    %203 = arith.addf %198, %202 : vector<4x16x16xf32>
    %204 = vector.extract_strided_slice %193 {offsets = [0, 0, 2], sizes = [4, 16, 16], strides = [1, 1, 1]} : vector<4x16x20xf32> to vector<4x16x16xf32>
    %c0_170 = arith.constant 0 : index
    %c2_171 = arith.constant 2 : index
    %205 = memref.load %arg2[%c0_170, %c2_171] : memref<5x5xf32, #tpu.memory_space<smem>>
    %206 = vector.broadcast %205 : f32 to vector<4x16x16xf32>
    %207 = arith.mulf %204, %206 : vector<4x16x16xf32>
    %208 = arith.addf %203, %207 : vector<4x16x16xf32>
    %209 = vector.extract_strided_slice %193 {offsets = [0, 0, 3], sizes = [4, 16, 16], strides = [1, 1, 1]} : vector<4x16x20xf32> to vector<4x16x16xf32>
    %c0_172 = arith.constant 0 : index
    %c3_173 = arith.constant 3 : index
    %210 = memref.load %arg2[%c0_172, %c3_173] : memref<5x5xf32, #tpu.memory_space<smem>>
    %211 = vector.broadcast %210 : f32 to vector<4x16x16xf32>
    %212 = arith.mulf %209, %211 : vector<4x16x16xf32>
    %213 = arith.addf %208, %212 : vector<4x16x16xf32>
    %214 = vector.extract_strided_slice %193 {offsets = [0, 0, 4], sizes = [4, 16, 16], strides = [1, 1, 1]} : vector<4x16x20xf32> to vector<4x16x16xf32>
    %c0_174 = arith.constant 0 : index
    %c4_175 = arith.constant 4 : index
    %215 = memref.load %arg2[%c0_174, %c4_175] : memref<5x5xf32, #tpu.memory_space<smem>>
    %216 = vector.broadcast %215 : f32 to vector<4x16x16xf32>
    %217 = arith.mulf %214, %216 : vector<4x16x16xf32>
    %218 = arith.addf %213, %217 : vector<4x16x16xf32>
    %c0_176 = arith.constant 0 : index
    %c1_177 = arith.constant 1 : index
    %c0_178 = arith.constant 0 : index
    %219 = vector.load %arg6[%c0_176, %c1_177, %c0_178] : memref<4x20x20xf32, #tpu.memory_space<vmem>>, vector<4x16x20xf32>
    %220 = vector.extract_strided_slice %219 {offsets = [0, 0, 0], sizes = [4, 16, 16], strides = [1, 1, 1]} : vector<4x16x20xf32> to vector<4x16x16xf32>
    %c1_179 = arith.constant 1 : index
    %c0_180 = arith.constant 0 : index
    %221 = memref.load %arg2[%c1_179, %c0_180] : memref<5x5xf32, #tpu.memory_space<smem>>
    %222 = vector.broadcast %221 : f32 to vector<4x16x16xf32>
    %223 = arith.mulf %220, %222 : vector<4x16x16xf32>
    %224 = arith.addf %218, %223 : vector<4x16x16xf32>
    %225 = vector.extract_strided_slice %219 {offsets = [0, 0, 1], sizes = [4, 16, 16], strides = [1, 1, 1]} : vector<4x16x20xf32> to vector<4x16x16xf32>
    %c1_181 = arith.constant 1 : index
    %c1_182 = arith.constant 1 : index
    %226 = memref.load %arg2[%c1_181, %c1_182] : memref<5x5xf32, #tpu.memory_space<smem>>
    %227 = vector.broadcast %226 : f32 to vector<4x16x16xf32>
    %228 = arith.mulf %225, %227 : vector<4x16x16xf32>
    %229 = arith.addf %224, %228 : vector<4x16x16xf32>
    %230 = vector.extract_strided_slice %219 {offsets = [0, 0, 2], sizes = [4, 16, 16], strides = [1, 1, 1]} : vector<4x16x20xf32> to vector<4x16x16xf32>
    %c1_183 = arith.constant 1 : index
    %c2_184 = arith.constant 2 : index
    %231 = memref.load %arg2[%c1_183, %c2_184] : memref<5x5xf32, #tpu.memory_space<smem>>
    %232 = vector.broadcast %231 : f32 to vector<4x16x16xf32>
    %233 = arith.mulf %230, %232 : vector<4x16x16xf32>
    %234 = arith.addf %229, %233 : vector<4x16x16xf32>
    %235 = vector.extract_strided_slice %219 {offsets = [0, 0, 3], sizes = [4, 16, 16], strides = [1, 1, 1]} : vector<4x16x20xf32> to vector<4x16x16xf32>
    %c1_185 = arith.constant 1 : index
    %c3_186 = arith.constant 3 : index
    %236 = memref.load %arg2[%c1_185, %c3_186] : memref<5x5xf32, #tpu.memory_space<smem>>
    %237 = vector.broadcast %236 : f32 to vector<4x16x16xf32>
    %238 = arith.mulf %235, %237 : vector<4x16x16xf32>
    %239 = arith.addf %234, %238 : vector<4x16x16xf32>
    %240 = vector.extract_strided_slice %219 {offsets = [0, 0, 4], sizes = [4, 16, 16], strides = [1, 1, 1]} : vector<4x16x20xf32> to vector<4x16x16xf32>
    %c1_187 = arith.constant 1 : index
    %c4_188 = arith.constant 4 : index
    %241 = memref.load %arg2[%c1_187, %c4_188] : memref<5x5xf32, #tpu.memory_space<smem>>
    %242 = vector.broadcast %241 : f32 to vector<4x16x16xf32>
    %243 = arith.mulf %240, %242 : vector<4x16x16xf32>
    %244 = arith.addf %239, %243 : vector<4x16x16xf32>
    %c0_189 = arith.constant 0 : index
    %c2_190 = arith.constant 2 : index
    %c0_191 = arith.constant 0 : index
    %245 = vector.load %arg6[%c0_189, %c2_190, %c0_191] : memref<4x20x20xf32, #tpu.memory_space<vmem>>, vector<4x16x20xf32>
    %246 = vector.extract_strided_slice %245 {offsets = [0, 0, 0], sizes = [4, 16, 16], strides = [1, 1, 1]} : vector<4x16x20xf32> to vector<4x16x16xf32>
    %c2_192 = arith.constant 2 : index
    %c0_193 = arith.constant 0 : index
    %247 = memref.load %arg2[%c2_192, %c0_193] : memref<5x5xf32, #tpu.memory_space<smem>>
    %248 = vector.broadcast %247 : f32 to vector<4x16x16xf32>
    %249 = arith.mulf %246, %248 : vector<4x16x16xf32>
    %250 = arith.addf %244, %249 : vector<4x16x16xf32>
    %251 = vector.extract_strided_slice %245 {offsets = [0, 0, 1], sizes = [4, 16, 16], strides = [1, 1, 1]} : vector<4x16x20xf32> to vector<4x16x16xf32>
    %c2_194 = arith.constant 2 : index
    %c1_195 = arith.constant 1 : index
    %252 = memref.load %arg2[%c2_194, %c1_195] : memref<5x5xf32, #tpu.memory_space<smem>>
    %253 = vector.broadcast %252 : f32 to vector<4x16x16xf32>
    %254 = arith.mulf %251, %253 : vector<4x16x16xf32>
    %255 = arith.addf %250, %254 : vector<4x16x16xf32>
    %256 = vector.extract_strided_slice %245 {offsets = [0, 0, 2], sizes = [4, 16, 16], strides = [1, 1, 1]} : vector<4x16x20xf32> to vector<4x16x16xf32>
    %c2_196 = arith.constant 2 : index
    %c2_197 = arith.constant 2 : index
    %257 = memref.load %arg2[%c2_196, %c2_197] : memref<5x5xf32, #tpu.memory_space<smem>>
    %258 = vector.broadcast %257 : f32 to vector<4x16x16xf32>
    %259 = arith.mulf %256, %258 : vector<4x16x16xf32>
    %260 = arith.addf %255, %259 : vector<4x16x16xf32>
    %261 = vector.extract_strided_slice %245 {offsets = [0, 0, 3], sizes = [4, 16, 16], strides = [1, 1, 1]} : vector<4x16x20xf32> to vector<4x16x16xf32>
    %c2_198 = arith.constant 2 : index
    %c3_199 = arith.constant 3 : index
    %262 = memref.load %arg2[%c2_198, %c3_199] : memref<5x5xf32, #tpu.memory_space<smem>>
    %263 = vector.broadcast %262 : f32 to vector<4x16x16xf32>
    %264 = arith.mulf %261, %263 : vector<4x16x16xf32>
    %265 = arith.addf %260, %264 : vector<4x16x16xf32>
    %266 = vector.extract_strided_slice %245 {offsets = [0, 0, 4], sizes = [4, 16, 16], strides = [1, 1, 1]} : vector<4x16x20xf32> to vector<4x16x16xf32>
    %c2_200 = arith.constant 2 : index
    %c4_201 = arith.constant 4 : index
    %267 = memref.load %arg2[%c2_200, %c4_201] : memref<5x5xf32, #tpu.memory_space<smem>>
    %268 = vector.broadcast %267 : f32 to vector<4x16x16xf32>
    %269 = arith.mulf %266, %268 : vector<4x16x16xf32>
    %270 = arith.addf %265, %269 : vector<4x16x16xf32>
    %c0_202 = arith.constant 0 : index
    %c3_203 = arith.constant 3 : index
    %c0_204 = arith.constant 0 : index
    %271 = vector.load %arg6[%c0_202, %c3_203, %c0_204] : memref<4x20x20xf32, #tpu.memory_space<vmem>>, vector<4x16x20xf32>
    %272 = vector.extract_strided_slice %271 {offsets = [0, 0, 0], sizes = [4, 16, 16], strides = [1, 1, 1]} : vector<4x16x20xf32> to vector<4x16x16xf32>
    %c3_205 = arith.constant 3 : index
    %c0_206 = arith.constant 0 : index
    %273 = memref.load %arg2[%c3_205, %c0_206] : memref<5x5xf32, #tpu.memory_space<smem>>
    %274 = vector.broadcast %273 : f32 to vector<4x16x16xf32>
    %275 = arith.mulf %272, %274 : vector<4x16x16xf32>
    %276 = arith.addf %270, %275 : vector<4x16x16xf32>
    %277 = vector.extract_strided_slice %271 {offsets = [0, 0, 1], sizes = [4, 16, 16], strides = [1, 1, 1]} : vector<4x16x20xf32> to vector<4x16x16xf32>
    %c3_207 = arith.constant 3 : index
    %c1_208 = arith.constant 1 : index
    %278 = memref.load %arg2[%c3_207, %c1_208] : memref<5x5xf32, #tpu.memory_space<smem>>
    %279 = vector.broadcast %278 : f32 to vector<4x16x16xf32>
    %280 = arith.mulf %277, %279 : vector<4x16x16xf32>
    %281 = arith.addf %276, %280 : vector<4x16x16xf32>
    %282 = vector.extract_strided_slice %271 {offsets = [0, 0, 2], sizes = [4, 16, 16], strides = [1, 1, 1]} : vector<4x16x20xf32> to vector<4x16x16xf32>
    %c3_209 = arith.constant 3 : index
    %c2_210 = arith.constant 2 : index
    %283 = memref.load %arg2[%c3_209, %c2_210] : memref<5x5xf32, #tpu.memory_space<smem>>
    %284 = vector.broadcast %283 : f32 to vector<4x16x16xf32>
    %285 = arith.mulf %282, %284 : vector<4x16x16xf32>
    %286 = arith.addf %281, %285 : vector<4x16x16xf32>
    %287 = vector.extract_strided_slice %271 {offsets = [0, 0, 3], sizes = [4, 16, 16], strides = [1, 1, 1]} : vector<4x16x20xf32> to vector<4x16x16xf32>
    %c3_211 = arith.constant 3 : index
    %c3_212 = arith.constant 3 : index
    %288 = memref.load %arg2[%c3_211, %c3_212] : memref<5x5xf32, #tpu.memory_space<smem>>
    %289 = vector.broadcast %288 : f32 to vector<4x16x16xf32>
    %290 = arith.mulf %287, %289 : vector<4x16x16xf32>
    %291 = arith.addf %286, %290 : vector<4x16x16xf32>
    %292 = vector.extract_strided_slice %271 {offsets = [0, 0, 4], sizes = [4, 16, 16], strides = [1, 1, 1]} : vector<4x16x20xf32> to vector<4x16x16xf32>
    %c3_213 = arith.constant 3 : index
    %c4_214 = arith.constant 4 : index
    %293 = memref.load %arg2[%c3_213, %c4_214] : memref<5x5xf32, #tpu.memory_space<smem>>
    %294 = vector.broadcast %293 : f32 to vector<4x16x16xf32>
    %295 = arith.mulf %292, %294 : vector<4x16x16xf32>
    %296 = arith.addf %291, %295 : vector<4x16x16xf32>
    %c0_215 = arith.constant 0 : index
    %c4_216 = arith.constant 4 : index
    %c0_217 = arith.constant 0 : index
    %297 = vector.load %arg6[%c0_215, %c4_216, %c0_217] : memref<4x20x20xf32, #tpu.memory_space<vmem>>, vector<4x16x20xf32>
    %298 = vector.extract_strided_slice %297 {offsets = [0, 0, 0], sizes = [4, 16, 16], strides = [1, 1, 1]} : vector<4x16x20xf32> to vector<4x16x16xf32>
    %c4_218 = arith.constant 4 : index
    %c0_219 = arith.constant 0 : index
    %299 = memref.load %arg2[%c4_218, %c0_219] : memref<5x5xf32, #tpu.memory_space<smem>>
    %300 = vector.broadcast %299 : f32 to vector<4x16x16xf32>
    %301 = arith.mulf %298, %300 : vector<4x16x16xf32>
    %302 = arith.addf %296, %301 : vector<4x16x16xf32>
    %303 = vector.extract_strided_slice %297 {offsets = [0, 0, 1], sizes = [4, 16, 16], strides = [1, 1, 1]} : vector<4x16x20xf32> to vector<4x16x16xf32>
    %c4_220 = arith.constant 4 : index
    %c1_221 = arith.constant 1 : index
    %304 = memref.load %arg2[%c4_220, %c1_221] : memref<5x5xf32, #tpu.memory_space<smem>>
    %305 = vector.broadcast %304 : f32 to vector<4x16x16xf32>
    %306 = arith.mulf %303, %305 : vector<4x16x16xf32>
    %307 = arith.addf %302, %306 : vector<4x16x16xf32>
    %308 = vector.extract_strided_slice %297 {offsets = [0, 0, 2], sizes = [4, 16, 16], strides = [1, 1, 1]} : vector<4x16x20xf32> to vector<4x16x16xf32>
    %c4_222 = arith.constant 4 : index
    %c2_223 = arith.constant 2 : index
    %309 = memref.load %arg2[%c4_222, %c2_223] : memref<5x5xf32, #tpu.memory_space<smem>>
    %310 = vector.broadcast %309 : f32 to vector<4x16x16xf32>
    %311 = arith.mulf %308, %310 : vector<4x16x16xf32>
    %312 = arith.addf %307, %311 : vector<4x16x16xf32>
    %313 = vector.extract_strided_slice %297 {offsets = [0, 0, 3], sizes = [4, 16, 16], strides = [1, 1, 1]} : vector<4x16x20xf32> to vector<4x16x16xf32>
    %c4_224 = arith.constant 4 : index
    %c3_225 = arith.constant 3 : index
    %314 = memref.load %arg2[%c4_224, %c3_225] : memref<5x5xf32, #tpu.memory_space<smem>>
    %315 = vector.broadcast %314 : f32 to vector<4x16x16xf32>
    %316 = arith.mulf %313, %315 : vector<4x16x16xf32>
    %317 = arith.addf %312, %316 : vector<4x16x16xf32>
    %318 = vector.extract_strided_slice %297 {offsets = [0, 0, 4], sizes = [4, 16, 16], strides = [1, 1, 1]} : vector<4x16x20xf32> to vector<4x16x16xf32>
    %c4_226 = arith.constant 4 : index
    %c4_227 = arith.constant 4 : index
    %319 = memref.load %arg2[%c4_226, %c4_227] : memref<5x5xf32, #tpu.memory_space<smem>>
    %320 = vector.broadcast %319 : f32 to vector<4x16x16xf32>
    %321 = arith.mulf %318, %320 : vector<4x16x16xf32>
    %322 = arith.addf %317, %321 : vector<4x16x16xf32>
    %323 = tpu.iota {dimensions = array<i32: 1>} : vector<4x16xi32>
    %324 = tpu.iota {dimensions = array<i32: 0>} : vector<4x16xi32>
    %c4_i32 = arith.constant 4 : i32
    %325 = vector.broadcast %c4_i32 : i32 to vector<4x16xi32>
    %326 = arith.muli %325, %324 : vector<4x16xi32>
    %327 = arith.cmpi eq, %323, %326 : vector<4x16xi32>
    %328 = arith.extui %327 : vector<4x16xi1> to vector<4x16xi32>
    %329 = arith.sitofp %328 : vector<4x16xi32> to vector<4x16xf32>
    %330 = tpu.iota {dimensions = array<i32: 0>} : vector<16x4xi32>
    %331 = tpu.iota {dimensions = array<i32: 1>} : vector<16x4xi32>
    %c4_i32_228 = arith.constant 4 : i32
    %332 = vector.broadcast %c4_i32_228 : i32 to vector<16x4xi32>
    %333 = arith.muli %332, %331 : vector<16x4xi32>
    %334 = arith.cmpi eq, %330, %333 : vector<16x4xi32>
    %335 = arith.extui %334 : vector<16x4xi1> to vector<16x4xi32>
    %336 = arith.sitofp %335 : vector<16x4xi32> to vector<16x4xf32>
    %337 = vector.extract_strided_slice %322 {offsets = [0, 0, 0], sizes = [1, 16, 16], strides = [1, 1, 1]} : vector<4x16x16xf32> to vector<1x16x16xf32>
    %338 = vector.shape_cast %337 : vector<1x16x16xf32> to vector<16x16xf32>
    %cst_229 = arith.constant dense<0.000000e+00> : vector<16x4xf32>
    %339 = tpu.matmul %338, %336, %cst_229 {dimension_numbers = #tpu.dot_dimension_numbers<[1], [0], [0], [1], [0, 0, 1, 1], [], []>} : vector<16x16xf32>, vector<16x4xf32>, vector<16x4xf32> -> vector<16x4xf32>
    %cst_230 = arith.constant dense<0.000000e+00> : vector<4x4xf32>
    %340 = tpu.matmul %329, %339, %cst_230 {dimension_numbers = #tpu.dot_dimension_numbers<[1], [0], [0], [1], [0, 0, 1, 1], [], []>} : vector<4x16xf32>, vector<16x4xf32>, vector<4x4xf32> -> vector<4x4xf32>
    %c0_231 = arith.constant 0 : index
    %c0_232 = arith.constant 0 : index
    %c0_233 = arith.constant 0 : index
    %c0_234 = arith.constant 0 : index
    %341 = vector.load %arg4[%c0_231, %c0_232, %c0_233, %c0_234] : memref<1x4x4x4xf32, #tpu.memory_space<vmem>>, vector<1x1x4x4xf32>
    %342 = vector.shape_cast %341 : vector<1x1x4x4xf32> to vector<4x4xf32>
    %343 = vector.shape_cast %340 : vector<4x4xf32> to vector<1x1x4x4xf32>
    tpu.vector_store %arg4[%c0_231, %c0_232, %c0_233, %c0_234], %343 {strides = array<i32>} : memref<1x4x4x4xf32, #tpu.memory_space<vmem>>, vector<1x1x4x4xf32>,
    %344 = vector.extract_strided_slice %322 {offsets = [1, 0, 0], sizes = [1, 16, 16], strides = [1, 1, 1]} : vector<4x16x16xf32> to vector<1x16x16xf32>
    %345 = vector.shape_cast %344 : vector<1x16x16xf32> to vector<16x16xf32>
    %cst_235 = arith.constant dense<0.000000e+00> : vector<16x4xf32>
    %346 = tpu.matmul %345, %336, %cst_235 {dimension_numbers = #tpu.dot_dimension_numbers<[1], [0], [0], [1], [0, 0, 1, 1], [], []>} : vector<16x16xf32>, vector<16x4xf32>, vector<16x4xf32> -> vector<16x4xf32>
    %cst_236 = arith.constant dense<0.000000e+00> : vector<4x4xf32>
    %347 = tpu.matmul %329, %346, %cst_236 {dimension_numbers = #tpu.dot_dimension_numbers<[1], [0], [0], [1], [0, 0, 1, 1], [], []>} : vector<4x16xf32>, vector<16x4xf32>, vector<4x4xf32> -> vector<4x4xf32>
    %c0_237 = arith.constant 0 : index
    %c1_238 = arith.constant 1 : index
    %c0_239 = arith.constant 0 : index
    %c0_240 = arith.constant 0 : index
    %348 = vector.load %arg4[%c0_237, %c1_238, %c0_239, %c0_240] : memref<1x4x4x4xf32, #tpu.memory_space<vmem>>, vector<1x1x4x4xf32>
    %349 = vector.shape_cast %348 : vector<1x1x4x4xf32> to vector<4x4xf32>
    %350 = vector.shape_cast %347 : vector<4x4xf32> to vector<1x1x4x4xf32>
    tpu.vector_store %arg4[%c0_237, %c1_238, %c0_239, %c0_240], %350 {strides = array<i32>} : memref<1x4x4x4xf32, #tpu.memory_space<vmem>>, vector<1x1x4x4xf32>,
    %351 = vector.extract_strided_slice %322 {offsets = [2, 0, 0], sizes = [1, 16, 16], strides = [1, 1, 1]} : vector<4x16x16xf32> to vector<1x16x16xf32>
    %352 = vector.shape_cast %351 : vector<1x16x16xf32> to vector<16x16xf32>
    %cst_241 = arith.constant dense<0.000000e+00> : vector<16x4xf32>
    %353 = tpu.matmul %352, %336, %cst_241 {dimension_numbers = #tpu.dot_dimension_numbers<[1], [0], [0], [1], [0, 0, 1, 1], [], []>} : vector<16x16xf32>, vector<16x4xf32>, vector<16x4xf32> -> vector<16x4xf32>
    %cst_242 = arith.constant dense<0.000000e+00> : vector<4x4xf32>
    %354 = tpu.matmul %329, %353, %cst_242 {dimension_numbers = #tpu.dot_dimension_numbers<[1], [0], [0], [1], [0, 0, 1, 1], [], []>} : vector<4x16xf32>, vector<16x4xf32>, vector<4x4xf32> -> vector<4x4xf32>
    %c0_243 = arith.constant 0 : index
    %c2_244 = arith.constant 2 : index
    %c0_245 = arith.constant 0 : index
    %c0_246 = arith.constant 0 : index
    %355 = vector.load %arg4[%c0_243, %c2_244, %c0_245, %c0_246] : memref<1x4x4x4xf32, #tpu.memory_space<vmem>>, vector<1x1x4x4xf32>
    %356 = vector.shape_cast %355 : vector<1x1x4x4xf32> to vector<4x4xf32>
    %357 = vector.shape_cast %354 : vector<4x4xf32> to vector<1x1x4x4xf32>
    tpu.vector_store %arg4[%c0_243, %c2_244, %c0_245, %c0_246], %357 {strides = array<i32>} : memref<1x4x4x4xf32, #tpu.memory_space<vmem>>, vector<1x1x4x4xf32>,
    %358 = vector.extract_strided_slice %322 {offsets = [3, 0, 0], sizes = [1, 16, 16], strides = [1, 1, 1]} : vector<4x16x16xf32> to vector<1x16x16xf32>
    %359 = vector.shape_cast %358 : vector<1x16x16xf32> to vector<16x16xf32>
    %cst_247 = arith.constant dense<0.000000e+00> : vector<16x4xf32>
    %360 = tpu.matmul %359, %336, %cst_247 {dimension_numbers = #tpu.dot_dimension_numbers<[1], [0], [0], [1], [0, 0, 1, 1], [], []>} : vector<16x16xf32>, vector<16x4xf32>, vector<16x4xf32> -> vector<16x4xf32>
    %cst_248 = arith.constant dense<0.000000e+00> : vector<4x4xf32>
    %361 = tpu.matmul %329, %360, %cst_248 {dimension_numbers = #tpu.dot_dimension_numbers<[1], [0], [0], [1], [0, 0, 1, 1], [], []>} : vector<4x16xf32>, vector<16x4xf32>, vector<4x4xf32> -> vector<4x4xf32>
    %c0_249 = arith.constant 0 : index
    %c3_250 = arith.constant 3 : index
    %c0_251 = arith.constant 0 : index
    %c0_252 = arith.constant 0 : index
    %362 = vector.load %arg4[%c0_249, %c3_250, %c0_251, %c0_252] : memref<1x4x4x4xf32, #tpu.memory_space<vmem>>, vector<1x1x4x4xf32>
    %363 = vector.shape_cast %362 : vector<1x1x4x4xf32> to vector<4x4xf32>
    %364 = vector.shape_cast %361 : vector<4x4xf32> to vector<1x1x4x4xf32>
    tpu.vector_store %arg4[%c0_249, %c3_250, %c0_251, %c0_252], %364 {strides = array<i32>} : memref<1x4x4x4xf32, #tpu.memory_space<vmem>>, vector<1x1x4x4xf32>,
    return
  }
  func.func @transform_0(%arg0: i32, %arg1: memref<2x5x5xf32, #tpu.memory_space<smem>>, %arg2: memref<5x5xf32, #tpu.memory_space<smem>>) -> (i32, i32, i32, i32) {
    %c0_i32 = arith.constant 0 : i32
    %c0_i32_0 = arith.constant 0 : i32
    %c0_i32_1 = arith.constant 0 : i32
    %c0_i32_2 = arith.constant 0 : i32
    return %arg0, %c0_i32, %c0_i32_0, %c0_i32_1 : i32, i32, i32, i32
  }
  func.func @transform_1(%arg0: i32, %arg1: memref<2x5x5xf32, #tpu.memory_space<smem>>, %arg2: memref<5x5xf32, #tpu.memory_space<smem>>) -> (i32, i32, i32, i32) {
    %c0_i32 = arith.constant 0 : i32
    %c0_i32_0 = arith.constant 0 : i32
    %c0_i32_1 = arith.constant 0 : i32
    %c0_i32_2 = arith.constant 0 : i32
    return %arg0, %c0_i32, %c0_i32_0, %c0_i32_1 : i32, i32, i32, i32
  }
}

</mosaic_0001>

<bundles_post_ra>
// kernel: tpu_custom_call.1
= control target key start
LH: loop header
LB: loop body
LE: loop exit
PB: predicated region body
PF: predicated region fallthrough
CT: control target
= control target key end

     0   :  { %s6540_s0 = inlined_call_operand.vmem [shape: f32[2,5,5], index: 0, kind: input, shape index: {}]   ;;  %s6541_s2 = inlined_call_operand.hbm [shape: f32[2,4,16,16], index: 2, kind: input, shape index: {}]   ;;  %s6542_s3 = inlined_call_operand.hbm [shape: f32[2,4,4,4], index: 3, kind: output, shape index: {}]   ;;  %s6543_s1 = inlined_call_operand.vmem [shape: f32[5,5], index: 1, kind: input, shape index: {}]  }
   0x1   :  { %s8_s14 = sshll.u32 %s6540_s0, 4  ;;  %s12_s17 = sshll.u32 %s6543_s1, 4  ;;  %s9_s14 = int_to_ptr.vmem [resolvable:$true] %s8_s14  ;;  %s13_s17 = int_to_ptr.vmem [resolvable:$true] %s12_s17 }
   0x2   :  { %s4156_s18 = scalar_lea.vmem %s9_s14, 256  ;;  %p4161_p1 = scmp.lt.s32.totalorder %s9_s14, %s9_s14 }
   0x3   :  { %p4157_p0 = scmp.ne.s32.totalorder %s9_s14, %s4156_s18  ;;  %p4162_p2 = scmp.lt.s32.totalorder %s4156_s18, %s4156_s18 }
   0x5   :  { %p4163_p3 = por %p4162_p2, %p4161_p1 }
   0x7   :  { %p4164_p4 = pnand %p4163_p3, %p4157_p0 }
   0x9   :  { %4167 = shalt.err (!%p4164_p4)  }
   0xa   :  { %s4280_s19 = smov [#allocation5]   ;;  %s4168_s20 = scalar_lea.vmem %s13_s17, 128 }
   0xb   :  { %11 = dma.vmem_to_smem %s9_s14, 256, %s4280_s19, [#allocation4] }
   0xc   :  { %p4169_p5 = scmp.ne.s32.totalorder %s13_s17, %s4168_s20  ;;  %p4173_p6 = scmp.lt.s32.totalorder %s13_s17, %s13_s17 }
   0xd   :  { %p4174_p7 = scmp.lt.s32.totalorder %s4168_s20, %s4168_s20 }
   0xf   :  { %p4175_p8 = por %p4174_p7, %p4173_p6 }
  0x11   :  { %p4176_p9 = pnand %p4175_p8, %p4169_p5 }
  0x13   :  { %4179 = shalt.err (!%p4176_p9)  }
  0x14   :  { %s4281_s0 = smov [#allocation6]  }
  0x15   :  { %15 = dma.vmem_to_smem %s13_s17, 128, %s4281_s0, [#allocation4] }
  0x16   :  { %4254 = dma.done.wait [#allocation4], 384 }
  0x17   :  { %4255 = vsyncadd [#allocation4], 4294966912 }
  0x18   :  { %17 = sfence }
  0x19   :  { %18 = vsyncpa [#allocation8], 0 }
  0x1a   :  { %20 = vsyncpa [#allocation8 + $0x1], 0 }
  0x1b   :  { %21 = vsyncpa [#allocation9], 0 }
  0x1c   :  { %23 = vsyncpa [#allocation9 + $0x1], 0  ;;  %s4323_s1 = smov 0   ;;  %s4325_s21 = smov 0  }
  0x1d   :  { %s4327_s22 = smov 0   ;;  %s4329_s23 = smov 0  }
  0x1e LB: > { %s4344_s24 = sadd.s32 4294967295, %s4278_s23   ;;  %s3894_s25 = sadd.s32 4294967294, %s4278_s23   ;;  %s4278_s23 = sphi %s4329_s23, %s6635_s23   ;;  %s4274_s22 = sphi %s4327_s22, %s6634_s22   ;;  %s4270_s21 = sphi %s4325_s21, %s6633_s21   ;;  %s4266_s1 = sphi %s4323_s1, %s6632_s1  }
  0x1f   : > { %s4348_s26 = sadd.s32 1, %s4278_s23   ;;  %s36_s27 = sadd.s32 1, %s4274_s22 }
  0x20   : > { %s33_s28 = ssub.s32 %s4278_s23, %s4348_s26  ;;  %p43_p10 = scmp.ne.s32.totalorder %s4274_s22, %s4270_s21 }
  0x21   : > { %p34_p11 = scmp.eq.s32.totalorder %s33_s28, 0  ;;  %p44_p12 = scmp.eq.s32.totalorder %s4278_s23, 0 }
  0x22   : > { %p49_p13 = scmp.ne.s32.totalorder %s4270_s21, %s4266_s1  ;;  %p50_p0 = scmp.eq.s32.totalorder %s4344_s24, 0 }
  0x23   : > { %s4360_s29 = scalar_select %p34_p11, %s4274_s22, %s36_s27  }
  0x24   : > { %p4362_p1 = por %p44_p12, %p43_p10  ;;  %p4366_p2 = por %p50_p0, %p49_p13 }
  0x25   : > { %p73_p3 = scmp.eq.s32.totalorder %s4344_s24, 1  ;;  %p79_p4 = scmp.eq.s32.totalorder %s3894_s25, 1 }
  0x26   : > { %p4103_p6 = scmp.lt.s32.totalorder %s4278_s23, 2  ;;  %s99_s7 = sand.u32 1, %s4274_s22  }
  0x27   : > { %p4373_p7 = por %p73_p3, %p43_p10  ;;  %p4377_p8 = por %p79_p4, %p49_p13 }
  0x28   : > { %s3964_s8 = sshll.u32 %s4278_s23, 10  ;;  %s3897_s9 = sshll.u32 %s99_s7, 6 }
  0x29   : > { %s6560_s5 = scalar_select %p4373_p7, 1, 0 }
  0x2a   : > { %s6561_s6 = scalar_select %p4377_p8, 1, 0 }
  0x2b   : > { %s4386_s12 = scalar_lea.hbm %s6541_s2, %s3964_s8  ;;  %s103_s13 = scalar_lea.vmem [#allocation7], %s3897_s9 }
  0x2c   : > { %s110_s14 = sshll.u32 %s103_s13, 4  ;;  %p4390_p9 = pnand %p4103_p6, %p4362_p1  ;;  %s4394_s14 = int_to_ptr.vmem [resolvable:$true] %s110_s14 }
  0x2d   : > { %s4396_s16 = scalar_lea.sflag [#allocation8], %s99_s7  ;;  %s4180_s17 = scalar_lea.hbm %s4386_s12, 1024 }
  0x2e   : > { %p4181_p10 = scmp.ne.s32.totalorder %s4386_s12, %s4180_s17  ;;  %p4182_p11 = pneg %p4390_p9 }
  0x2f   : > { %s4185_s20 = scalar_lea.hbm %s6541_s2, 2048  ;;  %p4186_p0 = scmp.lt.u32.totalorder %s4386_s12, %s6541_s2 }
  0x30   : > { %p4183_p12 = pnand %p4182_p11, %p4181_p10  ;;  %p4187_p1 = scmp.lt.u32.totalorder %s4185_s20, %s4180_s17 }
  0x31   : > { %p4189_p4 = scmp.lt.u32.totalorder %s4180_s17, %s4386_s12 }
  0x32   : > { %p4184_p13 = pneg %p4183_p12  ;;  %p4188_p3 = por %p4187_p1, %p4186_p0 }
  0x34   : > { %p4190_p6 = por %p4189_p4, %p4188_p3 }
  0x36   : > { %p4191_p5 = pnand %p4190_p6, %p4184_p13 }
  0x38   : > { %4194 = shalt.err (!%p4191_p5)
}
  0x39   : > { %s4195_s27 = scalar_lea.vmem %s4394_s14, 1024  ;;  %s4282_s28 = smov [#allocation7]  }
  0x3a   : > { %p4196_p10 = scmp.ne.s32.totalorder %s4394_s14, %s4195_s27  ;;  %s4200_s30 = sshll.u32 %s4282_s28, 4  ;;  %s4201_s30 = int_to_ptr.vmem [resolvable:$false] %s4200_s30 }
  0x3b   : > { %s4202_s7 = scalar_lea.vmem %s4201_s30, 2048  ;;  %p4203_p7 = scmp.lt.s32.totalorder %s4394_s14, %s4201_s30 }
  0x3c   : > { %p4198_p12 = pnand %p4196_p10, %p4182_p11  ;;  %p4204_p0 = scmp.lt.s32.totalorder %s4202_s7, %s4195_s27 }
  0x3e   : > { %p4199_p8 = pneg %p4198_p12  ;;  %p4205_p1 = por %p4204_p0, %p4203_p7 }
  0x40   : > { %p4206_p3 = pnand %p4205_p1, %p4199_p8 }
  0x42   : > { %4209 = shalt.err (!%p4206_p3)
}
  0x43   : > { %s4283_s8 = smov 128   ;;  %s4284_s9 = smov 8  }
  0x44   : > { %4098 = dma.hbm_to_vmem [thread:$0]  (!%p4390_p9), %s4386_s12, 1024, %s4394_s14, %s4396_s16, %s4283_s8, %s4283_s8, %s4284_s9  }
  0x45   : > { %p3900_p5 = scmp.ge.s32.totalorder %s4278_s23, 1  ;;  %p118_p11 = scmp.lt.s32.totalorder %s4278_s23, 3 }
  0x47   : > { %p119_p13 = pnand %p3900_p5, %p118_p11 }
  0x49   : > { %122 = sbr.rel (%p119_p13) target bundleno = 2647 (0xa57), region = 24 }
  0x50   : > { %s4427_s10 = sand.u32 1, %s4270_s21  }
  0x51   : > { %s3901_s11 = sshll.u32 %s4427_s10, 6  ;;  %s125_s13 = scalar_lea.sflag [#allocation8], %s4427_s10 }
  0x52   : > { %s128_s17 = scalar_lea.vmem [#allocation7], %s3901_s11 }
  0x53   : > { %4257 = dma.done.wait (%p4366_p2), %s125_s13, 1024  }
  0x54   : > { %4259 = vsyncadd (%p4366_p2), %s125_s13, 4294966272  ;;  %v151_v0 = vld [vmem:[%s128_s17 + $0x20] sm:$0xff]  ;;  %s4285_s12 = smov 2   ;;  %v153_v2 = vld [vmem:[%s128_s17 + $0x30] sm:$0xff]  ;;  %vm187_vm0 = vcmask 146448   ;;  %vm200_vm1 = vcmask 155648  }
  0x55   : > { %v147_v1 = vld [vmem:[%s128_s17] sm:$0xff]  ;;  %171 = vrot.lane.b32.xlu1 %v151_v0, %s4285_s12  ;;  %v149_v3 = vld [vmem:[%s128_s17 + $0x10] sm:$0xff]  ;;  %v150_v4 = vld [vmem:[%s128_s17 + $0x18] sm:$0xff]  ;;  %s4286_s4 = smov 126   ;;  %vm289_vm2 = vcmask 15368   ;;  %vm292_vm3 = vcmask 11272  }
  0x56   : > { %163 = vrot.lane.b32.xlu0 %v147_v1, %s4285_s12  ;;  %v148_v5 = vld [vmem:[%s128_s17 + $0x8] sm:$0xff]  ;;  %v154_v6 = vld [vmem:[%s128_s17 + $0x38] sm:$0xff]  ;;  %vm363_vm4 = vcmask 154768   ;;  %s4287_s14 = smov 124   ;;  %vm366_vm5 = vcmask 150672   ;;  %vm437_vm6 = vcmask 7168  }
  0x57   : > { %v152_v7 = vld [vmem:[%s128_s17 + $0x28] sm:$0xff]  ;;  %s4288_s15 = smov 4   ;;  %vm440_vm7 = vcmask 3072   ;;  %s4552_s16 = sshll.u32 %s4344_s24, 10  ;;  %vm511_vm8 = vcmask 162968   ;;  %vm514_vm9 = vcmask 158872  }
  0x58   : > { %s655_s18 = sadd.s32 3, %s4552_s16  ;;  %s553_s19 = sadd.s32 1, %s4552_s16  ;;  %vm3191_vm13 = vcmask 130048   ;;  %vm4293_vm14 = vmmov 0  }
  0x59   : > { %175 = vrot.lane.b32.xlu1 %v153_v2, %s4285_s12  ;;  %s535_s20 = sld [smem:[#allocation5 + %s4552_s16]]  ;;  %s706_s27 = sadd.s32 4, %s4552_s16 }
  0x5a   : > { %167 = vrot.lane.b32.xlu0 %v149_v3, %s4285_s12  ;;  %s656_s0 = sld [smem:[#allocation5 + %s655_s18]]  ;;  %s604_s28 = sadd.s32 2, %s4552_s16 }
  0x5b   : > { %s554_s25 = sld [smem:[#allocation5 + %s553_s19]]  ;;  %s4289_s8 = smov 125  }
  0x5c   : > { %s707_s30 = sld [smem:[#allocation5 + %s706_s27]]  ;;  %s4290_s9 = smov 127  }
  0x5d   : > { %169 = vrot.lane.b32.xlu1 %v150_v4, %s4285_s12  ;;  %s605_s7 = sld [smem:[#allocation5 + %s604_s28]]  ;;  %s4606_s11 = sadd.s32 128, %s4552_s16 }
  0x5e   : > { %165 = vrot.lane.b32.xlu0 %v148_v5, %s4285_s12  ;;  %s767_s13 = sld [smem:[#allocation5 + %s4606_s11]]  ;;  %s4617_s17 = sadd.s32 256, %s4552_s16 }
  0x5f   : > { %s999_s18 = sld [smem:[#allocation5 + %s4617_s17]]  ;;  %s4668_s19 = sadd.s32 384, %s4552_s16 }
  0x60   : > { %s836_s27 = sadd.s32 2, %s4606_s11  ;;  %s4736_s28 = sadd.s32 512, %s4552_s16 }
  0x61   : > { %177 = vrot.lane.b32.xlu1 %v154_v6, %s4285_s12  ;;  %s1463_s16 = sld [smem:[#allocation5 + %s4736_s28]]  ;;  %p6629_p7 = scmp.ne.s32.totalorder %s6560_s5, 0 }
  0x62   : > { %173 = vrot.lane.b32.xlu0 %v152_v7, %s4285_s12 }
  0xc7   : > { %v172_v8 = vpop.permute.xlu1 %171 }
  0xc8   : > { %v164_v9 = vpop.permute.xlu0 %163  ;;  %192 = vst.msk [vmem:[#allocation2 + $0x32] sm:$0xff] %vm187_vm0, %v172_v8 }
  0xc9   : > { %188 = vst.msk [vmem:[#allocation2 + $0x2] sm:$0xff] %vm187_vm0, %v164_v9 }
  0xcb   : > { %v176_v10 = vpop.permute.xlu1 %175 }
  0xcc   : > { %v168_v11 = vpop.permute.xlu0 %167  ;;  %194 = vst.msk [vmem:[#allocation2 + $0x4a] sm:$0xff] %vm187_vm0, %v176_v10 }
  0xcd   : > { %190 = vst.msk [vmem:[#allocation2 + $0x1a] sm:$0xff] %vm187_vm0, %v168_v11 }
  0xcf   : > { %v198_v12 = vld [vmem:[#allocation2 + $0x33] sm:$0x1]  ;;  %v215_v13 = vld [vmem:[#allocation2 + $0x34] sm:$0x1]  ;;  %v170_v15 = vpop.permute.xlu1 %169 }
  0xd0   : > { %v196_v14 = vld [vmem:[#allocation2 + $0x3] sm:$0x1]  ;;  %v166_v16 = vpop.permute.xlu0 %165  ;;  %v213_v17 = vld [vmem:[#allocation2 + $0x4] sm:$0x1]  ;;  %191 = vst.msk [vmem:[#allocation2 + $0x22] sm:$0xff] %vm187_vm0, %v170_v15 }
  0xd1   : > { %189 = vst.msk [vmem:[#allocation2 + $0xa] sm:$0xff] %vm187_vm0, %v166_v16 }
  0xd2   : > { %201 = vst.msk [vmem:[#allocation2 + $0x1] sm:$0x1] %vm200_vm1, %v196_v14  ;;  %203 = vst.msk [vmem:[#allocation2 + $0x31] sm:$0x1] %vm200_vm1, %v198_v12 }
  0xd3   : > { %219 = vst.msk [vmem:[#allocation2 + $0x30] sm:$0x1] %vm200_vm1, %v215_v13  ;;  %217 = vst.msk [vmem:[#allocation2] sm:$0x1] %vm200_vm1, %v213_v17  ;;  %v199_v18 = vld [vmem:[#allocation2 + $0x4b] sm:$0x1]  ;;  %v178_v21 = vpop.permute.xlu1 %177 }
  0xd4   : > { %v216_v19 = vld [vmem:[#allocation2 + $0x4c] sm:$0x1]  ;;  %v197_v20 = vld [vmem:[#allocation2 + $0x1b] sm:$0x1]  ;;  %v174_v22 = vpop.permute.xlu0 %173  ;;  %v214_v23 = vld [vmem:[#allocation2 + $0x1c] sm:$0x1] }
  0xd5   : > { %195 = vst.msk [vmem:[#allocation2 + $0x52] sm:$0xff] %vm187_vm0, %v178_v21  ;;  %193 = vst.msk [vmem:[#allocation2 + $0x3a] sm:$0xff] %vm187_vm0, %v174_v22 }
  0xd6   : > { %202 = vst.msk [vmem:[#allocation2 + $0x19] sm:$0x1] %vm200_vm1, %v197_v20  ;;  %204 = vst.msk [vmem:[#allocation2 + $0x49] sm:$0x1] %vm200_vm1, %v199_v18 }
  0xd7   : > { %220 = vst.msk [vmem:[#allocation2 + $0x48] sm:$0x1] %vm200_vm1, %v216_v19  ;;  %218 = vst.msk [vmem:[#allocation2 + $0x18] sm:$0x1] %vm200_vm1, %v214_v23  ;;  %v206_v24 = vld [vmem:[#allocation2 + $0x28] sm:$0x1] }
  0xd8   : > { %v222_v25 = vld [vmem:[#allocation2 + $0x27] sm:$0x1]  ;;  %v205_v26 = vld [vmem:[#allocation2 + $0x10] sm:$0x1]  ;;  %v221_v27 = vld [vmem:[#allocation2 + $0xf] sm:$0x1] }
  0xd9   : > { %v230_v28 = vld [vmem:[#allocation2 + $0x8] sm:$0xff]  ;;  %209 = vst.msk [vmem:[#allocation2 + $0x12] sm:$0x1] %vm200_vm1, %v205_v26  ;;  %210 = vst.msk [vmem:[#allocation2 + $0x2a] sm:$0x1] %vm200_vm1, %v206_v24  ;;  %v233_v33 = vld [vmem:[#allocation2 + $0x20] sm:$0xff] }
  0xda   : > { %226 = vst.msk [vmem:[#allocation2 + $0x2b] sm:$0x1] %vm200_vm1, %v222_v25  ;;  %255 = vrot.lane.b32.xlu1 %v230_v28, %s4286_s4  ;;  %225 = vst.msk [vmem:[#allocation2 + $0x13] sm:$0x1] %vm200_vm1, %v221_v27  ;;  %v229_v38 = vld [vmem:[#allocation2] sm:$0xff]  ;;  %v235_v40 = vld [vmem:[#allocation2 + $0x30] sm:$0xff] }
  0xdc   : > { %v208_v29 = vld [vmem:[#allocation2 + $0x58] sm:$0x1]  ;;  %v224_v30 = vld [vmem:[#allocation2 + $0x57] sm:$0x1]  ;;  %v207_v31 = vld [vmem:[#allocation2 + $0x40] sm:$0x1] }
  0xdd   : > { %v223_v32 = vld [vmem:[#allocation2 + $0x3f] sm:$0x1]  ;;  %211 = vst.msk [vmem:[#allocation2 + $0x42] sm:$0x1] %vm200_vm1, %v207_v31  ;;  %212 = vst.msk [vmem:[#allocation2 + $0x5a] sm:$0x1] %vm200_vm1, %v208_v29 }
  0xde   : > { %v236_v34 = vld [vmem:[#allocation2 + $0x38] sm:$0xff]  ;;  %228 = vst.msk [vmem:[#allocation2 + $0x5b] sm:$0x1] %vm200_vm1, %v224_v30  ;;  %261 = vrot.lane.b32.xlu1 %v233_v33, %s4286_s4  ;;  %227 = vst.msk [vmem:[#allocation2 + $0x43] sm:$0x1] %vm200_vm1, %v223_v32  ;;  %v239_v36 = vld [vmem:[#allocation2 + $0x50] sm:$0xff] }
  0xdf   : > { %267 = vrot.lane.b32.xlu0 %v236_v34, %s4286_s4  ;;  %v232_v35 = vld [vmem:[#allocation2 + $0x18] sm:$0xff]  ;;  %v238_v42 = vld [vmem:[#allocation2 + $0x48] sm:$0xff] }
  0xe1   : > { %v231_v37 = vld [vmem:[#allocation2 + $0x10] sm:$0xf]  ;;  %v234_v39 = vld [vmem:[#allocation2 + $0x28] sm:$0xf] }
  0xe2   : > { %259 = vrot.lane.b32.xlu1 %v232_v35, %s4286_s4 }
  0xe3   : > { %273 = vrot.lane.b32.xlu0 %v239_v36, %s4286_s4 }
  0xe5   : > { %v240_v41 = vld [vmem:[#allocation2 + $0x58] sm:$0xf]  ;;  %v237_v43 = vld [vmem:[#allocation2 + $0x40] sm:$0xf] }
  0xe6   : > { %257 = vrot.lane.b32.xlu1 %v231_v37, %s4286_s4 }
  0xe7   : > { %253 = vrot.lane.b32.xlu0 %v229_v38, %s4286_s4 }
  0xea   : > { %263 = vrot.lane.b32.xlu1 %v234_v39, %s4286_s4 }
  0xeb   : > { %265 = vrot.lane.b32.xlu0 %v235_v40, %s4286_s4 }
  0xee   : > { %275 = vrot.lane.b32.xlu1 %v240_v41, %s4286_s4 }
  0xef   : > { %271 = vrot.lane.b32.xlu0 %v238_v42, %s4286_s4 }
  0xf3   : > { %269 = vrot.lane.b32.xlu0 %v237_v43, %s4286_s4 }
 0x14c   : > { %v256_v44 = vpop.permute.xlu1 %255 }
 0x14d   : > { %291 = vst.msk [vmem:[#allocation2 + $0x8] sm:$0xff] %vm289_vm2, %v256_v44 }
 0x150   : > { %v262_v45 = vpop.permute.xlu1 %261 }
 0x151   : > { %v268_v46 = vpop.permute.xlu0 %267  ;;  %295 = vst.msk [vmem:[#allocation2 + $0x20] sm:$0xff] %vm289_vm2, %v262_v45 }
 0x152   : > { %298 = vst.msk [vmem:[#allocation2 + $0x38] sm:$0xff] %vm289_vm2, %v268_v46 }
 0x154   : > { %v260_v47 = vpop.permute.xlu1 %259  ;;  %v304_v49 = vld [vmem:[#allocation2 + $0x8] sm:$0xff] }
 0x155   : > { %v274_v48 = vpop.permute.xlu0 %273  ;;  %294 = vst.msk [vmem:[#allocation2 + $0x18] sm:$0xff] %vm289_vm2, %v260_v47  ;;  %329 = vrot.lane.b32.xlu1 %v304_v49, %s4285_s12 }
 0x156   : > { %301 = vst.msk [vmem:[#allocation2 + $0x50] sm:$0xff] %vm289_vm2, %v274_v48 }
 0x158   : > { %v258_v50 = vpop.permute.xlu1 %257  ;;  %v307_v52 = vld [vmem:[#allocation2 + $0x20] sm:$0xff] }
 0x159   : > { %v254_v51 = vpop.permute.xlu0 %253  ;;  %v310_v53 = vld [vmem:[#allocation2 + $0x38] sm:$0xff]  ;;  %293 = vst.msk [vmem:[#allocation2 + $0x10] sm:$0xf] %vm292_vm3, %v258_v50  ;;  %335 = vrot.lane.b32.xlu1 %v307_v52, %s4285_s12 }
 0x15a   : > { %290 = vst.msk [vmem:[#allocation2] sm:$0xff] %vm289_vm2, %v254_v51  ;;  %341 = vrot.lane.b32.xlu0 %v310_v53, %s4285_s12 }
 0x15c   : > { %v264_v54 = vpop.permute.xlu1 %263  ;;  %v306_v56 = vld [vmem:[#allocation2 + $0x18] sm:$0xff] }
 0x15d   : > { %v266_v55 = vpop.permute.xlu0 %265  ;;  %v313_v57 = vld [vmem:[#allocation2 + $0x50] sm:$0xff]  ;;  %296 = vst.msk [vmem:[#allocation2 + $0x28] sm:$0xf] %vm292_vm3, %v264_v54  ;;  %333 = vrot.lane.b32.xlu1 %v306_v56, %s4285_s12  ;;  %v4564_v56 = vstv %s554_s25 }
 0x15e   : > { %297 = vst.msk [vmem:[#allocation2 + $0x30] sm:$0xff] %vm289_vm2, %v266_v55  ;;  %347 = vrot.lane.b32.xlu0 %v313_v57, %s4285_s12  ;;  %v4562_v55 = vstv %s656_s0  ;;  %v4566_v57 = vstv %s535_s20  ;;  %s785_s20 = sadd.s32 1, %s4606_s11  ;;  %s1231_s0 = sld [smem:[#allocation5 + %s4668_s19]] }
 0x15f   : > { %s786_s25 = sld [smem:[#allocation5 + %s785_s20]] }
 0x160   : > { %v276_v58 = vpop.permute.xlu1 %275  ;;  %v305_v60 = vld [vmem:[#allocation2 + $0x10] sm:$0xf] }
 0x161   : > { %v272_v59 = vpop.permute.xlu0 %271  ;;  %v303_v61 = vld [vmem:[#allocation2] sm:$0xff]  ;;  %302 = vst.msk [vmem:[#allocation2 + $0x58] sm:$0xf] %vm292_vm3, %v276_v58  ;;  %331 = vrot.lane.b32.xlu1 %v305_v60, %s4285_s12 }
 0x162   : > { %300 = vst.msk [vmem:[#allocation2 + $0x48] sm:$0xff] %vm289_vm2, %v272_v59  ;;  %327 = vrot.lane.b32.xlu0 %v303_v61, %s4285_s12 }
 0x164   : > { %v308_v63 = vld [vmem:[#allocation2 + $0x28] sm:$0xf] }
 0x165   : > { %v270_v62 = vpop.permute.xlu0 %269  ;;  %v309_v0 = vld [vmem:[#allocation2 + $0x30] sm:$0xff]  ;;  %337 = vrot.lane.b32.xlu1 %v308_v63, %s4285_s12  ;;  %v4572_v63 = vstv %s707_s30  ;;  %s837_s30 = sld [smem:[#allocation5 + %s836_s27]] }
 0x166   : > { %299 = vst.msk [vmem:[#allocation2 + $0x40] sm:$0xf] %vm292_vm3, %v270_v62  ;;  %339 = vrot.lane.b32.xlu0 %v309_v0, %s4285_s12  ;;  %v4574_v0 = vstv %s605_s7  ;;  %s887_s7 = sadd.s32 3, %s4606_s11 }
 0x168   : > { %v314_v1 = vld [vmem:[#allocation2 + $0x58] sm:$0xf] }
 0x169   : > { %v312_v2 = vld [vmem:[#allocation2 + $0x48] sm:$0xff]  ;;  %349 = vrot.lane.b32.xlu1 %v314_v1, %s4285_s12 }
 0x16a   : > { %345 = vrot.lane.b32.xlu0 %v312_v2, %s4285_s12 }
 0x16d   : > { %v311_v3 = vld [vmem:[#allocation2 + $0x40] sm:$0xf] }
 0x16e   : > { %343 = vrot.lane.b32.xlu0 %v311_v3, %s4285_s12 }
 0x1c7   : > { %v330_v4 = vpop.permute.xlu1 %329 }
 0x1c8   : > { %365 = vst.msk [vmem:[#allocation2 + $0x8] sm:$0xff] %vm363_vm4, %v330_v4 }
 0x1cb   : > { %v336_v5 = vpop.permute.xlu1 %335 }
 0x1cc   : > { %v342_v6 = vpop.permute.xlu0 %341  ;;  %369 = vst.msk [vmem:[#allocation2 + $0x20] sm:$0xff] %vm363_vm4, %v336_v5 }
 0x1cd   : > { %372 = vst.msk [vmem:[#allocation2 + $0x38] sm:$0xff] %vm363_vm4, %v342_v6 }
 0x1cf   : > { %v334_v7 = vpop.permute.xlu1 %333  ;;  %v378_v9 = vld [vmem:[#allocation2 + $0x8] sm:$0xff] }
 0x1d0   : > { %v348_v8 = vpop.permute.xlu0 %347  ;;  %368 = vst.msk [vmem:[#allocation2 + $0x18] sm:$0xff] %vm363_vm4, %v334_v7  ;;  %403 = vrot.lane.b32.xlu1 %v378_v9, %s4287_s14 }
 0x1d1   : > { %375 = vst.msk [vmem:[#allocation2 + $0x50] sm:$0xff] %vm363_vm4, %v348_v8 }
 0x1d3   : > { %v332_v10 = vpop.permute.xlu1 %331  ;;  %v381_v12 = vld [vmem:[#allocation2 + $0x20] sm:$0xff] }
 0x1d4   : > { %v328_v11 = vpop.permute.xlu0 %327  ;;  %v384_v13 = vld [vmem:[#allocation2 + $0x38] sm:$0xff]  ;;  %367 = vst.msk [vmem:[#allocation2 + $0x10] sm:$0xf] %vm366_vm5, %v332_v10  ;;  %409 = vrot.lane.b32.xlu1 %v381_v12, %s4287_s14 }
 0x1d5   : > { %364 = vst.msk [vmem:[#allocation2] sm:$0xff] %vm363_vm4, %v328_v11  ;;  %415 = vrot.lane.b32.xlu0 %v384_v13, %s4287_s14 }
 0x1d7   : > { %v338_v14 = vpop.permute.xlu1 %337  ;;  %v380_v16 = vld [vmem:[#allocation2 + $0x18] sm:$0xff] }
 0x1d8   : > { %v340_v15 = vpop.permute.xlu0 %339  ;;  %v387_v17 = vld [vmem:[#allocation2 + $0x50] sm:$0xff]  ;;  %370 = vst.msk [vmem:[#allocation2 + $0x28] sm:$0xf] %vm366_vm5, %v338_v14  ;;  %407 = vrot.lane.b32.xlu1 %v380_v16, %s4287_s14 }
 0x1d9   : > { %371 = vst.msk [vmem:[#allocation2 + $0x30] sm:$0xff] %vm363_vm4, %v340_v15  ;;  %421 = vrot.lane.b32.xlu0 %v387_v17, %s4287_s14 }
 0x1db   : > { %v350_v18 = vpop.permute.xlu1 %349  ;;  %v379_v20 = vld [vmem:[#allocation2 + $0x10] sm:$0xf] }
 0x1dc   : > { %v346_v19 = vpop.permute.xlu0 %345  ;;  %v377_v21 = vld [vmem:[#allocation2] sm:$0xff]  ;;  %376 = vst.msk [vmem:[#allocation2 + $0x58] sm:$0xf] %vm366_vm5, %v350_v18  ;;  %405 = vrot.lane.b32.xlu1 %v379_v20, %s4287_s14 }
 0x1dd   : > { %374 = vst.msk [vmem:[#allocation2 + $0x48] sm:$0xff] %vm363_vm4, %v346_v19  ;;  %401 = vrot.lane.b32.xlu0 %v377_v21, %s4287_s14 }
 0x1df   : > { %v382_v23 = vld [vmem:[#allocation2 + $0x28] sm:$0xf] }
 0x1e0   : > { %v344_v22 = vpop.permute.xlu0 %343  ;;  %v383_v24 = vld [vmem:[#allocation2 + $0x30] sm:$0xff]  ;;  %411 = vrot.lane.b32.xlu1 %v382_v23, %s4287_s14 }
 0x1e1   : > { %373 = vst.msk [vmem:[#allocation2 + $0x40] sm:$0xf] %vm366_vm5, %v344_v22  ;;  %413 = vrot.lane.b32.xlu0 %v383_v24, %s4287_s14 }
 0x1e3   : > { %v388_v25 = vld [vmem:[#allocation2 + $0x58] sm:$0xf] }
 0x1e4   : > { %v386_v26 = vld [vmem:[#allocation2 + $0x48] sm:$0xff]  ;;  %423 = vrot.lane.b32.xlu1 %v388_v25, %s4287_s14 }
 0x1e5   : > { %419 = vrot.lane.b32.xlu0 %v386_v26, %s4287_s14 }
 0x1e8   : > { %v385_v27 = vld [vmem:[#allocation2 + $0x40] sm:$0xf] }
 0x1e9   : > { %417 = vrot.lane.b32.xlu0 %v385_v27, %s4287_s14 }
 0x242   : > { %v404_v28 = vpop.permute.xlu1 %403 }
 0x243   : > { %439 = vst.msk [vmem:[#allocation2 + $0x8] sm:$0xff] %vm437_vm6, %v404_v28 }
 0x246   : > { %v410_v29 = vpop.permute.xlu1 %409 }
 0x247   : > { %v416_v30 = vpop.permute.xlu0 %415  ;;  %443 = vst.msk [vmem:[#allocation2 + $0x20] sm:$0xff] %vm437_vm6, %v410_v29 }
 0x248   : > { %446 = vst.msk [vmem:[#allocation2 + $0x38] sm:$0xff] %vm437_vm6, %v416_v30 }
 0x24a   : > { %v408_v31 = vpop.permute.xlu1 %407  ;;  %v452_v33 = vld [vmem:[#allocation2 + $0x8] sm:$0xff] }
 0x24b   : > { %v422_v32 = vpop.permute.xlu0 %421  ;;  %442 = vst.msk [vmem:[#allocation2 + $0x18] sm:$0xff] %vm437_vm6, %v408_v31  ;;  %477 = vrot.lane.b32.xlu1 %v452_v33, %s4288_s15  ;;  %v768_v33 = vstv %s767_s13  ;;  %s4799_s13 = sld [smem:[#allocation5 + %s887_s7]]  ;;  %s1170_s7 = sadd.s32 4, %s4617_s17 }
 0x24c   : > { %449 = vst.msk [vmem:[#allocation2 + $0x50] sm:$0xff] %vm437_vm6, %v422_v32 }
 0x24e   : > { %v406_v34 = vpop.permute.xlu1 %405  ;;  %v455_v36 = vld [vmem:[#allocation2 + $0x20] sm:$0xff] }
 0x24f   : > { %v402_v35 = vpop.permute.xlu0 %401  ;;  %v458_v37 = vld [vmem:[#allocation2 + $0x38] sm:$0xff]  ;;  %441 = vst.msk [vmem:[#allocation2 + $0x10] sm:$0xf] %vm440_vm7, %v406_v34  ;;  %483 = vrot.lane.b32.xlu1 %v455_v36, %s4288_s15 }
 0x250   : > { %438 = vst.msk [vmem:[#allocation2] sm:$0xff] %vm437_vm6, %v402_v35  ;;  %489 = vrot.lane.b32.xlu0 %v458_v37, %s4288_s15 }
 0x252   : > { %v412_v38 = vpop.permute.xlu1 %411  ;;  %v454_v40 = vld [vmem:[#allocation2 + $0x18] sm:$0xff] }
 0x253   : > { %v414_v39 = vpop.permute.xlu0 %413  ;;  %v461_v41 = vld [vmem:[#allocation2 + $0x50] sm:$0xff]  ;;  %444 = vst.msk [vmem:[#allocation2 + $0x28] sm:$0xf] %vm440_vm7, %v412_v38  ;;  %481 = vrot.lane.b32.xlu1 %v454_v40, %s4288_s15 }
 0x254   : > { %445 = vst.msk [vmem:[#allocation2 + $0x30] sm:$0xff] %vm437_vm6, %v414_v39  ;;  %495 = vrot.lane.b32.xlu0 %v461_v41, %s4288_s15 }
 0x256   : > { %v424_v42 = vpop.permute.xlu1 %423  ;;  %v453_v44 = vld [vmem:[#allocation2 + $0x10] sm:$0xf] }
 0x257   : > { %v420_v43 = vpop.permute.xlu0 %419  ;;  %v451_v45 = vld [vmem:[#allocation2] sm:$0xff]  ;;  %450 = vst.msk [vmem:[#allocation2 + $0x58] sm:$0xf] %vm440_vm7, %v424_v42  ;;  %479 = vrot.lane.b32.xlu1 %v453_v44, %s4288_s15 }
 0x258   : > { %448 = vst.msk [vmem:[#allocation2 + $0x48] sm:$0xff] %vm437_vm6, %v420_v43  ;;  %475 = vrot.lane.b32.xlu0 %v451_v45, %s4288_s15 }
 0x25a   : > { %v456_v47 = vld [vmem:[#allocation2 + $0x28] sm:$0xf] }
 0x25b   : > { %v418_v46 = vpop.permute.xlu0 %417  ;;  %v457_v48 = vld [vmem:[#allocation2 + $0x30] sm:$0xff]  ;;  %485 = vrot.lane.b32.xlu1 %v456_v47, %s4288_s15 }
 0x25c   : > { %447 = vst.msk [vmem:[#allocation2 + $0x40] sm:$0xf] %vm440_vm7, %v418_v46  ;;  %487 = vrot.lane.b32.xlu0 %v457_v48, %s4288_s15  ;;  %v4675_v46 = vstv %s999_s18  ;;  %s938_s18 = sadd.s32 4, %s4606_s11  ;;  %s1068_s11 = sadd.s32 2, %s4617_s17 }
 0x25d   : > { %s939_s20 = sld [smem:[#allocation5 + %s938_s18]] }
 0x25e   : > { %v462_v49 = vld [vmem:[#allocation2 + $0x58] sm:$0xf]  ;;  %s1069_s27 = sld [smem:[#allocation5 + %s1068_s11]] }
 0x25f   : > { %v460_v50 = vld [vmem:[#allocation2 + $0x48] sm:$0xff]  ;;  %497 = vrot.lane.b32.xlu1 %v462_v49, %s4288_s15 }
 0x260   : > { %493 = vrot.lane.b32.xlu0 %v460_v50, %s4288_s15 }
 0x263   : > { %v459_v51 = vld [vmem:[#allocation2 + $0x40] sm:$0xf] }
 0x264   : > { %491 = vrot.lane.b32.xlu0 %v459_v51, %s4288_s15 }
 0x2bd   : > { %v478_v52 = vpop.permute.xlu1 %477 }
 0x2be   : > { %513 = vst.msk [vmem:[#allocation2 + $0x8] sm:$0xff] %vm511_vm8, %v478_v52 }
 0x2c1   : > { %v484_v53 = vpop.permute.xlu1 %483 }
 0x2c2   : > { %v490_v54 = vpop.permute.xlu0 %489  ;;  %517 = vst.msk [vmem:[#allocation2 + $0x20] sm:$0xff] %vm511_vm8, %v484_v53 }
 0x2c3   : > { %520 = vst.msk [vmem:[#allocation2 + $0x38] sm:$0xff] %vm511_vm8, %v490_v54 }
 0x2c5   : > { %v482_v58 = vpop.permute.xlu1 %481  ;;  %v526_v60 = vld [vmem:[#allocation2 + $0x8] sm:$0xff] }
 0x2c6   : > { %v496_v59 = vpop.permute.xlu0 %495  ;;  %516 = vst.msk [vmem:[#allocation2 + $0x18] sm:$0xff] %vm511_vm8, %v482_v58  ;;  %v659_v61 = vmul.f32 %v4562_v55, %v526_v60  ;;  %v557_v62 = vmul.f32 %v4564_v56, %v526_v60  ;;  %v4577_v1 = vmul.f32 %v4566_v57, %v526_v60  ;;  %v710_v6 = vmul.f32 %v4572_v63, %v526_v60 }
 0x2c7   : > { %523 = vst.msk [vmem:[#allocation2 + $0x50] sm:$0xff] %vm511_vm8, %v496_v59  ;;  %v608_v7 = vmul.f32 %v4574_v0, %v526_v60 }
 0x2c8   : > { %676 = vrot.lane.b32.xlu1 %v659_v61, %s4289_s8  ;;  %574 = vrot.lane.b32.xlu0 %v557_v62, %s4290_s9 }
 0x2c9   : > { %v480_v2 = vpop.permute.xlu1 %479  ;;  %v528_v4 = vld [vmem:[#allocation2 + $0x20] sm:$0xff] }
 0x2ca   : > { %v476_v3 = vpop.permute.xlu0 %475  ;;  %v530_v5 = vld [vmem:[#allocation2 + $0x38] sm:$0xff]  ;;  %515 = vst.msk [vmem:[#allocation2 + $0x10] sm:$0xf] %vm514_vm9, %v480_v2  ;;  %v4591_v9 = vmul.f32 %v4566_v57, %v528_v4  ;;  %v559_v12 = vmul.f32 %v4564_v56, %v528_v4  ;;  %v610_v16 = vmul.f32 %v4574_v0, %v528_v4  ;;  %v712_v17 = vmul.f32 %v4572_v63, %v528_v4 }
 0x2cb   : > { %512 = vst.msk [vmem:[#allocation2] sm:$0xff] %vm511_vm8, %v476_v3  ;;  %v4588_v8 = vmul.f32 %v4566_v57, %v530_v5  ;;  %v561_v13 = vmul.f32 %v4564_v56, %v530_v5  ;;  %v661_v19 = vmul.f32 %v4562_v55, %v528_v4  ;;  %v663_v20 = vmul.f32 %v4562_v55, %v530_v5 }
 0x2cc   : > { %727 = vrot.lane.b32.xlu1 %v710_v6, %s4287_s14  ;;  %625 = vrot.lane.b32.xlu0 %v608_v7, %s4286_s4  ;;  %v612_v21 = vmul.f32 %v4574_v0, %v530_v5  ;;  %v714_v22 = vmul.f32 %v4572_v63, %v530_v5 }
 0x2cd   : > { %v486_v10 = vpop.permute.xlu1 %485  ;;  %v4629_v29 = vld [vmem:[#allocation2 + $0x18] sm:$0xff] }
 0x2ce   : > { %v488_v11 = vpop.permute.xlu0 %487  ;;  %518 = vst.msk [vmem:[#allocation2 + $0x28] sm:$0xf] %vm514_vm9, %v486_v10  ;;  %v532_v23 = vld [vmem:[#allocation2 + $0x50] sm:$0xff]  ;;  %v4645_v35 = vmul.f32 %v4566_v57, %v4629_v29  ;;  %v4653_v39 = vld [vmem:[#allocation2 + $0x19] sm:$0xff]  ;;  %v660_v58 = vmul.f32 %v4562_v55, %v4629_v29 }
 0x2cf   : > { %519 = vst.msk [vmem:[#allocation2 + $0x30] sm:$0xff] %vm511_vm8, %v488_v11  ;;  %v4625_v26 = vmul.f32 %v4566_v57, %v532_v23  ;;  %v563_v27 = vmul.f32 %v4564_v56, %v532_v23  ;;  %v614_v37 = vmul.f32 %v4574_v0, %v532_v23  ;;  %v4673_v45 = vmul.f32 %v768_v33, %v4653_v39  ;;  %v4695_v53 = vld [vmem:[#allocation2 + $0x1a] sm:$0xff] }
 0x2d0   : > { %578 = vrot.lane.b32.xlu0 %v559_v12, %s4290_s9  ;;  %582 = vrot.lane.b32.xlu1 %v561_v13, %s4290_s9  ;;  %v665_v47 = vmul.f32 %v4562_v55, %v532_v23  ;;  %v4712_v62 = vmul.f32 %v4675_v46, %v4695_v53  ;;  %v1232_v13 = vstv %s1231_s0  ;;  %s1017_s0 = sadd.s32 1, %s4617_s17 }
 0x2d1   : > { %v498_v14 = vpop.permute.xlu1 %497  ;;  %v4670_v44 = vld [vmem:[#allocation2 + $0x9] sm:$0xff] }
 0x2d2   : > { %v494_v15 = vpop.permute.xlu0 %493  ;;  %524 = vst.msk [vmem:[#allocation2 + $0x58] sm:$0xf] %vm514_vm9, %v498_v14  ;;  %v525_v24 = vld [vmem:[#allocation2] sm:$0xff]  ;;  %v4698_v54 = vmul.f32 %v768_v33, %v4670_v44  ;;  %6565 = vst [vmem:[#allocation16_spill] sm:$0xff] %v4712_v62  ;;  %v4716_v2 = vld [vmem:[#allocation2 + $0xa] sm:$0xff] }
 0x2d3   : > { %522 = vst.msk [vmem:[#allocation2 + $0x48] sm:$0xff] %vm511_vm8, %v494_v15  ;;  %v4621_v25 = vld [vmem:[#allocation2 + $0x1] sm:$0xff]  ;;  %v607_v28 = vmul.f32 %v4574_v0, %v525_v24  ;;  %v4636_v32 = vmul.f32 %v4566_v57, %v525_v24  ;;  %v658_v38 = vmul.f32 %v4562_v55, %v525_v24  ;;  %v709_v48 = vmul.f32 %v4572_v63, %v525_v24 }
 0x2d4   : > { %629 = vrot.lane.b32.xlu0 %v610_v16, %s4286_s4  ;;  %731 = vrot.lane.b32.xlu1 %v712_v17, %s4287_s14  ;;  %v4641_v34 = vmul.f32 %v768_v33, %v4621_v25  ;;  %v4659_v41 = vld [vmem:[#allocation2 + $0x2] sm:$0xff]  ;;  %v556_v5 = vmul.f32 %v4564_v56, %v525_v24  ;;  %v4740_v12 = vmul.f32 %v4675_v46, %v4716_v2  ;;  %v4747_v15 = vstv %s786_s25  ;;  %s1018_s25 = sld [smem:[#allocation5 + %s1017_s0]] }
 0x2d5   : > { %v4682_v49 = vmul.f32 %v4675_v46, %v4659_v41  ;;  %v4684_v50 = vld [vmem:[#allocation2 + $0x21] sm:$0xff] }
 0x2d6   : > { %v492_v18 = vpop.permute.xlu0 %491  ;;  %v4633_v31 = vld [vmem:[#allocation2 + $0x30] sm:$0xff]  ;;  %v4706_v60 = vmul.f32 %v768_v33, %v4684_v50  ;;  %v4718_v3 = vld [vmem:[#allocation2 + $0x3] sm:$0xff]  ;;  %6567 = vst [vmem:[#allocation18_spill] sm:$0xff] %v4740_v12  ;;  %v711_v12 = vmul.f32 %v4572_v63, %v4629_v29 }
 0x2d7   : > { %521 = vst.msk [vmem:[#allocation2 + $0x40] sm:$0xf] %vm514_vm9, %v492_v18  ;;  %v4657_v40 = vmul.f32 %v4566_v57, %v4633_v31  ;;  %v4663_v42 = vld [vmem:[#allocation2 + $0x31] sm:$0xff]  ;;  %6563 = vst [vmem:[#allocation14_spill] sm:$0xff] %v4682_v49  ;;  %v611_v6 = vmul.f32 %v4574_v0, %v4633_v31  ;;  %v4745_v14 = vmul.f32 %v1232_v13, %v4718_v3  ;;  %v4749_v16 = vld [vmem:[#allocation2 + $0x22] sm:$0xff] }
 0x2d8   : > { %680 = vrot.lane.b32.xlu0 %v661_v19, %s4289_s8  ;;  %684 = vrot.lane.b32.xlu1 %v663_v20, %s4289_s8  ;;  %v4687_v51 = vmul.f32 %v768_v33, %v4663_v42  ;;  %v4708_v61 = vld [vmem:[#allocation2 + $0x32] sm:$0xff]  ;;  %v558_v18 = vmul.f32 %v4564_v56, %v4629_v29  ;;  %v788_v19 = vmul.f32 %v4747_v15, %v4621_v25  ;;  %v4758_v20 = vld [vmem:[#allocation2 + $0x1b] sm:$0xff] }
 0x2d9   : > { %v4727_v7 = vld [vmem:[#allocation2 + $0x51] sm:$0xff]  ;;  %v4731_v10 = vmul.f32 %v4675_v46, %v4708_v61  ;;  %6568 = vst [vmem:[#allocation19_spill] sm:$0xff] %v4745_v14  ;;  %v4774_v24 = vmul.f32 %v1232_v13, %v4758_v20  ;;  %v1464_v14 = vstv %s1463_s16 }
 0x2da   : > { %v4631_v30 = vld [vmem:[#allocation2 + $0x48] sm:$0xff]  ;;  %v4752_v17 = vmul.f32 %v768_v33, %v4727_v7 }
 0x2db   : > { %v4649_v36 = vmul.f32 %v4566_v57, %v4631_v30  ;;  %v4665_v43 = vld [vmem:[#allocation2 + $0x49] sm:$0xff]  ;;  %v716_v57 = vmul.f32 %v4572_v63, %v532_v23  ;;  %6566 = vst [vmem:[#allocation17_spill] sm:$0xff] %v4731_v10  ;;  %v4771_v23 = vmul.f32 %v4675_v46, %v4749_v16  ;;  %6571 = vst [vmem:[#allocation22_spill] sm:$0xff] %v4774_v24  ;;  %v4816_v24 = vld [vmem:[#allocation2 + $0x34] sm:$0xff] }
 0x2dc   : > { %633 = vrot.lane.b32.xlu0 %v612_v21, %s4286_s4  ;;  %735 = vrot.lane.b32.xlu1 %v714_v22, %s4287_s14  ;;  %v4690_v52 = vmul.f32 %v768_v33, %v4665_v43  ;;  %v4733_v11 = vld [vmem:[#allocation2 + $0x4a] sm:$0xff] }
 0x2dd   : > { %v4762_v21 = vmul.f32 %v4675_v46, %v4733_v11  ;;  %6570 = vst [vmem:[#allocation21_spill] sm:$0xff] %v4771_v23  ;;  %v4818_v23 = vld [vmem:[#allocation2 + $0x24] sm:$0xff]  ;;  %v4829_v10 = vld [vmem:[#allocation2 + $0x4c] sm:$0xff] }
 0x2de   : > { %6564 = vst [vmem:[#allocation15_spill] sm:$0xff] %v4690_v52  ;;  %v4703_v59 = vld [vmem:[#allocation2 + $0x39] sm:$0xff] }
 0x2df   : > { %v4721_v4 = vmul.f32 %v768_v33, %v4703_v59  ;;  %6569 = vst [vmem:[#allocation20_spill] sm:$0xff] %v4762_v21  ;;  %v4767_v22 = vld [vmem:[#allocation2 + $0x3a] sm:$0xff] }
 0x2e0   : > { %586 = vrot.lane.b32.xlu0 %v563_v27, %s4290_s9  ;;  %623 = vrot.lane.b32.xlu1 %v607_v28, %s4286_s4  ;;  %v609_v27 = vmul.f32 %v4574_v0, %v4629_v29  ;;  %v562_v28 = vmul.f32 %v4564_v56, %v4631_v30  ;;  %v4781_v33 = vld [vmem:[#allocation2 + $0x33] sm:$0xff]  ;;  %v4831_v62 = vld [vmem:[#allocation2 + $0x3c] sm:$0xff] }
 0x2e1   : > { %6572 = vst [vmem:[#allocation23_spill] sm:$0xff] %v4781_v33 }
 0x2e4   : > { %637 = vrot.lane.b32.xlu0 %v614_v37, %s4286_s4  ;;  %674 = vrot.lane.b32.xlu1 %v658_v38, %s4289_s8  ;;  %v4783_v37 = vld [vmem:[#allocation2 + $0xb] sm:$0xff]  ;;  %v4787_v38 = vmul.f32 %v4675_v46, %v4767_v22 }
 0x2e5   : > { %6573 = vst [vmem:[#allocation24_spill] sm:$0xff] %v4783_v37  ;;  %v4821_v21 = vmul.f32 %v1232_v13, %v4783_v37 }
 0x2e6   : > { %6574 = vst [vmem:[#allocation25_spill] sm:$0xff] %v4787_v38  ;;  %v4814_v38 = vld [vmem:[#allocation2 + $0x3b] sm:$0xff] }
 0x2e7   : > { %6576 = vst [vmem:[#allocation27_spill] sm:$0xff] %v4821_v21  ;;  %v1460_v21 = vld [vmem:[#allocation2 + $0x54] sm:$0xff] }
 0x2e8   : > { %688 = vrot.lane.b32.xlu0 %v665_v47, %s4289_s8  ;;  %725 = vrot.lane.b32.xlu1 %v709_v48, %s4287_s14  ;;  %v4791_v47 = vld [vmem:[#allocation2 + $0x4] sm:$0xff]  ;;  %v4793_v48 = vld [vmem:[#allocation2 + $0x1c] sm:$0xff] }
 0x2e9   : > { %v4834_v49 = vmul.f32 %v1464_v14, %v4791_v47 }
 0x2eb   : > { %6577 = vst [vmem:[#allocation28_spill] sm:$0xff] %v4834_v49  ;;  %v4852_v49 = vmul.f32 %v1232_v13, %v4814_v38 }
 0x2ec   : > { %739 = vrot.lane.b32.xlu0 %v716_v57, %s4287_s14  ;;  %678 = vrot.lane.b32.xlu1 %v660_v58, %s4289_s8  ;;  %v4795_v57 = vld [vmem:[#allocation2 + $0xc] sm:$0xff]  ;;  %v4797_v58 = vstv %s837_s30  ;;  %s1119_s30 = sadd.s32 3, %s4617_s17  ;;  %s1249_s17 = sadd.s32 1, %s4668_s19 }
 0x2ed   : > { %6581 = vst [vmem:[#allocation32_spill] sm:$0xff] %v4852_v49  ;;  %v4872_v49 = vmul.f32 %v1464_v14, %v1460_v21  ;;  %v715_v21 = vmul.f32 %v4572_v63, %v4631_v30  ;;  %s1120_s16 = sld [smem:[#allocation5 + %s1119_s30]] }
 0x2ee   : > { %s1250_s18 = sld [smem:[#allocation5 + %s1249_s17]]  ;;  %s1583_s17 = sadd.s32 3, %s4736_s28 }
 0x2ef   : > { %6584 = vst [vmem:[#allocation35_spill] sm:$0xff] %v4872_v49 }
 0x2f0   : > { %572 = vrot.lane.b32.xlu0 %v556_v5, %s4290_s9  ;;  %631 = vrot.lane.b32.xlu1 %v611_v6, %s4286_s4  ;;  %v4801_v5 = vld [vmem:[#allocation2 + $0x52] sm:$0xff] }
 0x2f1   : > { %v4803_v6 = vld [vmem:[#allocation2 + $0x4b] sm:$0xff]  ;;  %v4840_v29 = vmul.f32 %v4675_v46, %v4801_v5 }
 0x2f2   : > { %v4843_v37 = vmul.f32 %v1232_v13, %v4803_v6 }
 0x2f4   : > { %576 = vrot.lane.b32.xlu0 %v558_v18, %s4290_s9  ;;  %804 = vrot.lane.b32.xlu1 %v788_v19, %s4290_s9  ;;  %v4805_v18 = vld [vmem:[#allocation2 + $0x23] sm:$0xff]  ;;  %v4808_v19 = vmul.f32 %v1232_v13, %v4781_v33  ;;  %6578 = vst [vmem:[#allocation29_spill] sm:$0xff] %v4843_v37  ;;  %v4849_v33 = vmul.f32 %v1464_v14, %v4793_v48 }
 0x2f5   : > { %v4846_v52 = vmul.f32 %v1232_v13, %v4805_v18  ;;  %v4864_v37 = vmul.f32 %v1464_v14, %v4829_v10 }
 0x2f6   : > { %6575 = vst [vmem:[#allocation26_spill] sm:$0xff] %v4808_v19  ;;  %v713_v19 = vmul.f32 %v4572_v63, %v4633_v31  ;;  %6580 = vst [vmem:[#allocation31_spill] sm:$0xff] %v4849_v33  ;;  %v4870_v33 = vmul.f32 %v1464_v14, %v4831_v62 }
 0x2f7   : > { %6579 = vst [vmem:[#allocation30_spill] sm:$0xff] %v4846_v52  ;;  %6583 = vst [vmem:[#allocation34_spill] sm:$0xff] %v4864_v37  ;;  %v4867_v52 = vmul.f32 %v1464_v14, %v4818_v23 }
 0x2f8   : > { %627 = vrot.lane.b32.xlu0 %v609_v27, %s4286_s4  ;;  %584 = vrot.lane.b32.xlu1 %v562_v28, %s4290_s9  ;;  %v560_v27 = vmul.f32 %v4564_v56, %v4633_v31  ;;  %v839_v28 = vmul.f32 %v4797_v58, %v4621_v25  ;;  %v4827_v56 = vld [vmem:[#allocation2 + $0x53] sm:$0xff] }
 0x2f9   : > { %v4861_v46 = vmul.f32 %v1232_v13, %v4827_v56  ;;  %v662_v13 = vmul.f32 %v4562_v55, %v4633_v31  ;;  %v790_v31 = vmul.f32 %v4747_v15, %v4653_v39 }
 0x2fc   : > { %580 = vrot.lane.b32.xlu0 %v560_v27, %s4290_s9  ;;  %855 = vrot.lane.b32.xlu1 %v839_v28, %s4286_s4  ;;  %v4855_v27 = vmul.f32 %v1464_v14, %v4816_v24  ;;  %v4858_v28 = vmul.f32 %v1464_v14, %v4795_v57  ;;  %v613_v14 = vmul.f32 %v4574_v0, %v4631_v30 }
 0x2fd   : > { %v664_v0 = vmul.f32 %v4562_v55, %v4631_v30  ;;  %v4914_v55 = vstv %s1018_s25  ;;  %v792_v30 = vmul.f32 %v4747_v15, %v4663_v42  ;;  %s1351_s25 = sadd.s32 3, %s4668_s19 }
 0x2fe   : > { %6582 = vst [vmem:[#allocation33_spill] sm:$0xff] %v4858_v28  ;;  %v4877_v28 = vstv %s4799_s13  ;;  %s1171_s13 = sld [smem:[#allocation5 + %s1170_s7]]  ;;  %s1532_s7 = sadd.s32 2, %s4736_s28 }
 0x2ff   : > { %v890_v37 = vmul.f32 %v4877_v28, %v4621_v25  ;;  %s1352_s11 = sld [smem:[#allocation5 + %s1351_s25]] }
 0x300   : > { %729 = vrot.lane.b32.xlu0 %v711_v12, %s4287_s14  ;;  %733 = vrot.lane.b32.xlu1 %v713_v19, %s4287_s14  ;;  %v841_v12 = vmul.f32 %v4797_v58, %v4653_v39  ;;  %v4905_v19 = vstv %s939_s20  ;;  %s1300_s20 = sadd.s32 2, %s4668_s19  ;;  %s3911_s25 = sld [smem:[#allocation6 + $0x3]] }
 0x301   : > { %v941_v63 = vmul.f32 %v4905_v19, %v4621_v25  ;;  %v789_v25 = vmul.f32 %v4747_v15, %v4670_v44  ;;  %s1301_s0 = sld [smem:[#allocation5 + %s1300_s20]]  ;;  %s1634_s20 = sadd.s32 4, %s4736_s28 }
 0x304   : > { %682 = vrot.lane.b32.xlu0 %v662_v13, %s4289_s8  ;;  %906 = vrot.lane.b32.xlu1 %v890_v37, %s4289_s8  ;;  %v892_v37 = vmul.f32 %v4877_v28, %v4653_v39  ;;  %v843_v13 = vmul.f32 %v4797_v58, %v4663_v42 }
 0x308   : > { %635 = vrot.lane.b32.xlu0 %v613_v14, %s4286_s4  ;;  %859 = vrot.lane.b32.xlu1 %v841_v12, %s4286_s4  ;;  %v1020_v14 = vmul.f32 %v4914_v55, %v4659_v41  ;;  %v794_v12 = vmul.f32 %v4747_v15, %v4665_v43 }
 0x30c   : > { %808 = vrot.lane.b32.xlu0 %v790_v31, %s4290_s9  ;;  %737 = vrot.lane.b32.xlu1 %v715_v21, %s4287_s14  ;;  %v4928_v31 = vstv %s1069_s27  ;;  %v943_v21 = vmul.f32 %v4905_v19, %v4653_v39  ;;  %v894_v39 = vmul.f32 %v4877_v28, %v4663_v42  ;;  %s1402_s27 = sadd.s32 4, %s4668_s19  ;;  %s1481_s19 = sadd.s32 1, %s4736_s28 }
 0x30d   : > { %s1403_s30 = sld [smem:[#allocation5 + %s1402_s27]] }
 0x30e   : > { %s3910_s28 = sld [smem:[#allocation6 + $0x2]]  ;;  %s3914_s27 = sld [smem:[#allocation6 + $0x81]] }
 0x310   : > { %686 = vrot.lane.b32.xlu0 %v664_v0, %s4289_s8  ;;  %910 = vrot.lane.b32.xlu1 %v892_v37, %s4289_s8  ;;  %v1071_v0 = vmul.f32 %v4928_v31, %v4659_v41  ;;  %v840_v37 = vmul.f32 %v4797_v58, %v4670_v44 }
 0x314   : > { %957 = vrot.lane.b32.xlu0 %v941_v63, %s4287_s14  ;;  %863 = vrot.lane.b32.xlu1 %v843_v13, %s4286_s4  ;;  %v891_v63 = vmul.f32 %v4877_v28, %v4670_v44  ;;  %v945_v13 = vmul.f32 %v4905_v19, %v4663_v42  ;;  %v845_v42 = vmul.f32 %v4797_v58, %v4665_v43 }
 0x318   : > { %812 = vrot.lane.b32.xlu0 %v792_v30, %s4290_s9  ;;  %1036 = vrot.lane.b32.xlu1 %v1020_v14, %s4290_s9  ;;  %v4949_v30 = vstv %s1120_s16  ;;  %v791_v14 = vmul.f32 %v4747_v15, %v4684_v50  ;;  %s1482_s16 = sld [smem:[#allocation5 + %s1481_s19]] }
 0x319   : > { %s3926_s19 = sld [smem:[#allocation6 + $0x183]] }
 0x31c   : > { %806 = vrot.lane.b32.xlu0 %v789_v25, %s4290_s9  ;;  %816 = vrot.lane.b32.xlu1 %v794_v12, %s4290_s9  ;;  %v1122_v25 = vmul.f32 %v4949_v30, %v4659_v41  ;;  %v842_v12 = vmul.f32 %v4797_v58, %v4684_v50 }
 0x320   : > { %961 = vrot.lane.b32.xlu0 %v943_v21, %s4287_s14  ;;  %1087 = vrot.lane.b32.xlu1 %v1071_v0, %s4286_s4  ;;  %v1022_v21 = vmul.f32 %v4914_v55, %v4695_v53  ;;  %v896_v0 = vmul.f32 %v4877_v28, %v4665_v43 }
 0x324   : > { %857 = vrot.lane.b32.xlu0 %v840_v37, %s4286_s4  ;;  %908 = vrot.lane.b32.xlu1 %v891_v63, %s4289_s8  ;;  %v4970_v37 = vstv %s1171_s13  ;;  %v942_v63 = vmul.f32 %v4905_v19, %v4670_v44  ;;  %s1533_s13 = sld [smem:[#allocation5 + %s1532_s7]] }
 0x325   : > { %s3916_s7 = sld [smem:[#allocation6 + $0x83]] }
 0x328   : > { %914 = vrot.lane.b32.xlu0 %v894_v39, %s4289_s8  ;;  %965 = vrot.lane.b32.xlu1 %v945_v13, %s4287_s14  ;;  %v1173_v39 = vmul.f32 %v4970_v37, %v4659_v41 }
 0x32c   : > { %810 = vrot.lane.b32.xlu0 %v791_v14, %s4290_s9  ;;  %1138 = vrot.lane.b32.xlu1 %v1122_v25, %s4289_s8  ;;  %v1073_v25 = vmul.f32 %v4928_v31, %v4695_v53 }
 0x330   : > { %867 = vrot.lane.b32.xlu0 %v845_v42, %s4286_s4  ;;  %861 = vrot.lane.b32.xlu1 %v842_v12, %s4286_s4  ;;  %v793_v42 = vmul.f32 %v4747_v15, %v4703_v59 }
 0x334   : > { %1040 = vrot.lane.b32.xlu0 %v1022_v21, %s4290_s9  ;;  %918 = vrot.lane.b32.xlu1 %v896_v0, %s4289_s8  ;;  %v893_v21 = vmul.f32 %v4877_v28, %v4684_v50  ;;  %v947_v0 = vmul.f32 %v4905_v19, %v4665_v43 }
 0x338   : > { %959 = vrot.lane.b32.xlu0 %v942_v63, %s4287_s14  ;;  %1189 = vrot.lane.b32.xlu1 %v1173_v39, %s4287_s14 }
 0x33a   : > { %v677_v13 = vpop.permute.xlu1 %676  ;;  %v575_v14 = vpop.permute.xlu0 %574 }
 0x33b   : > { %v597_v44 = vadd.f32 %v575_v14, %v4577_v1  ;;  %v1124_v1 = vmul.f32 %v4949_v30, %v4695_v53 }
 0x33c   : > { %1091 = vrot.lane.b32.xlu0 %v1073_v25, %s4286_s4  ;;  %814 = vrot.lane.b32.xlu1 %v793_v42, %s4290_s9  ;;  %v1024_v42 = vmul.f32 %v4914_v55, %v4708_v61 }
 0x33e   : > { %v728_v41 = vpop.permute.xlu1 %727  ;;  %v626_v12 = vpop.permute.xlu0 %625 }
 0x33f   : > { %v648_v63 = vadd.f32 %v626_v12, %v597_v44  ;;  %v844_v12 = vmul.f32 %v4797_v58, %v4703_v59 }
 0x340   : > { %912 = vrot.lane.b32.xlu0 %v893_v21, %s4289_s8  ;;  %969 = vrot.lane.b32.xlu1 %v947_v0, %s4287_s14  ;;  %v944_v21 = vmul.f32 %v4905_v19, %v4684_v50 }
 0x341   : > { %v699_v39 = vadd.f32 %v677_v13, %v648_v63 }
 0x342   : > { %v583_v49 = vpop.permute.xlu1 %582  ;;  %v579_v25 = vpop.permute.xlu0 %578 }
 0x343   : > { %v750_v14 = vadd.f32 %v728_v41, %v699_v39  ;;  %v599_v0 = vadd.f32 %v579_v25, %v4591_v9  ;;  %v601_v9 = vadd.f32 %v583_v49, %v4588_v8  ;;  %v5015_v25 = vstv %s1250_s18  ;;  %s1584_s18 = sld [smem:[#allocation5 + %s1583_s17]] }
 0x344   : > { %1044 = vrot.lane.b32.xlu0 %v1024_v42, %s4290_s9  ;;  %1142 = vrot.lane.b32.xlu1 %v1124_v1, %s4289_s8  ;;  %v1075_v42 = vmul.f32 %v4928_v31, %v4708_v61  ;;  %s3931_s17 = sld [smem:[#allocation6 + $0x203]] }
 0x345   : > { %v4999_v43 = vadd.f32 %v4698_v54, %v750_v14  ;;  %v1021_v54 = vmul.f32 %v4914_v55, %v4716_v2 }
 0x346   : > { %v732_v44 = vpop.permute.xlu1 %731  ;;  %v630_v13 = vpop.permute.xlu0 %629 }
 0x347   : > { %v650_v41 = vadd.f32 %v630_v13, %v599_v0 }
 0x348   : > { %865 = vrot.lane.b32.xlu0 %v844_v12, %s4286_s4  ;;  %963 = vrot.lane.b32.xlu1 %v944_v21, %s4287_s14  ;;  %v1175_v12 = vmul.f32 %v4970_v37, %v4695_v53  ;;  %v1252_v21 = vmul.f32 %v5015_v25, %v4718_v3  ;;  %v895_v53 = vmul.f32 %v4877_v28, %v4703_v59 }
 0x34a   : > { %v685_v63 = vpop.permute.xlu1 %684  ;;  %v681_v39 = vpop.permute.xlu0 %680 }
 0x34b   : > { %v701_v1 = vadd.f32 %v681_v39, %v650_v41  ;;  %v795_v39 = vmul.f32 %v4747_v15, %v4727_v7 }
 0x34c   : > { %1038 = vrot.lane.b32.xlu0 %v1021_v54, %s4290_s9  ;;  %1095 = vrot.lane.b32.xlu1 %v1075_v42, %s4286_s4 }
 0x34d   : > { %v752_v50 = vadd.f32 %v732_v44, %v701_v1 }
 0x34e   : > { %v736_v14 = vpop.permute.xlu1 %735  ;;  %v634_v13 = vpop.permute.xlu0 %633 }
 0x34f   : > { %v652_v0 = vadd.f32 %v634_v13, %v601_v9  ;;  %v5023_v41 = vadd.f32 %v4706_v60, %v752_v50  ;;  %v1026_v9 = vmul.f32 %v4914_v55, %v4733_v11  ;;  %v5043_v50 = vstv %s1301_s0  ;;  %s1635_s0 = sld [smem:[#allocation5 + %s1634_s20]] }
 0x350   : > { %1193 = vrot.lane.b32.xlu0 %v1175_v12, %s4287_s14  ;;  %1268 = vrot.lane.b32.xlu1 %v1252_v21, %s4290_s9  ;;  %v1126_v13 = vmul.f32 %v4949_v30, %v4708_v61  ;;  %v1303_v12 = vmul.f32 %v5043_v50, %v4718_v3  ;;  %s3919_s20 = sld [smem:[#allocation6 + $0x101]] }
 0x351   : > { %v703_v8 = vadd.f32 %v685_v63, %v652_v0  ;;  %v1072_v63 = vmul.f32 %v4928_v31, %v4716_v2 }
 0x352   : > { %v624_v49 = vpop.permute.xlu1 %623  ;;  %v587_v44 = vpop.permute.xlu0 %586 }
 0x353   : > { %v754_v54 = vadd.f32 %v736_v14, %v703_v8  ;;  %v603_v15 = vadd.f32 %v587_v44, %v4625_v26  ;;  %v846_v26 = vmul.f32 %v4797_v58, %v4727_v7  ;;  %v946_v44 = vmul.f32 %v4905_v19, %v4703_v59 }
 0x354   : > { %818 = vrot.lane.b32.xlu0 %v795_v39, %s4290_s9  ;;  %916 = vrot.lane.b32.xlu1 %v895_v53, %s4289_s8  ;;  %v1123_v58 = vmul.f32 %v4949_v30, %v4716_v2 }
 0x355   : > { %v5034_v60 = vadd.f32 %v4721_v4, %v754_v54 }
 0x356   : > { %v675_v42 = vpop.permute.xlu1 %674  ;;  %v638_v1 = vpop.permute.xlu0 %637 }
 0x357   : > { %v654_v21 = vadd.f32 %v638_v1, %v603_v15 }
 0x358   : > { %1089 = vrot.lane.b32.xlu0 %v1072_v63, %s4286_s4  ;;  %1048 = vrot.lane.b32.xlu1 %v1026_v9, %s4290_s9  ;;  %v1023_v9 = vmul.f32 %v4914_v55, %v4749_v16 }
 0x35a   : > { %v726_v14 = vpop.permute.xlu1 %725  ;;  %v689_v4 = vpop.permute.xlu0 %688 }
 0x35b   : > { %v705_v0 = vadd.f32 %v689_v4, %v654_v21 }
 0x35c   : > { %1146 = vrot.lane.b32.xlu0 %v1126_v13, %s4289_s8  ;;  %1319 = vrot.lane.b32.xlu1 %v1303_v12, %s4286_s4  ;;  %v1177_v12 = vmul.f32 %v4970_v37, %v4708_v61 }
 0x35e   : > { %v679_v8 = vpop.permute.xlu1 %678  ;;  %v740_v39 = vpop.permute.xlu0 %739 }
 0x35f   : > { %v756_v53 = vadd.f32 %v740_v39, %v705_v0  ;;  %v5074_v0 = vstv %s1352_s11  ;;  %s3912_s11 = sld [smem:[#allocation6 + $0x4]] }
 0x360   : > { %869 = vrot.lane.b32.xlu0 %v846_v26, %s4286_s4  ;;  %967 = vrot.lane.b32.xlu1 %v946_v44, %s4287_s14  ;;  %v1354_v44 = vmul.f32 %v5074_v0, %v4718_v3 }
 0x361   : > { %v5059_v54 = vadd.f32 %v4752_v17, %v756_v53  ;;  %v1077_v17 = vmul.f32 %v4928_v31, %v4733_v11 }
 0x362   : > { %v632_v1 = vpop.permute.xlu1 %631  ;;  %v573_v63 = vpop.permute.xlu0 %572 }
 0x363   : > { %v596_v59 = vadd.f32 %v573_v63, %v4636_v32 }
 0x364   : > { %1042 = vrot.lane.b32.xlu0 %v1023_v9, %s4290_s9  ;;  %1140 = vrot.lane.b32.xlu1 %v1123_v58, %s4289_s8  ;;  %v897_v9 = vmul.f32 %v4877_v28, %v4727_v7  ;;  %v1074_v58 = vmul.f32 %v4928_v31, %v4749_v16 }
 0x365   : > { %v647_v15 = vadd.f32 %v624_v49, %v596_v59  ;;  %v1254_v49 = vmul.f32 %v5015_v25, %v4758_v20 }
 0x366   : > { %v805_v4 = vpop.permute.xlu1 %804  ;;  %v577_v13 = vpop.permute.xlu0 %576 }
 0x367   : > { %v698_v21 = vadd.f32 %v675_v42, %v647_v15  ;;  %v598_v61 = vadd.f32 %v577_v13, %v4645_v35  ;;  %v1174_v13 = vmul.f32 %v4970_v37, %v4716_v2 }
 0x368   : > { %1099 = vrot.lane.b32.xlu0 %v1077_v17, %s4286_s4  ;;  %1197 = vrot.lane.b32.xlu1 %v1177_v12, %s4287_s14  ;;  %v1128_v17 = vmul.f32 %v4949_v30, %v4733_v11 }
 0x369   : > { %v749_v32 = vadd.f32 %v726_v14, %v698_v21  ;;  %v5098_v21 = vstv %s1403_s30  ;;  %s3927_s30 = sld [smem:[#allocation6 + $0x184]] }
 0x36a   : > { %v585_v39 = vpop.permute.xlu1 %584  ;;  %v628_v26 = vpop.permute.xlu0 %627  ;;  %v1405_v2 = vmul.f32 %v5098_v21, %v4718_v3 }
 0x36b   : > { %v777_v53 = vadd.f32 %v4641_v34, %v749_v32  ;;  %v649_v42 = vadd.f32 %v628_v26, %v598_v61  ;;  %v1305_v26 = vmul.f32 %v5043_v50, %v4758_v20 }
 0x36c   : > { %1272 = vrot.lane.b32.xlu0 %v1254_v49, %s4290_s9  ;;  %1370 = vrot.lane.b32.xlu1 %v1354_v44, %s4289_s8 }
 0x36d   : > { %v700_v35 = vadd.f32 %v679_v8, %v649_v42  ;;  %v948_v42 = vmul.f32 %v4905_v19, %v4727_v7  ;;  %v602_v7 = vadd.f32 %v585_v39, %v4649_v36 }
 0x36e   : > { %v856_v14 = vpop.permute.xlu1 %855  ;;  %v581_v63 = vpop.permute.xlu0 %580 }
 0x36f   : > { %v600_v34 = vadd.f32 %v581_v63, %v4657_v40 }
 0x370   : > { %920 = vrot.lane.b32.xlu0 %v897_v9, %s4289_s8  ;;  %1093 = vrot.lane.b32.xlu1 %v1074_v58, %s4286_s4  ;;  %v1125_v58 = vmul.f32 %v4949_v30, %v4749_v16 }
 0x371   : > { %v651_v28 = vadd.f32 %v632_v1, %v600_v34  ;;  %v1179_v34 = vmul.f32 %v4970_v37, %v4733_v11 }
 0x372   : > { %v734_v59 = vpop.permute.xlu1 %733  ;;  %v730_v15 = vpop.permute.xlu0 %729 }
 0x373   : > { %v751_v12 = vadd.f32 %v730_v15, %v700_v35  ;;  %v828_v35 = vadd.f32 %v805_v4, %v777_v53  ;;  %v6585_v15 = vld [vmem:[#allocation23_spill] sm:$0xff]  ;;  %v1076_v53 = vmul.f32 %v4928_v31, %v4767_v22 }
 0x374   : > { %1191 = vrot.lane.b32.xlu0 %v1174_v13, %s4287_s14  ;;  %1150 = vrot.lane.b32.xlu1 %v1128_v17, %s4289_s8  ;;  %v1256_v13 = vmul.f32 %v5015_v25, %v6585_v15  ;;  %v1356_v17 = vmul.f32 %v5074_v0, %v4758_v20 }
 0x375   : > { %v779_v32 = vadd.f32 %v4673_v45, %v751_v12  ;;  %v1025_v45 = vmul.f32 %v4914_v55, %v4767_v22  ;;  %v879_v12 = vadd.f32 %v856_v14, %v828_v35 }
 0x376   : > { %v907_v40 = vpop.permute.xlu1 %906  ;;  %v683_v8 = vpop.permute.xlu0 %682 }
 0x377   : > { %v702_v49 = vadd.f32 %v683_v8, %v651_v28  ;;  %v930_v36 = vadd.f32 %v907_v40, %v879_v12  ;;  %v1176_v8 = vmul.f32 %v4970_v37, %v4749_v16  ;;  %v6587_v40 = vld [vmem:[#allocation14_spill] sm:$0xff] }
 0x378   : > { %1323 = vrot.lane.b32.xlu0 %v1305_v26, %s4286_s4  ;;  %1421 = vrot.lane.b32.xlu1 %v1405_v2, %s4287_s14  ;;  %v6586_v2 = vld [vmem:[#allocation15_spill] sm:$0xff] }
 0x379   : > { %v753_v44 = vadd.f32 %v734_v59, %v702_v49 }
 0x37a   : > { %v860_v61 = vpop.permute.xlu1 %859  ;;  %v636_v1 = vpop.permute.xlu0 %635 }
 0x37b   : > { %v781_v63 = vadd.f32 %v4687_v51, %v753_v44  ;;  %v653_v51 = vadd.f32 %v636_v1, %v602_v7  ;;  %v1407_v7 = vmul.f32 %v5098_v21, %v4758_v20 }
 0x37c   : > { %971 = vrot.lane.b32.xlu0 %v948_v42, %s4287_s14  ;;  %1046 = vrot.lane.b32.xlu1 %v1025_v45, %s4290_s9  ;;  %v1307_v45 = vmul.f32 %v5043_v50, %v6585_v15 }
 0x37e   : > { %v738_v3 = vpop.permute.xlu1 %737  ;;  %v809_v9 = vpop.permute.xlu0 %808 }
 0x37f   : > { %v830_v14 = vadd.f32 %v809_v9, %v779_v32 }
 0x380   : > { %1144 = vrot.lane.b32.xlu0 %v1125_v58, %s4289_s8  ;;  %1201 = vrot.lane.b32.xlu1 %v1179_v34, %s4287_s14  ;;  %v5144_v34 = vstv %s1482_s16  ;;  %s3915_s16 = sld [smem:[#allocation6 + $0x82]] }
 0x381   : > { %v881_v58 = vadd.f32 %v860_v61, %v830_v14  ;;  %v1484_v9 = vmul.f32 %v5144_v34, %v4791_v47  ;;  %v1358_v14 = vmul.f32 %v5074_v0, %v6585_v15 }
 0x382   : > { %v911_v19 = vpop.permute.xlu1 %910  ;;  %v687_v59 = vpop.permute.xlu0 %686 }
 0x383   : > { %v704_v28 = vadd.f32 %v687_v59, %v653_v51  ;;  %v932_v51 = vadd.f32 %v911_v19, %v881_v58  ;;  %v1078_v58 = vmul.f32 %v4928_v31, %v4801_v5 }
 0x384   : > { %1276 = vrot.lane.b32.xlu0 %v1256_v13, %s4290_s9  ;;  %1374 = vrot.lane.b32.xlu1 %v1356_v17, %s4289_s8  ;;  %v1127_v13 = vmul.f32 %v4949_v30, %v4767_v22  ;;  %v1027_v17 = vmul.f32 %v4914_v55, %v4801_v5 }
 0x385   : > { %v755_v11 = vadd.f32 %v738_v3, %v704_v28  ;;  %v6588_v3 = vld [vmem:[#allocation24_spill] sm:$0xff] }
 0x386   : > { %v864_v4 = vpop.permute.xlu1 %863  ;;  %v958_v39 = vpop.permute.xlu0 %957  ;;  %v1253_v16 = vmul.f32 %v5015_v25, %v6588_v3  ;;  %v6589_v28 = vld [vmem:[#allocation16_spill] sm:$0xff] }
 0x387   : > { %v981_v26 = vadd.f32 %v958_v39, %v930_v36  ;;  %v5133_v49 = vadd.f32 %v6586_v2, %v755_v11  ;;  %v1258_v39 = vmul.f32 %v5015_v25, %v4803_v6 }
 0x388   : > { %1097 = vrot.lane.b32.xlu0 %v1076_v53, %s4286_s4  ;;  %1195 = vrot.lane.b32.xlu1 %v1176_v8, %s4287_s14  ;;  %v1304_v53 = vmul.f32 %v5043_v50, %v6588_v3  ;;  %v5170_v8 = vstv %s1533_s13  ;;  %s3917_s13 = sld [smem:[#allocation6 + $0x84]] }
 0x389   : > { %v1009_v44 = vadd.f32 %v6587_v40, %v981_v26  ;;  %v1535_v2 = vmul.f32 %v5170_v8, %v4791_v47 }
 0x38a   : > { %v1037_v1 = vpop.permute.xlu1 %1036  ;;  %v813_v42 = vpop.permute.xlu0 %812 }
 0x38b   : > { %v832_v20 = vadd.f32 %v813_v42, %v781_v63  ;;  %v1060_v31 = vadd.f32 %v1037_v1, %v1009_v44 }
 0x38c   : > { %1327 = vrot.lane.b32.xlu1 %v1307_v45, %s4286_s4  ;;  %1270 = vrot.lane.b32.xlu0 %v1253_v16, %s4290_s9 }
 0x38d   : > { %v883_v55 = vadd.f32 %v864_v4, %v832_v20  ;;  %v1178_v4 = vmul.f32 %v4970_v37, %v4767_v22  ;;  %v1255_v22 = vmul.f32 %v5015_v25, %v4805_v18 }
 0x38e   : > { %v5146_v35 = vpop.permute.xlu1 %816  ;;  %v807_v32 = vpop.permute.xlu0 %806 }
 0x390   : > { %1500 = vrot.lane.b32.xlu1 %v1484_v9, %s4290_s9  ;;  %1425 = vrot.lane.b32.xlu0 %v1407_v7, %s4287_s14  ;;  %v6590_v9 = vld [vmem:[#allocation17_spill] sm:$0xff] }
 0x392   : > { %v1088_v59 = vpop.permute.xlu1 %1087  ;;  %v962_v61 = vpop.permute.xlu0 %961 }
 0x393   : > { %v983_v12 = vadd.f32 %v962_v61, %v932_v51 }
 0x394   : > { %1148 = vrot.lane.b32.xlu1 %v1127_v13, %s4289_s8  ;;  %1050 = vrot.lane.b32.xlu0 %v1027_v17, %s4290_s9  ;;  %v1355_v13 = vmul.f32 %v5074_v0, %v6588_v3  ;;  %v829_v17 = vadd.f32 %v807_v32, %v4999_v43 }
 0x395   : > { %v5162_v36 = vadd.f32 %v6589_v28, %v983_v12 }
 0x396   : > { %v909_v11 = vpop.permute.xlu1 %908  ;;  %v858_v19 = vpop.permute.xlu0 %857 }
 0x397   : > { %v880_v12 = vadd.f32 %v858_v19, %v829_v17  ;;  %v1360_v17 = vmul.f32 %v5074_v0, %v4803_v6 }
 0x398   : > { %1280 = vrot.lane.b32.xlu1 %v1258_v39, %s4290_s9  ;;  %1321 = vrot.lane.b32.xlu0 %v1304_v53, %s4286_s4  ;;  %v1409_v39 = vmul.f32 %v5098_v21, %v6585_v15  ;;  %v1309_v53 = vmul.f32 %v5043_v50, %v4803_v6  ;;  %v1486_v15 = vmul.f32 %v5144_v34, %v4793_v48 }
 0x399   : > { %v931_v32 = vadd.f32 %v909_v11, %v880_v12  ;;  %v6591_v11 = vld [vmem:[#allocation18_spill] sm:$0xff] }
 0x39a   : > { %v966_v63 = vpop.permute.xlu1 %965  ;;  %v915_v26 = vpop.permute.xlu0 %914 }
 0x39b   : > { %v934_v40 = vadd.f32 %v915_v26, %v883_v55  ;;  %v1111_v55 = vadd.f32 %v1088_v59, %v1060_v31  ;;  %v834_v59 = vadd.f32 %v5146_v35, %v5133_v49  ;;  %v1406_v31 = vmul.f32 %v5098_v21, %v6588_v3 }
 0x39c   : > { %1551 = vrot.lane.b32.xlu1 %v1535_v2, %s4286_s4  ;;  %1378 = vrot.lane.b32.xlu0 %v1358_v14, %s4289_s8  ;;  %v1537_v3 = vmul.f32 %v5170_v8, %v4793_v48 }
 0x39d   : > { %v985_v42 = vadd.f32 %v966_v63, %v934_v40  ;;  %v5201_v63 = vstv %s1584_s18  ;;  %v6592_v40 = vld [vmem:[#allocation19_spill] sm:$0xff]  ;;  %s3932_s18 = sld [smem:[#allocation6 + $0x204]] }
 0x39e   : > { %v1139_v45 = vpop.permute.xlu1 %1138  ;;  %v811_v16 = vpop.permute.xlu0 %810  ;;  %v1586_v19 = vmul.f32 %v5201_v63, %v4791_v47 }
 0x39f   : > { %v5184_v7 = vadd.f32 %v6590_v9, %v985_v42  ;;  %v1162_v43 = vadd.f32 %v1139_v45, %v1111_v55  ;;  %v1129_v9 = vmul.f32 %v4949_v30, %v4801_v5  ;;  %v831_v30 = vadd.f32 %v811_v16, %v5023_v41 }
 0x3a0   : > { %1199 = vrot.lane.b32.xlu1 %v1178_v4, %s4287_s14  ;;  %1101 = vrot.lane.b32.xlu0 %v1078_v58, %s4286_s4  ;;  %v1306_v58 = vmul.f32 %v5043_v50, %v4805_v18 }
 0x3a2   : > { %v862_v51 = vpop.permute.xlu1 %861  ;;  %v868_v61 = vpop.permute.xlu0 %867 }
 0x3a4   : > { %1372 = vrot.lane.b32.xlu1 %v1355_v13, %s4289_s8  ;;  %1274 = vrot.lane.b32.xlu0 %v1255_v22, %s4290_s9  ;;  %v885_v13 = vadd.f32 %v868_v61, %v834_v59  ;;  %v5233_v61 = vstv %s1635_s0  ;;  %s3920_s0 = sld [smem:[#allocation6 + $0x102]] }
 0x3a6   : > { %v919_v20 = vpop.permute.xlu1 %918  ;;  %v1041_v28 = vpop.permute.xlu0 %1040 }
 0x3a7   : > { %v936_v49 = vadd.f32 %v919_v20, %v885_v13 }
 0x3a8   : > { %1429 = vrot.lane.b32.xlu1 %v1409_v39, %s4287_s14  ;;  %1331 = vrot.lane.b32.xlu0 %v1309_v53, %s4286_s4  ;;  %v6593_v39 = vld [vmem:[#allocation20_spill] sm:$0xff] }
 0x3aa   : > { %v1190_v44 = vpop.permute.xlu1 %1189  ;;  %v960_v1 = vpop.permute.xlu0 %959 }
 0x3ab   : > { %v1213_v26 = vadd.f32 %v1190_v44, %v1162_v43  ;;  %v982_v2 = vadd.f32 %v960_v1, %v931_v32  ;;  %v1637_v43 = vmul.f32 %v5233_v61, %v4791_v47  ;;  %v882_v32 = vadd.f32 %v862_v51, %v831_v30  ;;  %v6594_v51 = vld [vmem:[#allocation21_spill] sm:$0xff] }
 0x3ac   : > { %1602 = vrot.lane.b32.xlu1 %v1586_v19, %s4289_s8  ;;  %1504 = vrot.lane.b32.xlu0 %v1486_v15, %s4290_s9  ;;  %v1257_v1 = vmul.f32 %v5015_v25, %v4814_v38  ;;  %v1180_v19 = vmul.f32 %v4970_v37, %v4801_v5  ;;  %v1062_v47 = vadd.f32 %v1041_v28, %v5162_v36 }
 0x3ad   : > { %v5213_v14 = vadd.f32 %v6591_v11, %v982_v2  ;;  %v5216_v42 = vadd.f32 %v6592_v40, %v1213_v26  ;;  %v1411_v11 = vmul.f32 %v5098_v21, %v4803_v6  ;;  %v1357_v40 = vmul.f32 %v5074_v0, %v4805_v18  ;;  %v6595_v6 = vld [vmem:[#allocation22_spill] sm:$0xff] }
 0x3ae   : > { %v5218_v45 = vpop.permute.xlu1 %814  ;;  %v1092_v4 = vpop.permute.xlu0 %1091  ;;  %v1588_v28 = vmul.f32 %v5201_v63, %v4793_v48  ;;  %v1539_v30 = vmul.f32 %v5170_v8, %v4816_v24 }
 0x3af   : > { %v1113_v5 = vadd.f32 %v1092_v4, %v1062_v47 }
 0x3b0   : > { %1325 = vrot.lane.b32.xlu1 %v1306_v58, %s4286_s4  ;;  %1152 = vrot.lane.b32.xlu0 %v1129_v9, %s4289_s8  ;;  %v1488_v9 = vmul.f32 %v5144_v34, %v4816_v24 }
 0x3b2   : > { %v970_v35 = vpop.permute.xlu1 %969  ;;  %v913_v22 = vpop.permute.xlu0 %912 }
 0x3b3   : > { %v987_v12 = vadd.f32 %v970_v35, %v936_v49  ;;  %v933_v44 = vadd.f32 %v913_v22, %v882_v32  ;;  %v1408_v22 = vmul.f32 %v5098_v21, %v4805_v18  ;;  %v833_v18 = vadd.f32 %v5218_v45, %v5034_v60 }
 0x3b4   : > { %1382 = vrot.lane.b32.xlu1 %v1360_v17, %s4289_s8  ;;  %1423 = vrot.lane.b32.xlu0 %v1406_v31, %s4287_s14  ;;  %v1308_v17 = vmul.f32 %v5043_v50, %v4814_v38  ;;  %v1639_v32 = vmul.f32 %v5233_v61, %v4793_v48  ;;  %v1359_v60 = vmul.f32 %v5074_v0, %v4814_v38 }
 0x3b5   : > { %v5236_v53 = vadd.f32 %v6593_v39, %v987_v12  ;;  %v1485_v39 = vmul.f32 %v5144_v34, %v4795_v57 }
 0x3b6   : > { %v1143_v20 = vpop.permute.xlu1 %1142  ;;  %v1045_v55 = vpop.permute.xlu0 %1044 }
 0x3b7   : > { %v1164_v37 = vadd.f32 %v1143_v20, %v1113_v5  ;;  %v1064_v48 = vadd.f32 %v1045_v55, %v5184_v7  ;;  %v1410_v55 = vmul.f32 %v5098_v21, %v4814_v38  ;;  %v1487_v38 = vmul.f32 %v5144_v34, %v4818_v23 }
 0x3b8   : > { %1653 = vrot.lane.b32.xlu1 %v1637_v43, %s4287_s14  ;;  %1555 = vrot.lane.b32.xlu0 %v1537_v3, %s4286_s4  ;;  %v1259_v3 = vmul.f32 %v5015_v25, %v4827_v56  ;;  %v6596_v25 = vld [vmem:[#allocation25_spill] sm:$0xff] }
 0x3ba   : > { %v964_v41 = vpop.permute.xlu1 %963  ;;  %v866_v16 = vpop.permute.xlu0 %865 }
 0x3bb   : > { %v984_v15 = vadd.f32 %v964_v41, %v933_v44  ;;  %v884_v44 = vadd.f32 %v866_v16, %v833_v18  ;;  %v1541_v18 = vmul.f32 %v5170_v8, %v4829_v10 }
 0x3bc   : > { %1278 = vrot.lane.b32.xlu1 %v1257_v1, %s4290_s9  ;;  %1203 = vrot.lane.b32.xlu0 %v1180_v19, %s4287_s14 }
 0x3bd   : > { %v5252_v26 = vadd.f32 %v6594_v51, %v984_v15  ;;  %v1536_v15 = vmul.f32 %v5170_v8, %v4795_v57 }
 0x3be   : > { %v1096_v2 = vpop.permute.xlu1 %1095  ;;  %v5254_v59 = vpop.permute.xlu0 %1038 }
 0x3bf   : > { %v1115_v5 = vadd.f32 %v1096_v2, %v1064_v48  ;;  %v1592_v48 = vmul.f32 %v5201_v63, %v4829_v10 }
 0x3c0   : > { %1433 = vrot.lane.b32.xlu1 %v1411_v11, %s4287_s14  ;;  %1376 = vrot.lane.b32.xlu0 %v1357_v40, %s4289_s8  ;;  %v1590_v11 = vmul.f32 %v5201_v63, %v4816_v24  ;;  %v1490_v40 = vmul.f32 %v5144_v34, %v4829_v10 }
 0x3c2   : > { %v5262_v58 = vpop.permute.xlu1 %1268  ;;  %v1194_v36 = vpop.permute.xlu0 %1193 }
 0x3c3   : > { %v1215_v13 = vadd.f32 %v1194_v36, %v1164_v37 }
 0x3c4   : > { %1606 = vrot.lane.b32.xlu1 %v1588_v28, %s4289_s8  ;;  %1508 = vrot.lane.b32.xlu0 %v1488_v9, %s4290_s9  ;;  %v1310_v28 = vmul.f32 %v5043_v50, %v4827_v56  ;;  %v1061_v50 = vadd.f32 %v5254_v59, %v5213_v14  ;;  %v1538_v14 = vmul.f32 %v5170_v8, %v4818_v23 }
 0x3c5   : > { %v5271_v4 = vadd.f32 %v6595_v6, %v1215_v13  ;;  %v6597_v13 = vld [vmem:[#allocation26_spill] sm:$0xff] }
 0x3c6   : > { %v917_v49 = vpop.permute.xlu1 %916  ;;  %v5273_v35 = vpop.permute.xlu0 %818 }
 0x3c7   : > { %v935_v41 = vadd.f32 %v917_v49, %v884_v44 }
 0x3c8   : > { %1427 = vrot.lane.b32.xlu1 %v1408_v22, %s4287_s14  ;;  %1329 = vrot.lane.b32.xlu0 %v1308_v17, %s4286_s4  ;;  %v1587_v22 = vmul.f32 %v5201_v63, %v4795_v57 }
 0x3ca   : > { %v5281_v31 = vpop.permute.xlu1 %1048  ;;  %v1090_v12 = vpop.permute.xlu0 %1089 }
 0x3cc   : > { %1559 = vrot.lane.b32.xlu1 %v1539_v30, %s4286_s4  ;;  %1502 = vrot.lane.b32.xlu0 %v1485_v39, %s4290_s9  ;;  %v1641_v39 = vmul.f32 %v5233_v61, %v4816_v24  ;;  %v1361_v24 = vmul.f32 %v5074_v0, %v4827_v56  ;;  %v1638_v0 = vmul.f32 %v5233_v61, %v4795_v57 }
 0x3cd   : > { %v1412_v57 = vmul.f32 %v5098_v21, %v4827_v56  ;;  %v6600_v21 = vld [vmem:[#allocation29_spill] sm:$0xff] }
 0x3ce   : > { %v1320_v20 = vpop.permute.xlu1 %1319  ;;  %v1147_v43 = vpop.permute.xlu0 %1146 }
 0x3cf   : > { %v1166_v37 = vadd.f32 %v1147_v43, %v1115_v5  ;;  %v1112_v43 = vadd.f32 %v1090_v12, %v1061_v50  ;;  %v835_v12 = vadd.f32 %v5273_v35, %v5059_v54  ;;  %v1066_v54 = vadd.f32 %v5281_v31, %v5236_v53 }
 0x3d0   : > { %1282 = vrot.lane.b32.xlu1 %v1259_v3, %s4290_s9  ;;  %1657 = vrot.lane.b32.xlu0 %v1639_v32, %s4287_s14  ;;  %v1292_v3 = vadd.f32 %v5262_v58, %v5216_v42  ;;  %v6598_v42 = vld [vmem:[#allocation27_spill] sm:$0xff] }
 0x3d2   : > { %v968_v1 = vpop.permute.xlu1 %967  ;;  %v870_v19 = vpop.permute.xlu0 %869  ;;  %v1343_v59 = vadd.f32 %v1320_v20, %v1292_v3 }
 0x3d3   : > { %v986_v45 = vadd.f32 %v968_v1, %v935_v41  ;;  %v886_v20 = vadd.f32 %v870_v19, %v835_v12 }
 0x3d4   : > { %1553 = vrot.lane.b32.xlu1 %v1536_v15, %s4286_s4  ;;  %1380 = vrot.lane.b32.xlu0 %v1359_v60, %s4289_s8 }
 0x3d5   : > { %v5305_v16 = vadd.f32 %v6596_v25, %v986_v45 }
 0x3d6   : > { %v1141_v47 = vpop.permute.xlu1 %1140  ;;  %v5307_v51 = vpop.permute.xlu0 %1042 }
 0x3d7   : > { %v1163_v32 = vadd.f32 %v1141_v47, %v1112_v43  ;;  %v6599_v47 = vld [vmem:[#allocation28_spill] sm:$0xff]  ;;  %v1063_v56 = vadd.f32 %v5307_v51, %v5252_v26  ;;  %v4153_v26 = vld [vmem:[#allocation2 + $0x3c] sm:$0xff] }
 0x3d8   : > { %1610 = vrot.lane.b32.xlu1 %v1590_v11, %s4289_s8  ;;  %1512 = vrot.lane.b32.xlu0 %v1490_v40, %s4290_s9  ;;  %v1591_v51 = vmul.f32 %v4153_v26, %v5201_v63  ;;  %v4154_v43 = vld [vmem:[#allocation2 + $0x54] sm:$0xff] }
 0x3d9   : > { %v1491_v3 = vmul.f32 %v4154_v43, %v5144_v34 }
 0x3da   : > { %v1198_v36 = vpop.permute.xlu1 %1197  ;;  %v1100_v7 = vpop.permute.xlu0 %1099 }
 0x3db   : > { %v1217_v9 = vadd.f32 %v1198_v36, %v1166_v37  ;;  %v1489_v37 = vmul.f32 %v5144_v34, %v4831_v62  ;;  %v1117_v19 = vadd.f32 %v1100_v7, %v1066_v54 }
 0x3dc   : > { %1431 = vrot.lane.b32.xlu1 %v1410_v55, %s4287_s14  ;;  %1333 = vrot.lane.b32.xlu0 %v1310_v28, %s4286_s4 }
 0x3dd   : > { %v5322_v2 = vadd.f32 %v6597_v13, %v1217_v9  ;;  %v1643_v9 = vmul.f32 %v5233_v61, %v4829_v10  ;;  %v1589_v13 = vmul.f32 %v5201_v63, %v4818_v23  ;;  %v1540_v10 = vmul.f32 %v5170_v8, %v4831_v62 }
 0x3de   : > { %v1371_v6 = vpop.permute.xlu1 %1370  ;;  %v5324_v49 = vpop.permute.xlu0 %1272 }
 0x3df   : > { %v1394_v15 = vadd.f32 %v1371_v6, %v1343_v59  ;;  %v1294_v62 = vadd.f32 %v5324_v49, %v5271_v4  ;;  %v1542_v59 = vmul.f32 %v4154_v43, %v5170_v8  ;;  %v1644_v4 = vmul.f32 %v4154_v43, %v5233_v61 }
 0x3e0   : > { %1604 = vrot.lane.b32.xlu1 %v1587_v22, %s4289_s8  ;;  %1506 = vrot.lane.b32.xlu0 %v1487_v38, %s4290_s9  ;;  %v4152_v38 = vld [vmem:[#allocation2 + $0x24] sm:$0xff]  ;;  %v1593_v49 = vmul.f32 %v4154_v43, %v5201_v63 }
 0x3e1   : > { %v1640_v50 = vmul.f32 %v4152_v38, %v5233_v61 }
 0x3e2   : > { %v1094_v17 = vpop.permute.xlu1 %1093  ;;  %v921_v30 = vpop.permute.xlu0 %920 }
 0x3e3   : > { %v937_v35 = vadd.f32 %v921_v30, %v886_v20  ;;  %v1114_v23 = vadd.f32 %v1094_v17, %v1063_v56  ;;  %v6601_v17 = vld [vmem:[#allocation30_spill] sm:$0xff] }
 0x3e4   : > { %1661 = vrot.lane.b32.xlu1 %v1641_v39, %s4287_s14  ;;  %1563 = vrot.lane.b32.xlu0 %v1541_v18, %s4286_s4 }
 0x3e6   : > { %v1151_v44 = vpop.permute.xlu1 %1150  ;;  %v1192_v41 = vpop.permute.xlu0 %1191 }
 0x3e7   : > { %v1214_v1 = vadd.f32 %v1192_v41, %v1163_v32  ;;  %v1168_v55 = vadd.f32 %v1151_v44, %v1117_v19  ;;  %v6603_v19 = vld [vmem:[#allocation32_spill] sm:$0xff] }
 0x3e8   : > { %1557 = vrot.lane.b32.xlu1 %v1538_v14, %s4286_s4  ;;  %1384 = vrot.lane.b32.xlu0 %v1361_v24, %s4289_s8  ;;  %v1642_v24 = vmul.f32 %v4153_v26, %v5233_v61 }
 0x3e9   : > { %v5351_v58 = vadd.f32 %v6598_v42, %v1214_v1 }
 0x3ea   : > { %v1422_v60 = vpop.permute.xlu1 %1421  ;;  %v1324_v45 = vpop.permute.xlu0 %1323 }
 0x3eb   : > { %v1445_v25 = vadd.f32 %v1422_v60, %v1394_v15  ;;  %v1345_v1 = vadd.f32 %v1324_v45, %v1294_v62  ;;  %v6602_v60 = vld [vmem:[#allocation31_spill] sm:$0xff] }
 0x3ec   : > { %1614 = vrot.lane.b32.xlu1 %v1592_v48, %s4289_s8  ;;  %1655 = vrot.lane.b32.xlu0 %v1638_v0, %s4287_s14 }
 0x3ed   : > { %v5362_v11 = vadd.f32 %v6599_v47, %v1445_v25 }
 0x3ee   : > { %v1047_v40 = vpop.permute.xlu1 %1046  ;;  %v972_v5 = vpop.permute.xlu0 %971 }
 0x3ef   : > { %v988_v36 = vadd.f32 %v972_v5, %v937_v35  ;;  %v1065_v25 = vadd.f32 %v1047_v40, %v5305_v16 }
 0x3f0   : > { %1510 = vrot.lane.b32.xlu1 %v1489_v37, %s4290_s9  ;;  %1435 = vrot.lane.b32.xlu0 %v1412_v57, %s4287_s14 }
 0x3f1   : > { %v5371_v53 = vadd.f32 %v4840_v29, %v988_v36 }
 0x3f2   : > { %v1202_v31 = vpop.permute.xlu1 %1201  ;;  %v1145_v28 = vpop.permute.xlu0 %1144 }
 0x3f3   : > { %v1219_v6 = vadd.f32 %v1202_v31, %v1168_v55  ;;  %v1165_v30 = vadd.f32 %v1145_v28, %v1114_v23 }
 0x3f4   : > { %1665 = vrot.lane.b32.xlu1 %v1643_v9, %s4287_s14  ;;  %1608 = vrot.lane.b32.xlu0 %v1589_v13, %s4289_s8 }
 0x3f5   : > { %v5382_v7 = vadd.f32 %v6600_v21, %v1219_v6 }
 0x3f6   : > { %v1375_v29 = vpop.permute.xlu1 %1374  ;;  %v1277_v22 = vpop.permute.xlu0 %1276 }
 0x3f7   : > { %v1396_v34 = vadd.f32 %v1375_v29, %v1345_v1  ;;  %v1296_v57 = vadd.f32 %v1277_v22, %v5322_v2 }
 0x3f8   : > { %1659 = vrot.lane.b32.xlu1 %v1640_v50, %s4287_s14  ;;  %1561 = vrot.lane.b32.xlu0 %v1540_v10, %s4286_s4 }
 0x3fa   : > { %v1196_v39 = vpop.permute.xlu1 %1195  ;;  %v1098_v18 = vpop.permute.xlu0 %1097 }
 0x3fb   : > { %v1216_v32 = vadd.f32 %v1196_v39, %v1165_v30  ;;  %v1116_v61 = vadd.f32 %v1098_v18, %v1065_v25  ;;  %v6604_v18 = vld [vmem:[#allocation33_spill] sm:$0xff] }
 0x3fc   : > { %1612 = vrot.lane.b32.xlu1 %v1591_v51, %s4289_s8  ;;  %1514 = vrot.lane.b32.xlu0 %v1491_v3, %s4290_s9 }
 0x3fd   : > { %v5396_v44 = vadd.f32 %v6601_v17, %v1216_v32 }
 0x3fe   : > { %v1328_v41 = vpop.permute.xlu1 %1327  ;;  %v1271_v14 = vpop.permute.xlu0 %1270 }
 0x3ff   : > { %v1347_v28 = vadd.f32 %v1328_v41, %v1296_v57  ;;  %v1293_v29 = vadd.f32 %v1271_v14, %v5351_v58 }
 0x400   : > { %1663 = vrot.lane.b32.xlu1 %v1642_v24, %s4287_s14  ;;  %1565 = vrot.lane.b32.xlu0 %v1542_v59, %s4286_s4 }
 0x402   : > { %v5402_v12 = vpop.permute.xlu1 %1500  ;;  %v1426_v15 = vpop.permute.xlu0 %1425 }
 0x403   : > { %v1447_v42 = vadd.f32 %v1426_v15, %v1396_v34  ;;  %v6605_v15 = vld [vmem:[#allocation34_spill] sm:$0xff] }
 0x404   : > { %1667 = vrot.lane.b32.xlu1 %v1644_v4, %s4287_s14  ;;  %1616 = vrot.lane.b32.xlu0 %v1593_v49, %s4289_s8 }
 0x405   : > { %v5409_v8 = vadd.f32 %v6602_v60, %v1447_v42 }
 0x406   : > { %v1149_v45 = vpop.permute.xlu1 %1148  ;;  %v1051_v48 = vpop.permute.xlu0 %1050 }
 0x407   : > { %v1167_v47 = vadd.f32 %v1149_v45, %v1116_v61  ;;  %v1067_v39 = vadd.f32 %v1051_v48, %v5371_v53 }
 0x40a   : > { %v1281_v0 = vpop.permute.xlu1 %1280  ;;  %v1322_v20 = vpop.permute.xlu0 %1321 }
 0x40b   : > { %v1344_v22 = vadd.f32 %v1322_v20, %v1293_v29  ;;  %v1298_v3 = vadd.f32 %v1281_v0, %v5382_v7 }
 0x40e   : > { %v5412_v54 = vpop.permute.xlu1 %1551  ;;  %v1379_v35 = vpop.permute.xlu0 %1378 }
 0x40f   : > { %v1398_v9 = vadd.f32 %v1379_v35, %v1347_v28 }
 0x412   : > { %v1200_v63 = vpop.permute.xlu1 %1199  ;;  %v1102_v5 = vpop.permute.xlu0 %1101 }
 0x413   : > { %v1218_v37 = vadd.f32 %v1200_v63, %v1167_v47  ;;  %v1118_v43 = vadd.f32 %v1102_v5, %v1067_v39 }
 0x415   : > { %v1246_v36 = vadd.f32 %v6603_v19, %v1218_v37 }
 0x416   : > { %v1373_v55 = vpop.permute.xlu1 %1372  ;;  %v1275_v31 = vpop.permute.xlu0 %1274 }
 0x417   : > { %v1395_v50 = vadd.f32 %v1373_v55, %v1344_v22  ;;  %v1295_v34 = vadd.f32 %v1275_v31, %v5396_v44 }
 0x41a   : > { %v1430_v13 = vpop.permute.xlu1 %1429  ;;  %v1332_v6 = vpop.permute.xlu0 %1331 }
 0x41b   : > { %v1449_v56 = vadd.f32 %v1430_v13, %v1398_v9  ;;  %v1349_v17 = vadd.f32 %v1332_v6, %v1298_v3 }
 0x41d   : > { %v5417_v16 = vadd.f32 %v4855_v27, %v1449_v56 }
 0x41e   : > { %v5419_v40 = vpop.permute.xlu1 %1602  ;;  %v5421_v21 = vpop.permute.xlu0 %1504 }
 0x422   : > { %v1326_v38 = vpop.permute.xlu1 %1325  ;;  %v1153_v2 = vpop.permute.xlu0 %1152 }
 0x423   : > { %v1169_v32 = vadd.f32 %v1153_v2, %v1118_v43  ;;  %v1346_v7 = vadd.f32 %v1326_v38, %v1295_v34 }
 0x426   : > { %v1383_v10 = vpop.permute.xlu1 %1382  ;;  %v1424_v23 = vpop.permute.xlu0 %1423 }
 0x427   : > { %v1446_v30 = vadd.f32 %v1424_v23, %v1395_v50  ;;  %v1400_v14 = vadd.f32 %v1383_v10, %v1349_v17 }
 0x429   : > { %v1474_v26 = vadd.f32 %v6604_v18, %v1446_v30 }
 0x42a   : > { %v5426_v51 = vpop.permute.xlu1 %1653  ;;  %v5428_v27 = vpop.permute.xlu0 %1555 }
 0x42e   : > { %v1279_v58 = vpop.permute.xlu1 %1278  ;;  %v1204_v62 = vpop.permute.xlu0 %1203 }
 0x42f   : > { %v1220_v41 = vadd.f32 %v1204_v62, %v1169_v32  ;;  %v1297_v63 = vadd.f32 %v1279_v58, %v1246_v36  ;;  %v6606_v58 = vld [vmem:[#allocation35_spill] sm:$0xff] }
 0x431   : > { %v1248_v24 = vadd.f32 %v4861_v46, %v1220_v41 }
 0x432   : > { %v1434_v59 = vpop.permute.xlu1 %1433  ;;  %v1377_v1 = vpop.permute.xlu0 %1376 }
 0x433   : > { %v1451_v53 = vadd.f32 %v1434_v59, %v1400_v14  ;;  %v1397_v60 = vadd.f32 %v1377_v1, %v1346_v7 }
 0x435   : > { %v5434_v4 = vadd.f32 %v6605_v15, %v1451_v53 }
 0x436   : > { %v5436_v49 = vpop.permute.xlu1 %1606  ;;  %v5438_v42 = vpop.permute.xlu0 %1508 }
 0x43a   : > { %v1428_v45 = vpop.permute.xlu1 %1427  ;;  %v1330_v48 = vpop.permute.xlu0 %1329 }
 0x43b   : > { %v1448_v0 = vadd.f32 %v1428_v45, %v1397_v60  ;;  %v1348_v57 = vadd.f32 %v1330_v48, %v1297_v63  ;;  %v1524_v60 = vadd.f32 %v5402_v12, %v5362_v11 }
 0x43d   : > { %v1476_v20 = vadd.f32 %v4867_v52, %v1448_v0 }
 0x43e   : > { %v1560_v46 = vpop.permute.xlu1 %1559  ;;  %v1503_v25 = vpop.permute.xlu0 %1502 }
 0x43f   : > { %v1525_v29 = vadd.f32 %v1503_v25, %v1474_v26 }
 0x442   : > { %v1283_v35 = vpop.permute.xlu1 %1282  ;;  %v5441_v61 = vpop.permute.xlu0 %1657 }
 0x443   : > { %v1299_v50 = vadd.f32 %v1283_v35, %v1248_v24 }
 0x446   : > { %v1554_v44 = vpop.permute.xlu1 %1553  ;;  %v1381_v47 = vpop.permute.xlu0 %1380 }
 0x447   : > { %v1399_v19 = vadd.f32 %v1381_v47, %v1348_v57  ;;  %v1576_v22 = vadd.f32 %v1554_v44, %v1525_v29  ;;  %v1528_v47 = vadd.f32 %v5438_v42, %v5417_v16 }
 0x449   : > { %v1579_v12 = vadd.f32 %v1560_v46, %v1528_v47 }
 0x44a   : > { %v1611_v5 = vpop.permute.xlu1 %1610  ;;  %v1513_v37 = vpop.permute.xlu0 %1512 }
 0x44e   : > { %v1432_v55 = vpop.permute.xlu1 %1431  ;;  %v1334_v31 = vpop.permute.xlu0 %1333 }
 0x44f   : > { %v1450_v28 = vadd.f32 %v1432_v55, %v1399_v19  ;;  %v1350_v30 = vadd.f32 %v1334_v31, %v1299_v50  ;;  %v1526_v19 = vadd.f32 %v5421_v21, %v5409_v8 }
 0x451   : > { %v1478_v9 = vadd.f32 %v4870_v33, %v1450_v28  ;;  %v1630_v28 = vadd.f32 %v1611_v5, %v1579_v12 }
 0x452   : > { %v1605_v13 = vpop.permute.xlu1 %1604  ;;  %v1507_v6 = vpop.permute.xlu0 %1506 }
 0x453   : > { %v1627_v10 = vadd.f32 %v1605_v13, %v1576_v22  ;;  %v1527_v32 = vadd.f32 %v1507_v6, %v1476_v20  ;;  %v1575_v20 = vadd.f32 %v5412_v54, %v1524_v60  ;;  %v1577_v54 = vadd.f32 %v5428_v27, %v1526_v19 }
 0x455   : > { %v1626_v44 = vadd.f32 %v5419_v40, %v1575_v20  ;;  %v1530_v40 = vadd.f32 %v1513_v37, %v5434_v4  ;;  %v1628_v16 = vadd.f32 %v5436_v49, %v1577_v54 }
 0x456   : > { %v1662_v52 = vpop.permute.xlu1 %1661  ;;  %v1564_v56 = vpop.permute.xlu0 %1563 }
 0x457   : > { %v1677_v11 = vadd.f32 %v5426_v51, %v1626_v44  ;;  %v1681_v42 = vadd.f32 %v1662_v52, %v1630_v28  ;;  %v1581_v13 = vadd.f32 %v1564_v56, %v1530_v40  ;;  %v1679_v8 = vadd.f32 %v5441_v61, %v1628_v16 }
 0x45a   : > { %v1558_v38 = vpop.permute.xlu1 %1557  ;;  %v1385_v2 = vpop.permute.xlu0 %1384 }
 0x45b   : > { %v1401_v18 = vadd.f32 %v1385_v2, %v1350_v30  ;;  %v1578_v41 = vadd.f32 %v1558_v38, %v1527_v32 }
 0x45e   : > { %v1615_v36 = vpop.permute.xlu1 %1614  ;;  %v1656_v23 = vpop.permute.xlu0 %1655 }
 0x45f   : > { %v1678_v39 = vadd.f32 %v1656_v23, %v1627_v10  ;;  %v1632_v21 = vadd.f32 %v1615_v36, %v1581_v13 }
 0x461   : > { %1695 = vrot.lane.b32.xlu1 %v1678_v39, %s4285_s12 }
 0x462   : > { %v1511_v43 = vpop.permute.xlu1 %1510  ;;  %v1436_v3 = vpop.permute.xlu0 %1435 }
 0x463   : > { %v1452_v33 = vadd.f32 %v1436_v3, %v1401_v18  ;;  %v1529_v53 = vadd.f32 %v1511_v43, %v1478_v9 }
 0x465   : > { %v1480_v62 = vadd.f32 %v6606_v58, %v1452_v33 }
 0x466   : > { %v1666_v17 = vpop.permute.xlu1 %1665  ;;  %v1609_v26 = vpop.permute.xlu0 %1608 }
 0x467   : > { %v1629_v14 = vadd.f32 %v1609_v26, %v1578_v41  ;;  %v1683_v51 = vadd.f32 %v1666_v17, %v1632_v21 }
 0x46a   : > { %v1660_v59 = vpop.permute.xlu1 %1659  ;;  %v1562_v24 = vpop.permute.xlu0 %1561 }
 0x46b   : > { %v1680_v1 = vadd.f32 %v1660_v59, %v1629_v14  ;;  %v1580_v7 = vadd.f32 %v1562_v24, %v1529_v53 }
 0x46d   : > { %1699 = vrot.lane.b32.xlu1 %v1680_v1, %s4285_s12 }
 0x46e   : > { %v1613_v34 = vpop.permute.xlu1 %1612  ;;  %v1515_v15 = vpop.permute.xlu0 %1514 }
 0x46f   : > { %v1631_v45 = vadd.f32 %v1613_v34, %v1580_v7  ;;  %v1531_v25 = vadd.f32 %v1515_v15, %v1480_v62 }
 0x472   : > { %v1664_v48 = vpop.permute.xlu1 %1663  ;;  %v1566_v0 = vpop.permute.xlu0 %1565 }
 0x473   : > { %v1682_v35 = vadd.f32 %v1664_v48, %v1631_v45  ;;  %v1582_v63 = vadd.f32 %v1566_v0, %v1531_v25 }
 0x475   : > { %1703 = vrot.lane.b32.xlu0 %v1682_v35, %s4285_s12 }
 0x476   : > { %v1617_v57 = vpop.permute.xlu0 %1616  ;;  %v1668_v31 = vpop.permute.xlu1 %1667 }
 0x477   : > { %v1633_v55 = vadd.f32 %v1617_v57, %v1582_v63 }
 0x479   : > { %v1684_v9 = vadd.f32 %v1668_v31, %v1633_v55  ;;  %1693 = vrot.lane.b32.xlu0 %v1677_v11, %s4285_s12 }
 0x47b   : > { %1707 = vrot.lane.b32.xlu1 %v1684_v9, %s4285_s12 }
 0x47d   : > { %1701 = vrot.lane.b32.xlu0 %v1681_v42, %s4285_s12 }
 0x47f   : > { %1697 = vrot.lane.b32.xlu1 %v1679_v8, %s4285_s12 }
 0x481   : > { %1705 = vrot.lane.b32.xlu0 %v1683_v51, %s4285_s12 }
 0x4d3   : > { %v1696_v27 = vpop.permute.xlu1 %1695 }
 0x4d4   : > { %1718 = vst.msk [vmem:[#allocation3 + $0xa] sm:$0xff] %vm187_vm0, %v1696_v27 }
 0x4db   : > { %v1733_v4 = vld [vmem:[#allocation3 + $0x10] sm:$0x1]  ;;  %v1749_v46 = vld [vmem:[#allocation3 + $0xf] sm:$0x1] }
 0x4dc   : > { %1737 = vst.msk [vmem:[#allocation3 + $0x12] sm:$0x1] %vm200_vm1, %v1733_v4  ;;  %1753 = vst.msk [vmem:[#allocation3 + $0x13] sm:$0x1] %vm200_vm1, %v1749_v46 }
 0x4df   : > { %v1700_v49 = vpop.permute.xlu1 %1699 }
 0x4e0   : > { %1720 = vst.msk [vmem:[#allocation3 + $0x22] sm:$0xff] %vm187_vm0, %v1700_v49 }
 0x4e3   : > { %v1759_v61 = vld [vmem:[#allocation3 + $0x10] sm:$0xf] }
 0x4e4   : > { %1785 = vrot.lane.b32.xlu0 %v1759_v61, %s4286_s4 }
 0x4e7   : > { %v1734_v5 = vld [vmem:[#allocation3 + $0x28] sm:$0x1]  ;;  %v1750_v37 = vld [vmem:[#allocation3 + $0x27] sm:$0x1]  ;;  %v1704_v6 = vpop.permute.xlu0 %1703 }
 0x4e8   : > { %1738 = vst.msk [vmem:[#allocation3 + $0x2a] sm:$0x1] %vm200_vm1, %v1734_v5  ;;  %1754 = vst.msk [vmem:[#allocation3 + $0x2b] sm:$0x1] %vm200_vm1, %v1750_v37 }
 0x4e9   : > { %1722 = vst.msk [vmem:[#allocation3 + $0x3a] sm:$0xff] %vm187_vm0, %v1704_v6 }
 0x4eb   : > { %v1694_v52 = vpop.permute.xlu0 %1693 }
 0x4ec   : > { %1717 = vst.msk [vmem:[#allocation3 + $0x2] sm:$0xff] %vm187_vm0, %v1694_v52 }
 0x4ed   : > { %v1708_v56 = vpop.permute.xlu1 %1707 }
 0x4ee   : > { %1724 = vst.msk [vmem:[#allocation3 + $0x52] sm:$0xff] %vm187_vm0, %v1708_v56 }
 0x4ef   : > { %v1702_v2 = vpop.permute.xlu0 %1701  ;;  %v1762_v14 = vld [vmem:[#allocation3 + $0x28] sm:$0xf] }
 0x4f0   : > { %v1735_v29 = vld [vmem:[#allocation3 + $0x40] sm:$0x1]  ;;  %v1751_v38 = vld [vmem:[#allocation3 + $0x3f] sm:$0x1]  ;;  %1721 = vst.msk [vmem:[#allocation3 + $0x32] sm:$0xff] %vm187_vm0, %v1702_v2 }
 0x4f1   : > { %1739 = vst.msk [vmem:[#allocation3 + $0x42] sm:$0x1] %vm200_vm1, %v1735_v29  ;;  %1755 = vst.msk [vmem:[#allocation3 + $0x43] sm:$0x1] %vm200_vm1, %v1751_v38  ;;  %v1698_v22 = vpop.permute.xlu1 %1697 }
 0x4f2   : > { %1719 = vst.msk [vmem:[#allocation3 + $0x1a] sm:$0xff] %vm187_vm0, %v1698_v22 }
 0x4f3   : > { %v1725_v50 = vld [vmem:[#allocation3 + $0x3] sm:$0x1]  ;;  %v1741_v10 = vld [vmem:[#allocation3 + $0x4] sm:$0x1]  ;;  %v1706_v36 = vpop.permute.xlu0 %1705  ;;  %v1758_v23 = vld [vmem:[#allocation3 + $0x8] sm:$0xff] }
 0x4f4   : > { %1729 = vst.msk [vmem:[#allocation3 + $0x1] sm:$0x1] %vm200_vm1, %v1725_v50  ;;  %1745 = vst.msk [vmem:[#allocation3] sm:$0x1] %vm200_vm1, %v1741_v10  ;;  %1783 = vrot.lane.b32.xlu1 %v1758_v23, %s4286_s4 }
 0x4f5   : > { %1723 = vst.msk [vmem:[#allocation3 + $0x4a] sm:$0xff] %vm187_vm0, %v1706_v36  ;;  %v1736_v30 = vld [vmem:[#allocation3 + $0x58] sm:$0x1]  ;;  %v1752_v39 = vld [vmem:[#allocation3 + $0x57] sm:$0x1]  ;;  %vm3346_vm0 = vcmask 27648  }
 0x4f6   : > { %1740 = vst.msk [vmem:[#allocation3 + $0x5a] sm:$0x1] %vm200_vm1, %v1736_v30  ;;  %1756 = vst.msk [vmem:[#allocation3 + $0x5b] sm:$0x1] %vm200_vm1, %v1752_v39 }
 0x4f7   : > { %v1727_v18 = vld [vmem:[#allocation3 + $0x33] sm:$0x1]  ;;  %v1743_v43 = vld [vmem:[#allocation3 + $0x34] sm:$0x1]  ;;  %v1764_v26 = vld [vmem:[#allocation3 + $0x38] sm:$0xff] }
 0x4f8   : > { %1731 = vst.msk [vmem:[#allocation3 + $0x31] sm:$0x1] %vm200_vm1, %v1727_v18  ;;  %1747 = vst.msk [vmem:[#allocation3 + $0x30] sm:$0x1] %vm200_vm1, %v1743_v43  ;;  %v1765_v41 = vld [vmem:[#allocation3 + $0x40] sm:$0xf] }
 0x4f9   : > { %v1726_v3 = vld [vmem:[#allocation3 + $0x1b] sm:$0x1]  ;;  %v1742_v33 = vld [vmem:[#allocation3 + $0x1c] sm:$0x1]  ;;  %v1761_v32 = vld [vmem:[#allocation3 + $0x20] sm:$0xff] }
 0x4fa   : > { %1730 = vst.msk [vmem:[#allocation3 + $0x19] sm:$0x1] %vm200_vm1, %v1726_v3  ;;  %1746 = vst.msk [vmem:[#allocation3 + $0x18] sm:$0x1] %vm200_vm1, %v1742_v33  ;;  %1789 = vrot.lane.b32.xlu1 %v1761_v32, %s4286_s4 }
 0x4fb   : > { %v1757_v59 = vld [vmem:[#allocation3] sm:$0xff] }
 0x4fc   : > { %v1728_v58 = vld [vmem:[#allocation3 + $0x4b] sm:$0x1]  ;;  %v1744_v62 = vld [vmem:[#allocation3 + $0x4c] sm:$0x1]  ;;  %v1767_v17 = vld [vmem:[#allocation3 + $0x50] sm:$0xff] }
 0x4fd   : > { %1732 = vst.msk [vmem:[#allocation3 + $0x49] sm:$0x1] %vm200_vm1, %v1728_v58  ;;  %1748 = vst.msk [vmem:[#allocation3 + $0x48] sm:$0x1] %vm200_vm1, %v1744_v62  ;;  %1801 = vrot.lane.b32.xlu0 %v1767_v17, %s4286_s4  ;;  %v1768_v24 = vld [vmem:[#allocation3 + $0x58] sm:$0xf] }
 0x4fe   : > { %1795 = vrot.lane.b32.xlu1 %v1764_v26, %s4286_s4 }
 0x4ff   : > { %v1763_v34 = vld [vmem:[#allocation3 + $0x30] sm:$0xff] }
 0x501   : > { %1797 = vrot.lane.b32.xlu0 %v1765_v41, %s4286_s4  ;;  %v1760_v1 = vld [vmem:[#allocation3 + $0x18] sm:$0xff] }
 0x502   : > { %1791 = vrot.lane.b32.xlu1 %v1762_v14, %s4286_s4 }
 0x504   : > { %v1766_v53 = vld [vmem:[#allocation3 + $0x48] sm:$0xff] }
 0x505   : > { %1781 = vrot.lane.b32.xlu0 %v1757_v59, %s4286_s4 }
 0x506   : > { %1803 = vrot.lane.b32.xlu1 %v1768_v24, %s4286_s4 }
 0x509   : > { %1787 = vrot.lane.b32.xlu0 %v1760_v1, %s4286_s4 }
 0x50a   : > { %1799 = vrot.lane.b32.xlu1 %v1766_v53, %s4286_s4 }
 0x50d   : > { %1793 = vrot.lane.b32.xlu0 %v1763_v34, %s4286_s4 }
 0x556   : > { %v1786_v15 = vpop.permute.xlu0 %1785 }
 0x557   : > { %1819 = vst.msk [vmem:[#allocation3 + $0x10] sm:$0xf] %vm292_vm3, %v1786_v15 }
 0x55e   : > { %v1831_v7 = vld [vmem:[#allocation3 + $0x10] sm:$0xf] }
 0x55f   : > { %1857 = vrot.lane.b32.xlu0 %v1831_v7, %s4285_s12 }
 0x566   : > { %v1784_v60 = vpop.permute.xlu1 %1783 }
 0x567   : > { %1818 = vst.msk [vmem:[#allocation3 + $0x8] sm:$0xff] %vm289_vm2, %v1784_v60 }
 0x56c   : > { %v1790_v45 = vpop.permute.xlu1 %1789 }
 0x56d   : > { %1821 = vst.msk [vmem:[#allocation3 + $0x20] sm:$0xff] %vm289_vm2, %v1790_v45 }
 0x56e   : > { %v1830_v0 = vld [vmem:[#allocation3 + $0x8] sm:$0xff] }
 0x56f   : > { %v1802_v48 = vpop.permute.xlu0 %1801  ;;  %1855 = vrot.lane.b32.xlu1 %v1830_v0, %s4285_s12 }
 0x570   : > { %1827 = vst.msk [vmem:[#allocation3 + $0x50] sm:$0xff] %vm289_vm2, %v1802_v48  ;;  %v1796_v20 = vpop.permute.xlu1 %1795 }
 0x571   : > { %1824 = vst.msk [vmem:[#allocation3 + $0x38] sm:$0xff] %vm289_vm2, %v1796_v20 }
 0x573   : > { %v1798_v25 = vpop.permute.xlu0 %1797 }
 0x574   : > { %1825 = vst.msk [vmem:[#allocation3 + $0x40] sm:$0xf] %vm292_vm3, %v1798_v25  ;;  %v1792_v35 = vpop.permute.xlu1 %1791  ;;  %v1833_v44 = vld [vmem:[#allocation3 + $0x20] sm:$0xff] }
 0x575   : > { %1822 = vst.msk [vmem:[#allocation3 + $0x28] sm:$0xf] %vm292_vm3, %v1792_v35  ;;  %1861 = vrot.lane.b32.xlu1 %v1833_v44, %s4285_s12 }
 0x577   : > { %v1782_v47 = vpop.permute.xlu0 %1781  ;;  %v1839_v63 = vld [vmem:[#allocation3 + $0x50] sm:$0xff] }
 0x578   : > { %1817 = vst.msk [vmem:[#allocation3] sm:$0xff] %vm289_vm2, %v1782_v47  ;;  %1873 = vrot.lane.b32.xlu0 %v1839_v63, %s4285_s12  ;;  %v1804_v57 = vpop.permute.xlu1 %1803  ;;  %v1836_v19 = vld [vmem:[#allocation3 + $0x38] sm:$0xff] }
 0x579   : > { %1828 = vst.msk [vmem:[#allocation3 + $0x58] sm:$0xf] %vm292_vm3, %v1804_v57  ;;  %1867 = vrot.lane.b32.xlu1 %v1836_v19, %s4285_s12 }
 0x57b   : > { %v1788_v11 = vpop.permute.xlu0 %1787  ;;  %v1837_v12 = vld [vmem:[#allocation3 + $0x40] sm:$0xf] }
 0x57c   : > { %1820 = vst.msk [vmem:[#allocation3 + $0x18] sm:$0xff] %vm289_vm2, %v1788_v11  ;;  %1869 = vrot.lane.b32.xlu0 %v1837_v12, %s4285_s12  ;;  %v1800_v55 = vpop.permute.xlu1 %1799  ;;  %v1834_v31 = vld [vmem:[#allocation3 + $0x28] sm:$0xf] }
 0x57d   : > { %1826 = vst.msk [vmem:[#allocation3 + $0x48] sm:$0xff] %vm289_vm2, %v1800_v55  ;;  %1863 = vrot.lane.b32.xlu1 %v1834_v31, %s4285_s12  ;;  %v5584_v55 = vstv %s3910_s28  ;;  %s3921_s28 = sld [smem:[#allocation6 + $0x103]] }
 0x57f   : > { %v1794_v54 = vpop.permute.xlu0 %1793  ;;  %v1829_v28 = vld [vmem:[#allocation3] sm:$0xff] }
 0x580   : > { %1823 = vst.msk [vmem:[#allocation3 + $0x30] sm:$0xff] %vm289_vm2, %v1794_v54  ;;  %1853 = vrot.lane.b32.xlu0 %v1829_v28, %s4285_s12  ;;  %v1840_v40 = vld [vmem:[#allocation3 + $0x58] sm:$0xf] }
 0x581   : > { %1875 = vrot.lane.b32.xlu1 %v1840_v40, %s4285_s12 }
 0x583   : > { %v1832_v9 = vld [vmem:[#allocation3 + $0x18] sm:$0xff] }
 0x584   : > { %1859 = vrot.lane.b32.xlu0 %v1832_v9, %s4285_s12  ;;  %v1838_v16 = vld [vmem:[#allocation3 + $0x48] sm:$0xff]  ;;  %v5593_v9 = vstv %s3911_s25  ;;  %s3924_s25 = sld [smem:[#allocation6 + $0x181]] }
 0x585   : > { %1871 = vrot.lane.b32.xlu1 %v1838_v16, %s4285_s12 }
 0x587   : > { %v1835_v42 = vld [vmem:[#allocation3 + $0x30] sm:$0xff] }
 0x588   : > { %1865 = vrot.lane.b32.xlu0 %v1835_v42, %s4285_s12  ;;  %s3909_s12 = sld [smem:[#allocation6 + $0x1]] }
 0x58e   : > { %v5576_v63 = vstv %s3909_s12  ;;  %s3922_s12 = sld [smem:[#allocation6 + $0x104]] }
 0x5d1   : > { %v1858_v13 = vpop.permute.xlu0 %1857 }
 0x5d2   : > { %1891 = vst.msk [vmem:[#allocation3 + $0x10] sm:$0xf] %vm366_vm5, %v1858_v13 }
 0x5d9   : > { %v1903_v8 = vld [vmem:[#allocation3 + $0x10] sm:$0xf] }
 0x5da   : > { %1929 = vrot.lane.b32.xlu0 %v1903_v8, %s4287_s14 }
 0x5e1   : > { %v1856_v21 = vpop.permute.xlu1 %1855 }
 0x5e2   : > { %1890 = vst.msk [vmem:[#allocation3 + $0x8] sm:$0xff] %vm363_vm4, %v1856_v21  ;;  %v5603_v21 = vstv %s3912_s11  ;;  %s3925_s11 = sld [smem:[#allocation6 + $0x182]] }
 0x5e7   : > { %v1862_v51 = vpop.permute.xlu1 %1861 }
 0x5e8   : > { %1893 = vst.msk [vmem:[#allocation3 + $0x20] sm:$0xff] %vm363_vm4, %v1862_v51 }
 0x5e9   : > { %v1902_v4 = vld [vmem:[#allocation3 + $0x8] sm:$0xff] }
 0x5ea   : > { %v1874_v27 = vpop.permute.xlu0 %1873  ;;  %1927 = vrot.lane.b32.xlu1 %v1902_v4, %s4287_s14 }
 0x5eb   : > { %1899 = vst.msk [vmem:[#allocation3 + $0x50] sm:$0xff] %vm363_vm4, %v1874_v27  ;;  %v1868_v46 = vpop.permute.xlu1 %1867 }
 0x5ec   : > { %1896 = vst.msk [vmem:[#allocation3 + $0x38] sm:$0xff] %vm363_vm4, %v1868_v46 }
 0x5ee   : > { %v1870_v49 = vpop.permute.xlu0 %1869 }
 0x5ef   : > { %1897 = vst.msk [vmem:[#allocation3 + $0x40] sm:$0xf] %vm366_vm5, %v1870_v49  ;;  %v1864_v61 = vpop.permute.xlu1 %1863  ;;  %v1905_v5 = vld [vmem:[#allocation3 + $0x20] sm:$0xff] }
 0x5f0   : > { %1894 = vst.msk [vmem:[#allocation3 + $0x28] sm:$0xf] %vm366_vm5, %v1864_v61  ;;  %1933 = vrot.lane.b32.xlu1 %v1905_v5, %s4287_s14 }
 0x5f2   : > { %v1854_v37 = vpop.permute.xlu0 %1853  ;;  %v1911_v6 = vld [vmem:[#allocation3 + $0x50] sm:$0xff] }
 0x5f3   : > { %1889 = vst.msk [vmem:[#allocation3] sm:$0xff] %vm363_vm4, %v1854_v37  ;;  %1945 = vrot.lane.b32.xlu0 %v1911_v6, %s4287_s14  ;;  %v1876_v52 = vpop.permute.xlu1 %1875  ;;  %v1908_v56 = vld [vmem:[#allocation3 + $0x38] sm:$0xff] }
 0x5f4   : > { %1900 = vst.msk [vmem:[#allocation3 + $0x58] sm:$0xf] %vm366_vm5, %v1876_v52  ;;  %1939 = vrot.lane.b32.xlu1 %v1908_v56, %s4287_s14 }
 0x5f6   : > { %v1860_v29 = vpop.permute.xlu0 %1859  ;;  %v1909_v38 = vld [vmem:[#allocation3 + $0x40] sm:$0xf] }
 0x5f7   : > { %1892 = vst.msk [vmem:[#allocation3 + $0x18] sm:$0xff] %vm363_vm4, %v1860_v29  ;;  %1941 = vrot.lane.b32.xlu0 %v1909_v38, %s4287_s14  ;;  %v1872_v2 = vpop.permute.xlu1 %1871  ;;  %v1906_v22 = vld [vmem:[#allocation3 + $0x28] sm:$0xf]  ;;  %v5633_v38 = vstv %s3914_s27  ;;  %s3929_s27 = sld [smem:[#allocation6 + $0x201]] }
 0x5f8   : > { %1898 = vst.msk [vmem:[#allocation3 + $0x48] sm:$0xff] %vm363_vm4, %v1872_v2  ;;  %1935 = vrot.lane.b32.xlu1 %v1906_v22, %s4287_s14  ;;  %v5638_v22 = vstv %s3927_s30  ;;  %s3930_s30 = sld [smem:[#allocation6 + $0x202]] }
 0x5fa   : > { %v1866_v50 = vpop.permute.xlu0 %1865  ;;  %v1901_v10 = vld [vmem:[#allocation3] sm:$0xff] }
 0x5fb   : > { %1895 = vst.msk [vmem:[#allocation3 + $0x30] sm:$0xff] %vm363_vm4, %v1866_v50  ;;  %1925 = vrot.lane.b32.xlu0 %v1901_v10, %s4287_s14  ;;  %v1912_v36 = vld [vmem:[#allocation3 + $0x58] sm:$0xf] }
 0x5fc   : > { %1947 = vrot.lane.b32.xlu1 %v1912_v36, %s4287_s14 }
 0x5fe   : > { %v1904_v23 = vld [vmem:[#allocation3 + $0x18] sm:$0xff] }
 0x5ff   : > { %1931 = vrot.lane.b32.xlu0 %v1904_v23, %s4287_s14  ;;  %v1910_v30 = vld [vmem:[#allocation3 + $0x48] sm:$0xff] }
 0x600   : > { %1943 = vrot.lane.b32.xlu1 %v1910_v30, %s4287_s14  ;;  %v5651_v30 = vstv %s3926_s19  ;;  %s2053_s19 = sld [smem:[#allocation6]] }
 0x601   : > { %6607 = vst [vmem:[#allocation23_spill] sm:$0xff] %v5651_v30 }
 0x602   : > { %v1907_v39 = vld [vmem:[#allocation3 + $0x30] sm:$0xff] }
 0x603   : > { %1937 = vrot.lane.b32.xlu0 %v1907_v39, %s4287_s14 }
 0x64c   : > { %v1930_v18 = vpop.permute.xlu0 %1929 }
 0x64d   : > { %1963 = vst.msk [vmem:[#allocation3 + $0x10] sm:$0xf] %vm440_vm7, %v1930_v18 }
 0x654   : > { %v1975_v43 = vld [vmem:[#allocation3 + $0x10] sm:$0xf] }
 0x655   : > { %2001 = vrot.lane.b32.xlu0 %v1975_v43, %s4288_s15 }
 0x65c   : > { %v1928_v3 = vpop.permute.xlu1 %1927 }
 0x65d   : > { %1962 = vst.msk [vmem:[#allocation3 + $0x8] sm:$0xff] %vm437_vm6, %v1928_v3 }
 0x662   : > { %v1934_v33 = vpop.permute.xlu1 %1933 }
 0x663   : > { %1965 = vst.msk [vmem:[#allocation3 + $0x20] sm:$0xff] %vm437_vm6, %v1934_v33 }
 0x664   : > { %v1974_v58 = vld [vmem:[#allocation3 + $0x8] sm:$0xff] }
 0x665   : > { %v1946_v32 = vpop.permute.xlu0 %1945  ;;  %1999 = vrot.lane.b32.xlu1 %v1974_v58, %s4288_s15 }
 0x666   : > { %1971 = vst.msk [vmem:[#allocation3 + $0x50] sm:$0xff] %vm437_vm6, %v1946_v32  ;;  %v1940_v62 = vpop.permute.xlu1 %1939 }
 0x667   : > { %1968 = vst.msk [vmem:[#allocation3 + $0x38] sm:$0xff] %vm437_vm6, %v1940_v62 }
 0x669   : > { %v1942_v17 = vpop.permute.xlu0 %1941 }
 0x66a   : > { %1969 = vst.msk [vmem:[#allocation3 + $0x40] sm:$0xf] %vm440_vm7, %v1942_v17  ;;  %v1936_v26 = vpop.permute.xlu1 %1935  ;;  %v1977_v41 = vld [vmem:[#allocation3 + $0x20] sm:$0xff]  ;;  %v5675_v17 = vstv %s3915_s16  ;;  %s3913_s16 = sld [smem:[#allocation6 + $0x80]] }
 0x66b   : > { %1966 = vst.msk [vmem:[#allocation3 + $0x28] sm:$0xf] %vm440_vm7, %v1936_v26  ;;  %2005 = vrot.lane.b32.xlu1 %v1977_v41, %s4288_s15 }
 0x66d   : > { %v1926_v14 = vpop.permute.xlu0 %1925  ;;  %v1983_v59 = vld [vmem:[#allocation3 + $0x50] sm:$0xff] }
 0x66e   : > { %1961 = vst.msk [vmem:[#allocation3] sm:$0xff] %vm437_vm6, %v1926_v14  ;;  %2017 = vrot.lane.b32.xlu0 %v1983_v59, %s4288_s15  ;;  %v1948_v24 = vpop.permute.xlu1 %1947  ;;  %v1980_v1 = vld [vmem:[#allocation3 + $0x38] sm:$0xff] }
 0x66f   : > { %1972 = vst.msk [vmem:[#allocation3 + $0x58] sm:$0xf] %vm440_vm7, %v1948_v24  ;;  %2011 = vrot.lane.b32.xlu1 %v1980_v1, %s4288_s15 }
 0x671   : > { %v1932_v53 = vpop.permute.xlu0 %1931  ;;  %v1981_v34 = vld [vmem:[#allocation3 + $0x40] sm:$0xf] }
 0x672   : > { %1964 = vst.msk [vmem:[#allocation3 + $0x18] sm:$0xff] %vm437_vm6, %v1932_v53  ;;  %2013 = vrot.lane.b32.xlu0 %v1981_v34, %s4288_s15  ;;  %v1944_v15 = vpop.permute.xlu1 %1943  ;;  %v1978_v7 = vld [vmem:[#allocation3 + $0x28] sm:$0xf]  ;;  %v5698_v53 = vstv %s3916_s7  ;;  %s3918_s7 = sld [smem:[#allocation6 + $0x100]] }
 0x673   : > { %1970 = vst.msk [vmem:[#allocation3 + $0x48] sm:$0xff] %vm437_vm6, %v1944_v15  ;;  %2007 = vrot.lane.b32.xlu1 %v1978_v7, %s4288_s15 }
 0x675   : > { %v1938_v60 = vpop.permute.xlu0 %1937  ;;  %v1973_v45 = vld [vmem:[#allocation3] sm:$0xff] }
 0x676   : > { %1967 = vst.msk [vmem:[#allocation3 + $0x30] sm:$0xff] %vm437_vm6, %v1938_v60  ;;  %1997 = vrot.lane.b32.xlu0 %v1973_v45, %s4288_s15  ;;  %v1984_v48 = vld [vmem:[#allocation3 + $0x58] sm:$0xf] }
 0x677   : > { %2019 = vrot.lane.b32.xlu1 %v1984_v48, %s4288_s15 }
 0x679   : > { %v1976_v0 = vld [vmem:[#allocation3 + $0x18] sm:$0xff] }
 0x67a   : > { %2003 = vrot.lane.b32.xlu0 %v1976_v0, %s4288_s15  ;;  %v1982_v20 = vld [vmem:[#allocation3 + $0x48] sm:$0xff] }
 0x67b   : > { %2015 = vrot.lane.b32.xlu1 %v1982_v20, %s4288_s15 }
 0x67d   : > { %v1979_v25 = vld [vmem:[#allocation3 + $0x30] sm:$0xff] }
 0x67e   : > { %2009 = vrot.lane.b32.xlu0 %v1979_v25, %s4288_s15 }
 0x6c7   : > { %v2002_v35 = vpop.permute.xlu0 %2001 }
 0x6c8   : > { %2035 = vst.msk [vmem:[#allocation3 + $0x10] sm:$0xf] %vm514_vm9, %v2002_v35  ;;  %v5729_v35 = vstv %s3917_s13  ;;  %s3923_s13 = sld [smem:[#allocation6 + $0x180]] }
 0x6d7   : > { %v2000_v44 = vpop.permute.xlu1 %1999 }
 0x6d8   : > { %2034 = vst.msk [vmem:[#allocation3 + $0x8] sm:$0xff] %vm511_vm8, %v2000_v44 }
 0x6dd   : > { %v2006_v47 = vpop.permute.xlu1 %2005 }
 0x6de   : > { %2037 = vst.msk [vmem:[#allocation3 + $0x20] sm:$0xff] %vm511_vm8, %v2006_v47 }
 0x6df   : > { %v5579_v19 = vld [vmem:[#allocation3 + $0x8] sm:$0xff] }
 0x6e0   : > { %v2018_v57 = vpop.permute.xlu0 %2017  ;;  %v2074_v11 = vmul.f32 %v5576_v63, %v5579_v19  ;;  %v2124_v54 = vmul.f32 %v5584_v55, %v5579_v19  ;;  %v2174_v13 = vmul.f32 %v5593_v9, %v5579_v19  ;;  %v2224_v46 = vmul.f32 %v5603_v21, %v5579_v19  ;;  %v5631_v29 = vld [vmem:[#allocation3 + $0x9] sm:$0xff] }
 0x6e1   : > { %2043 = vst.msk [vmem:[#allocation3 + $0x50] sm:$0xff] %vm511_vm8, %v2018_v57  ;;  %v2012_v12 = vpop.permute.xlu1 %2011  ;;  %v2300_v23 = vmul.f32 %v5633_v38, %v5631_v29  ;;  %v2350_v7 = vmul.f32 %v5675_v17, %v5631_v29  ;;  %v2400_v25 = vmul.f32 %v5698_v53, %v5631_v29 }
 0x6e2   : > { %2040 = vst.msk [vmem:[#allocation3 + $0x38] sm:$0xff] %vm511_vm8, %v2012_v12  ;;  %2091 = vrot.lane.b32.xlu1 %v2074_v11, %s4290_s9  ;;  %v5742_v12 = vstv %s3931_s17  ;;  %s3928_s17 = sld [smem:[#allocation6 + $0x200]] }
 0x6e4   : > { %v2014_v31 = vpop.permute.xlu0 %2013 }
 0x6e5   : > { %2041 = vst.msk [vmem:[#allocation3 + $0x40] sm:$0xf] %vm514_vm9, %v2014_v31  ;;  %v2008_v28 = vpop.permute.xlu1 %2007  ;;  %v5591_v40 = vld [vmem:[#allocation3 + $0x20] sm:$0xff]  ;;  %v5744_v31 = vstv %s3932_s18 }
 0x6e6   : > { %2038 = vst.msk [vmem:[#allocation3 + $0x28] sm:$0xf] %vm514_vm9, %v2008_v28  ;;  %2141 = vrot.lane.b32.xlu1 %v2124_v54, %s4286_s4  ;;  %v2076_v16 = vmul.f32 %v5576_v63, %v5591_v40  ;;  %v2126_v51 = vmul.f32 %v5584_v55, %v5591_v40  ;;  %v2176_v37 = vmul.f32 %v5593_v9, %v5591_v40 }
 0x6e7   : > { %v2226_v6 = vmul.f32 %v5603_v21, %v5591_v40 }
 0x6e8   : > { %v1998_v42 = vpop.permute.xlu0 %1997  ;;  %2095 = vrot.lane.b32.xlu0 %v2076_v16, %s4290_s9  ;;  %v5642_v10 = vld [vmem:[#allocation3 + $0x50] sm:$0xff] }
 0x6e9   : > { %2033 = vst.msk [vmem:[#allocation3] sm:$0xff] %vm511_vm8, %v1998_v42  ;;  %v2020_v8 = vpop.permute.xlu1 %2019  ;;  %v5609_v4 = vld [vmem:[#allocation3 + $0x38] sm:$0xff]  ;;  %v2130_v43 = vmul.f32 %v5584_v55, %v5642_v10  ;;  %v2080_v58 = vmul.f32 %v5576_v63, %v5642_v10  ;;  %v2180_v47 = vmul.f32 %v5593_v9, %v5642_v10  ;;  %v2450_v42 = vmul.f32 %v5729_v35, %v5631_v29 }
 0x6ea   : > { %2044 = vst.msk [vmem:[#allocation3 + $0x58] sm:$0xf] %vm514_vm9, %v2020_v8  ;;  %2191 = vrot.lane.b32.xlu1 %v2174_v13, %s4289_s8  ;;  %v2078_v61 = vmul.f32 %v5576_v63, %v5609_v4  ;;  %v2128_v52 = vmul.f32 %v5584_v55, %v5609_v4  ;;  %v2178_v2 = vmul.f32 %v5593_v9, %v5609_v4 }
 0x6eb   : > { %v2228_v0 = vmul.f32 %v5603_v21, %v5609_v4 }
 0x6ec   : > { %v2004_v27 = vpop.permute.xlu0 %2003  ;;  %2145 = vrot.lane.b32.xlu0 %v2126_v51, %s4286_s4  ;;  %v5629_v56 = vld [vmem:[#allocation3 + $0x3b] sm:$0xff]  ;;  %v2230_v51 = vmul.f32 %v5603_v21, %v5642_v10 }
 0x6ed   : > { %2036 = vst.msk [vmem:[#allocation3 + $0x18] sm:$0xff] %vm511_vm8, %v2004_v27  ;;  %v2016_v49 = vpop.permute.xlu1 %2015  ;;  %v5646_v36 = vmul.f32 %v5638_v22, %v5629_v56  ;;  %v5666_v33 = vld [vmem:[#allocation3 + $0x21] sm:$0xff]  ;;  %v5718_v48 = vld [vmem:[#allocation3 + $0x39] sm:$0xff]  ;;  %v5767_v27 = vstv %s3919_s20 }
 0x6ee   : > { %2042 = vst.msk [vmem:[#allocation3 + $0x48] sm:$0xff] %vm511_vm8, %v2016_v49  ;;  %2241 = vrot.lane.b32.xlu1 %v2224_v46, %s4287_s14  ;;  %v2302_v59 = vmul.f32 %v5633_v38, %v5666_v33  ;;  %v2352_v45 = vmul.f32 %v5675_v17, %v5666_v33  ;;  %v2304_v20 = vmul.f32 %v5633_v38, %v5718_v48  ;;  %v5762_v8 = vld [vmem:[#allocation3 + $0x22] sm:$0xff] }
 0x6ef   : > { %v2452_v44 = vmul.f32 %v5729_v35, %v5666_v33  ;;  %v2404_v11 = vmul.f32 %v5698_v53, %v5718_v48  ;;  %v2528_v46 = vmul.f32 %v5767_v27, %v5762_v8  ;;  %v2402_v49 = vmul.f32 %v5698_v53, %v5666_v33 }
 0x6f0   : > { %v2010_v5 = vpop.permute.xlu0 %2009  ;;  %2099 = vrot.lane.b32.xlu0 %v2078_v61, %s4290_s9  ;;  %v5664_v3 = vld [vmem:[#allocation3] sm:$0xff]  ;;  %v5775_v61 = vstv %s3920_s0 }
 0x6f1   : > { %2039 = vst.msk [vmem:[#allocation3 + $0x30] sm:$0xff] %vm511_vm8, %v2010_v5  ;;  %v5640_v50 = vld [vmem:[#allocation3 + $0x53] sm:$0xff]  ;;  %v5677_v26 = vld [vmem:[#allocation3 + $0x1] sm:$0xff]  ;;  %v5681_v41 = vmul.f32 %v5593_v9, %v5664_v3  ;;  %v5685_v14 = vmul.f32 %v5603_v21, %v5664_v3  ;;  %v2578_v5 = vmul.f32 %v5775_v61, %v5762_v8 }
 0x6f2   : > { %2195 = vrot.lane.b32.xlu1 %v2176_v37, %s4289_s8  ;;  %v5655_v39 = vmul.f32 %v5651_v30, %v5640_v50  ;;  %v5659_v18 = vmul.f32 %v5638_v22, %v5640_v50  ;;  %v5713_v60 = vmul.f32 %v5698_v53, %v5677_v26  ;;  %v5737_v57 = vld [vmem:[#allocation3 + $0x54] sm:$0xff] }
 0x6f3   : > { %6611 = vst [vmem:[#allocation16_spill] sm:$0xff] %v5737_v57  ;;  %v5746_v54 = vld [vmem:[#allocation3 + $0x51] sm:$0xff]  ;;  %v5750_v28 = vmul.f32 %v5742_v12, %v5737_v57  ;;  %v5754_v16 = vmul.f32 %v5744_v31, %v5737_v57  ;;  %v5780_v37 = vld [vmem:[#allocation3 + $0x3a] sm:$0xff] }
 0x6f4   : > { %2245 = vrot.lane.b32.xlu0 %v2226_v6, %s4287_s14  ;;  %v5668_v32 = vld [vmem:[#allocation3 + $0x18] sm:$0xff]  ;;  %6610 = vst [vmem:[#allocation24_spill] sm:$0xff] %v5713_v60  ;;  %v2356_v13 = vmul.f32 %v5675_v17, %v5746_v54  ;;  %v2354_v6 = vmul.f32 %v5675_v17, %v5718_v48 }
 0x6f5   : > { %v5692_v24 = vmul.f32 %v5593_v9, %v5668_v32  ;;  %v5696_v1 = vmul.f32 %v5603_v21, %v5668_v32  ;;  %6612 = vst [vmem:[#allocation17_spill] sm:$0xff] %v5750_v28  ;;  %6613 = vst [vmem:[#allocation18_spill] sm:$0xff] %v5754_v16 }
 0x6f6   : > { %2149 = vrot.lane.b32.xlu1 %v2128_v52, %s4286_s4  ;;  %v5785_v52 = vld [vmem:[#allocation3 + $0xa] sm:$0xff] }
 0x6f8   : > { %2199 = vrot.lane.b32.xlu0 %v2178_v2, %s4289_s8  ;;  %v5673_v62 = vld [vmem:[#allocation3 + $0x30] sm:$0xff]  ;;  %v2530_v2 = vmul.f32 %v5767_v27, %v5780_v37 }
 0x6f9   : > { %v5702_v34 = vmul.f32 %v5593_v9, %v5673_v62  ;;  %v5706_v15 = vmul.f32 %v5603_v21, %v5673_v62 }
 0x6fa   : > { %2317 = vrot.lane.b32.xlu1 %v2300_v23, %s4290_s9  ;;  %v2526_v23 = vmul.f32 %v5767_v27, %v5785_v52 }
 0x6fb   : > { %6608 = vst [vmem:[#allocation15_spill] sm:$0xff] %v5702_v34  ;;  %6609 = vst [vmem:[#allocation14_spill] sm:$0xff] %v5706_v15  ;;  %v5912_v15 = vstv %s3913_s16 }
 0x6fc   : > { %2153 = vrot.lane.b32.xlu0 %v2130_v43, %s4286_s4  ;;  %v5793_v43 = vstv %s3922_s12  ;;  %s3808_s12 = scalar_lea.sflag [#allocation9], %s4427_s10 }
 0x6fe   : > { %2103 = vrot.lane.b32.xlu1 %v2080_v58, %s4290_s9  ;;  %v2678_v58 = vmul.f32 %v5793_v43, %v5762_v8 }
 0x700   : > { %2321 = vrot.lane.b32.xlu0 %v2302_v59, %s4290_s9  ;;  %v2306_v59 = vmul.f32 %v5633_v38, %v5746_v54 }
 0x702   : > { %2367 = vrot.lane.b32.xlu1 %v2350_v7, %s4286_s4  ;;  %v5801_v7 = vstv %s3921_s28 }
 0x703   : > { %6614 = vst [vmem:[#allocation19_spill] sm:$0xff] %v5801_v7 }
 0x704   : > { %2371 = vrot.lane.b32.xlu0 %v2352_v45, %s4286_s4  ;;  %v2630_v45 = vmul.f32 %v5801_v7, %v5780_v37 }
 0x706   : > { %2249 = vrot.lane.b32.xlu1 %v2228_v0, %s4287_s14  ;;  %v5806_v0 = vld [vmem:[#allocation3 + $0x52] sm:$0xff] }
 0x707   : > { %v2632_v28 = vmul.f32 %v5801_v7, %v5806_v0 }
 0x708   : > { %2325 = vrot.lane.b32.xlu0 %v2304_v20, %s4290_s9  ;;  %v2576_v20 = vmul.f32 %v5775_v61, %v5785_v52 }
 0x70a   : > { %2417 = vrot.lane.b32.xlu1 %v2400_v25, %s4289_s8  ;;  %v2582_v25 = vmul.f32 %v5775_v61, %v5806_v0 }
 0x70c   : > { %2471 = vrot.lane.b32.xlu0 %v2452_v44, %s4287_s14  ;;  %v5814_v44 = vld [vmem:[#allocation3 + $0x23] sm:$0xff] }
 0x70e   : > { %2203 = vrot.lane.b32.xlu1 %v2180_v47, %s4289_s8  ;;  %v2454_v47 = vmul.f32 %v5729_v35, %v5718_v48 }
 0x710   : > { %2425 = vrot.lane.b32.xlu0 %v2404_v11, %s4289_s8  ;;  %v5819_v11 = vstv %s3924_s25 }
 0x712   : > { %2467 = vrot.lane.b32.xlu1 %v2450_v42, %s4287_s14  ;;  %v2754_v42 = vmul.f32 %v5819_v11, %v5814_v44 }
 0x714   : > { %2379 = vrot.lane.b32.xlu0 %v2356_v13, %s4286_s4  ;;  %v2626_v13 = vmul.f32 %v5801_v7, %v5785_v52 }
 0x716   : > { %2253 = vrot.lane.b32.xlu1 %v2230_v51, %s4287_s14  ;;  %v5827_v51 = vstv %s3925_s11 }
 0x718   : > { %2547 = vrot.lane.b32.xlu0 %v2528_v46, %s4290_s9  ;;  %v2804_v46 = vmul.f32 %v5827_v51, %v5814_v44 }
 0x71a   : > { %2421 = vrot.lane.b32.xlu1 %v2402_v49, %s4289_s8  ;;  %v2406_v49 = vmul.f32 %v5698_v53, %v5746_v54 }
 0x71c   : > { %2597 = vrot.lane.b32.xlu0 %v2578_v5, %s4286_s4  ;;  %v2756_v5 = vmul.f32 %v5819_v11, %v5629_v56 }
 0x71e   : > { %2375 = vrot.lane.b32.xlu1 %v2354_v6, %s4286_s4  ;;  %v2676_v6 = vmul.f32 %v5793_v43, %v5785_v52 }
 0x720   : > { %2551 = vrot.lane.b32.xlu0 %v2530_v2, %s4290_s9  ;;  %v2904_v2 = vmul.f32 %v5638_v22, %v5814_v44 }
 0x722   : > { %2543 = vrot.lane.b32.xlu1 %v2526_v23, %s4290_s9  ;;  %v2456_v23 = vmul.f32 %v5729_v35, %v5746_v54 }
 0x724   : > { %2697 = vrot.lane.b32.xlu0 %v2678_v58, %s4287_s14  ;;  %v2856_v58 = vmul.f32 %v5651_v30, %v5629_v56 }
 0x726   : > { %2329 = vrot.lane.b32.xlu1 %v2306_v59, %s4290_s9  ;;  %v2628_v59 = vmul.f32 %v5801_v7, %v5762_v8  ;;  %v2123_v7 = vmul.f32 %v5584_v55, %v5664_v3 }
 0x728   : > { %2651 = vrot.lane.b32.xlu0 %v2630_v45, %s4289_s8  ;;  %v2808_v45 = vmul.f32 %v5827_v51, %v5640_v50 }
 0x72a   : > { %2593 = vrot.lane.b32.xlu1 %v2576_v20, %s4286_s4  ;;  %v5856_v20 = vld [vmem:[#allocation3 + $0x24] sm:$0xff] }
 0x72c   : > { %2605 = vrot.lane.b32.xlu0 %v2582_v25, %s4286_s4  ;;  %v2580_v25 = vmul.f32 %v5775_v61, %v5780_v37 }
 0x72e   : > { %2475 = vrot.lane.b32.xlu1 %v2454_v47, %s4287_s14  ;;  %v5861_v47 = vstv %s3929_s27 }
 0x72f   : > { %6615 = vst [vmem:[#allocation20_spill] sm:$0xff] %v5861_v47 }
 0x730   : > { %2773 = vrot.lane.b32.xlu0 %v2754_v42, %s4290_s9  ;;  %v5863_v42 = vld [vmem:[#allocation3 + $0xb] sm:$0xff] }
 0x732   : > { %2643 = vrot.lane.b32.xlu1 %v2626_v13, %s4289_s8  ;;  %v2980_v13 = vmul.f32 %v5861_v47, %v5856_v20 }
 0x734   : > { %2823 = vrot.lane.b32.xlu0 %v2804_v46, %s4286_s4  ;;  %v2752_v46 = vmul.f32 %v5819_v11, %v5863_v42 }
 0x736   : > { %2429 = vrot.lane.b32.xlu1 %v2406_v49, %s4289_s8  ;;  %v5871_v49 = vstv %s3930_s30 }
 0x737   : > { %6616 = vst [vmem:[#allocation21_spill] sm:$0xff] %v5871_v49 }
 0x738   : > { %2777 = vrot.lane.b32.xlu0 %v2756_v5, %s4290_s9  ;;  %v3030_v5 = vmul.f32 %v5871_v49, %v5856_v20 }
 0x73a   : > { %2693 = vrot.lane.b32.xlu1 %v2676_v6, %s4287_s14  ;;  %v5876_v6 = vld [vmem:[#allocation3 + $0x3c] sm:$0xff] }
 0x73c   : > { %2923 = vrot.lane.b32.xlu0 %v2904_v2, %s4287_s14  ;;  %v2532_v2 = vmul.f32 %v5767_v27, %v5806_v0 }
 0x73e   : > { %2479 = vrot.lane.b32.xlu1 %v2456_v23, %s4287_s14  ;;  %v2982_v23 = vmul.f32 %v5861_v47, %v5876_v6 }
 0x740   : > { %2877 = vrot.lane.b32.xlu0 %v2856_v58, %s4289_s8  ;;  %v2802_v58 = vmul.f32 %v5827_v51, %v5863_v42 }
 0x742   : > { %2647 = vrot.lane.b32.xlu1 %v2628_v59, %s4289_s8  ;;  %v3032_v59 = vmul.f32 %v5871_v49, %v5876_v6 }
 0x744   : > { %2831 = vrot.lane.b32.xlu0 %v2808_v45, %s4286_s4 }
 0x746   : > { %2601 = vrot.lane.b32.xlu1 %v2580_v25, %s4286_s4  ;;  %v2680_v25 = vmul.f32 %v5793_v43, %v5780_v37 }
 0x748   : > { %2999 = vrot.lane.b32.xlu0 %v2980_v13, %s4290_s9  ;;  %v5893_v13 = vstv %s2053_s19 }
 0x74a   : > { %2769 = vrot.lane.b32.xlu1 %v2752_v46, %s4290_s9  ;;  %v2984_v46 = vmul.f32 %v5861_v47, %v5737_v57 }
 0x74c   : > { %3049 = vrot.lane.b32.xlu0 %v3030_v5, %s4286_s4 }
 0x74e   : > { %2555 = vrot.lane.b32.xlu1 %v2532_v2, %s4290_s9  ;;  %v2852_v2 = vmul.f32 %v5651_v30, %v5863_v42 }
 0x750   : > { %3003 = vrot.lane.b32.xlu0 %v2982_v23, %s4290_s9  ;;  %v2056_v23 = vmul.f32 %v5893_v13, %v5579_v19  ;;  %v2073_v19 = vmul.f32 %v5576_v63, %v5664_v3 }
 0x752   : > { %2819 = vrot.lane.b32.xlu1 %v2802_v58, %s4286_s4 }
 0x754   : > { %v2092_v45 = vpop.permute.xlu1 %2091  ;;  %3053 = vrot.lane.b32.xlu0 %v3032_v59, %s4286_s4  ;;  %v3034_v59 = vmul.f32 %v5871_v49, %v5737_v57 }
 0x756   : > { %2701 = vrot.lane.b32.xlu1 %v2680_v25, %s4287_s14  ;;  %v2114_v25 = vadd.f32 %v2092_v45, %v2056_v23  ;;  %v2902_v23 = vmul.f32 %v5638_v22, %v5863_v42 }
 0x758   : > { %v2142_v5 = vpop.permute.xlu1 %2141  ;;  %3007 = vrot.lane.b32.xlu0 %v2984_v46, %s4290_s9 }
 0x759   : > { %v2164_v46 = vadd.f32 %v2142_v5, %v2114_v25 }
 0x75a   : > { %2869 = vrot.lane.b32.xlu1 %v2852_v2, %s4289_s8  ;;  %v2096_v58 = vpop.permute.xlu0 %2095  ;;  %v2058_v2 = vmul.f32 %v5893_v13, %v5591_v40 }
 0x75c   : > { %v2192_v16 = vpop.permute.xlu1 %2191  ;;  %3057 = vrot.lane.b32.xlu0 %v3034_v59, %s4286_s4  ;;  %v2116_v59 = vadd.f32 %v2096_v58, %v2058_v2  ;;  %v2284_v2 = vmul.f32 %v5912_v15, %v5666_v33  ;;  %v2806_v33 = vmul.f32 %v5827_v51, %v5629_v56 }
 0x75d   : > { %v2214_v57 = vadd.f32 %v2192_v16, %v2164_v46  ;;  %v2682_v46 = vmul.f32 %v5793_v43, %v5806_v0 }
 0x75e   : > { %2655 = vrot.lane.b32.xlu1 %v2632_v28, %s4289_s8  ;;  %v2146_v60 = vpop.permute.xlu0 %2145  ;;  %v2282_v28 = vmul.f32 %v5912_v15, %v5631_v29  ;;  %v2075_v29 = vmul.f32 %v5576_v63, %v5668_v32 }
 0x75f   : > { %v2166_v34 = vadd.f32 %v2146_v60, %v2116_v59  ;;  %v2854_v60 = vmul.f32 %v5651_v30, %v5814_v44 }
 0x760   : > { %v2242_v45 = vpop.permute.xlu1 %2241  ;;  %2089 = vrot.lane.b32.xlu0 %v2073_v19, %s4290_s9 }
 0x761   : > { %v2264_v5 = vadd.f32 %v2242_v45, %v2214_v57 }
 0x762   : > { %2919 = vrot.lane.b32.xlu1 %v2902_v23, %s4287_s14  ;;  %v2100_v25 = vpop.permute.xlu0 %2099  ;;  %v2125_v23 = vmul.f32 %v5584_v55, %v5668_v32 }
 0x763   : > { %v2290_v40 = vadd.f32 %v2282_v28, %v2264_v5  ;;  %v5943_v5 = vld [vmem:[#allocation3 + $0xc] sm:$0xff] }
 0x764   : > { %v2196_v16 = vpop.permute.xlu1 %2195  ;;  %2139 = vrot.lane.b32.xlu0 %v2123_v7, %s4286_s4 }
 0x765   : > { %v2216_v19 = vadd.f32 %v2196_v16, %v2166_v34  ;;  %v2077_v16 = vmul.f32 %v5576_v63, %v5673_v62 }
 0x766   : > { %2705 = vrot.lane.b32.xlu1 %v2682_v46, %s4287_s14  ;;  %v2246_v57 = vpop.permute.xlu0 %2245  ;;  %v2060_v46 = vmul.f32 %v5893_v13, %v5609_v4  ;;  %v2758_v4 = vmul.f32 %v5819_v11, %v5640_v50 }
 0x767   : > { %v2266_v58 = vadd.f32 %v2246_v57, %v2216_v19  ;;  %v2978_v57 = vmul.f32 %v5861_v47, %v5943_v5 }
 0x768   : > { %v2150_v45 = vpop.permute.xlu1 %2149  ;;  %2093 = vrot.lane.b32.xlu0 %v2075_v29, %s4290_s9  ;;  %v2118_v29 = vadd.f32 %v2100_v25, %v2060_v46  ;;  %v5962_v46 = vld [vmem:[#allocation3 + $0x48] sm:$0xff] }
 0x769   : > { %v5935_v7 = vadd.f32 %v2284_v2, %v2266_v58  ;;  %v2127_v2 = vmul.f32 %v5584_v55, %v5673_v62  ;;  %v2079_v47 = vmul.f32 %v5576_v63, %v5962_v46  ;;  %v3078_v63 = vmul.f32 %v5742_v12, %v5943_v5 }
 0x76a   : > { %2873 = vrot.lane.b32.xlu1 %v2854_v60, %s4289_s8  ;;  %v2200_v34 = vpop.permute.xlu0 %2199  ;;  %v2168_v60 = vadd.f32 %v2150_v45, %v2118_v29  ;;  %v3028_v45 = vmul.f32 %v5871_v49, %v5943_v5  ;;  %v5991_v49 = vstv %s3918_s7 }
 0x76c   : > { %v2318_v59 = vpop.permute.xlu1 %2317  ;;  %2143 = vrot.lane.b32.xlu0 %v2125_v23, %s4286_s4  ;;  %v2218_v25 = vadd.f32 %v2200_v34, %v2168_v60 }
 0x76e   : > { %2827 = vrot.lane.b32.xlu1 %v2806_v33, %s4286_s4  ;;  %v2154_v28 = vpop.permute.xlu0 %2153 }
 0x770   : > { %v2104_v19 = vpop.permute.xlu1 %2103  ;;  %2097 = vrot.lane.b32.xlu0 %v2077_v16, %s4290_s9  ;;  %v2299_v16 = vmul.f32 %v5633_v38, %v5677_v26 }
 0x772   : > { %2995 = vrot.lane.b32.xlu1 %v2978_v57, %s4290_s9  ;;  %v2322_v58 = vpop.permute.xlu0 %2321 }
 0x774   : > { %v2368_v23 = vpop.permute.xlu1 %2367  ;;  %2147 = vrot.lane.b32.xlu0 %v2127_v2, %s4286_s4  ;;  %v2286_v2 = vmul.f32 %v5912_v15, %v5718_v48  ;;  %v2349_v48 = vmul.f32 %v5675_v17, %v5677_v26 }
 0x776   : > { %2781 = vrot.lane.b32.xlu1 %v2758_v4, %s4290_s9  ;;  %v2372_v33 = vpop.permute.xlu0 %2371 }
 0x778   : > { %v2250_v57 = vpop.permute.xlu1 %2249  ;;  %2315 = vrot.lane.b32.xlu0 %v2299_v16, %s4290_s9 }
 0x779   : > { %v2268_v29 = vadd.f32 %v2250_v57, %v2218_v25  ;;  %v2340_v25 = vadd.f32 %v2318_v59, %v2290_v40  ;;  %v2062_v57 = vmul.f32 %v5893_v13, %v5642_v10  ;;  %v5993_v59 = vld [vmem:[#allocation3 + $0x19] sm:$0xff] }
 0x77a   : > { %3045 = vrot.lane.b32.xlu1 %v3028_v45, %s4286_s4  ;;  %v5970_v4 = vpop.permute.xlu0 %2325 }
 0x77b   : > { %v5974_v34 = vadd.f32 %v2286_v2, %v2268_v29  ;;  %v2120_v29 = vadd.f32 %v2104_v19, %v2062_v57  ;;  %v2390_v2 = vadd.f32 %v2368_v23, %v2340_v25  ;;  %v2508_v19 = vmul.f32 %v5991_v49, %v5785_v52 }
 0x77c   : > { %v2418_v60 = vpop.permute.xlu1 %2417  ;;  %2101 = vrot.lane.b32.xlu0 %v2079_v47, %s4290_s9 }
 0x77d   : > { %v2440_v40 = vadd.f32 %v2418_v60, %v2390_v2 }
 0x77e   : > { %2927 = vrot.lane.b32.xlu1 %v5646_v36, %s4287_s14  ;;  %v2472_v16 = vpop.permute.xlu0 %2471  ;;  %v2129_v36 = vmul.f32 %v5584_v55, %v5962_v46  ;;  %v2301_v55 = vmul.f32 %v5633_v38, %v5993_v59 }
 0x780   : > { %v2204_v45 = vpop.permute.xlu1 %2203  ;;  %2365 = vrot.lane.b32.xlu0 %v2349_v48, %s4286_s4  ;;  %v2170_v48 = vadd.f32 %v2154_v28, %v2120_v29  ;;  %v3128_v28 = vmul.f32 %v5744_v31, %v5943_v5 }
 0x782   : > { %3095 = vrot.lane.b32.xlu1 %v3078_v63, %s4289_s8  ;;  %v5987_v47 = vpop.permute.xlu0 %2425  ;;  %v2220_v25 = vadd.f32 %v2204_v45, %v2170_v48  ;;  %v2342_v63 = vadd.f32 %v2322_v58, %v5935_v7 }
 0x784   : > { %v2468_v10 = vpop.permute.xlu1 %2467  ;;  %2151 = vrot.lane.b32.xlu0 %v2129_v36, %s4286_s4  ;;  %v2392_v45 = vadd.f32 %v2372_v33, %v2342_v63 }
 0x785   : > { %v2490_v30 = vadd.f32 %v2468_v10, %v2440_v40  ;;  %v2510_v10 = vmul.f32 %v5991_v49, %v5762_v8 }
 0x786   : > { %2881 = vrot.lane.b32.xlu1 %v5655_v39, %s4289_s8  ;;  %v6000_v23 = vpop.permute.xlu0 %2379  ;;  %v2288_v39 = vmul.f32 %v5912_v15, %v5746_v54  ;;  %v2449_v54 = vmul.f32 %v5729_v35, %v5677_v26  ;;  %v3130_v26 = vmul.f32 %v5744_v31, %v5856_v20 }
 0x787   : > { %v6004_v60 = vadd.f32 %v2508_v19, %v2490_v30  ;;  %v2179_v30 = vmul.f32 %v5593_v9, %v5962_v46  ;;  %v3080_v9 = vmul.f32 %v5742_v12, %v5856_v20 }
 0x788   : > { %v2254_v57 = vpop.permute.xlu1 %2253  ;;  %2319 = vrot.lane.b32.xlu0 %v2301_v55, %s4290_s9 }
 0x789   : > { %v2270_v52 = vadd.f32 %v2254_v57, %v2220_v25  ;;  %v6042_v25 = vld [vmem:[#allocation3 + $0x31] sm:$0xff] }
 0x78a   : > { %3145 = vrot.lane.b32.xlu1 %v3128_v28, %s4287_s14  ;;  %v6013_v29 = vpop.permute.xlu0 %2547  ;;  %v2344_v28 = vadd.f32 %v5970_v4, %v5974_v34 }
 0x78b   : > { %v2296_v2 = vadd.f32 %v2288_v39, %v2270_v52  ;;  %v2353_v52 = vmul.f32 %v5675_v17, %v6042_v25 }
 0x78c   : > { %v2422_v36 = vpop.permute.xlu1 %2421  ;;  %2201 = vrot.lane.b32.xlu0 %v2179_v30, %s4289_s8  ;;  %v6054_v30 = vld [vmem:[#allocation3 + $0x2] sm:$0xff] }
 0x78d   : > { %v2442_v40 = vadd.f32 %v2422_v36, %v2392_v45  ;;  %v3132_v36 = vmul.f32 %v5744_v31, %v5876_v6  ;;  %v2525_v4 = vmul.f32 %v5767_v27, %v6054_v30 }
 0x78e   : > { %2931 = vrot.lane.b32.xlu1 %v5659_v18, %s4287_s14  ;;  %v6020_v7 = vpop.permute.xlu0 %2597  ;;  %v2229_v18 = vmul.f32 %v5603_v21, %v5962_v46  ;;  %v3082_v21 = vmul.f32 %v5742_v12, %v5876_v6 }
 0x78f   : > { %v2492_v58 = vadd.f32 %v2472_v16, %v2442_v40  ;;  %v2401_v16 = vmul.f32 %v5698_v53, %v5993_v59 }
 0x790   : > { %v2376_v48 = vpop.permute.xlu1 %2375  ;;  %2465 = vrot.lane.b32.xlu0 %v2449_v54, %s4287_s14  ;;  %v6065_v54 = vld [vmem:[#allocation3 + $0x49] sm:$0xff] }
 0x791   : > { %v2518_v33 = vadd.f32 %v2510_v10, %v2492_v58  ;;  %v2394_v39 = vadd.f32 %v2376_v48, %v2344_v28  ;;  %v2512_v10 = vmul.f32 %v5991_v49, %v5780_v37  ;;  %v2575_v37 = vmul.f32 %v5775_v61, %v6054_v30 }
 0x792   : > { %3099 = vrot.lane.b32.xlu1 %v3080_v9, %s4289_s8  ;;  %v6030_v19 = vpop.permute.xlu0 %2551 }
 0x793   : > { %v2444_v34 = vadd.f32 %v5987_v47, %v2394_v39 }
 0x794   : > { %v2544_v55 = vpop.permute.xlu1 %2543  ;;  %2251 = vrot.lane.b32.xlu0 %v2229_v18, %s4287_s14  ;;  %v2305_v18 = vmul.f32 %v5633_v38, %v6065_v54 }
 0x796   : > { %3149 = vrot.lane.b32.xlu1 %v3130_v26, %s4287_s14  ;;  %v6038_v8 = vpop.permute.xlu0 %2697 }
 0x798   : > { %v2330_v57 = vpop.permute.xlu1 %2329  ;;  %2419 = vrot.lane.b32.xlu0 %v2401_v16, %s4289_s8 }
 0x799   : > { %v2346_v28 = vadd.f32 %v2330_v57, %v2296_v2 }
 0x79a   : > { %3103 = vrot.lane.b32.xlu1 %v3082_v21, %s4289_s8  ;;  %v6050_v63 = vpop.permute.xlu0 %2651 }
 0x79c   : > { %v2594_v45 = vpop.permute.xlu1 %2593  ;;  %2373 = vrot.lane.b32.xlu0 %v2353_v52, %s4286_s4 }
 0x79e   : > { %3153 = vrot.lane.b32.xlu1 %v3132_v36, %s4287_s14  ;;  %v6060_v40 = vpop.permute.xlu0 %2605  ;;  %v6091_v36 = vstv %s3923_s13 }
 0x7a0   : > { %v2476_v58 = vpop.permute.xlu1 %2475  ;;  %2541 = vrot.lane.b32.xlu0 %v2525_v4, %s4290_s9 }
 0x7a1   : > { %v2494_v48 = vadd.f32 %v2476_v58, %v2444_v34  ;;  %v6093_v34 = vld [vmem:[#allocation3 + $0x1a] sm:$0xff] }
 0x7a2   : > { %2189 = vrot.lane.b32.xlu1 %v5681_v41, %s4289_s8  ;;  %v6072_v9 = vpop.permute.xlu0 %2773  ;;  %v2566_v41 = vadd.f32 %v2544_v55, %v6004_v60  ;;  %v2396_v60 = vadd.f32 %v6000_v23, %v2346_v28  ;;  %v2734_v55 = vmul.f32 %v6091_v36, %v5863_v42  ;;  %v2527_v57 = vmul.f32 %v5767_v27, %v6093_v34  ;;  %v6618_v28 = vld [vmem:[#allocation14_spill] sm:$0xff] }
 0x7a3   : > { %v2520_v26 = vadd.f32 %v2512_v10, %v2494_v48  ;;  %v2514_v42 = vmul.f32 %v5991_v49, %v5806_v0  ;;  %v2675_v0 = vmul.f32 %v5793_v43, %v6054_v30 }
 0x7a4   : > { %v2644_v47 = vpop.permute.xlu1 %2643  ;;  %2327 = vrot.lane.b32.xlu0 %v2305_v18, %s4290_s9  ;;  %v2616_v52 = vadd.f32 %v2594_v45, %v2566_v41  ;;  %v2568_v45 = vadd.f32 %v6013_v29, %v2518_v33 }
 0x7a6   : > { %2239 = vrot.lane.b32.xlu1 %v5685_v14, %s4287_s14  ;;  %v6079_v16 = vpop.permute.xlu0 %2823  ;;  %v2355_v14 = vmul.f32 %v5675_v17, %v6065_v54  ;;  %v2666_v4 = vadd.f32 %v2644_v47, %v2616_v52  ;;  %v6617_v47 = vld [vmem:[#allocation15_spill] sm:$0xff]  ;;  %v2618_v29 = vadd.f32 %v6020_v7, %v2568_v45 }
 0x7a7   : > { %v6620_v45 = vld [vmem:[#allocation19_spill] sm:$0xff] }
 0x7a8   : > { %v2430_v21 = vpop.permute.xlu1 %2429  ;;  %2591 = vrot.lane.b32.xlu0 %v2575_v37, %s4286_s4  ;;  %v2405_v37 = vmul.f32 %v5698_v53, %v6065_v54 }
 0x7a9   : > { %v2446_v10 = vadd.f32 %v2430_v21, %v2396_v60  ;;  %v6619_v60 = vld [vmem:[#allocation24_spill] sm:$0xff] }
 0x7aa   : > { %2193 = vrot.lane.b32.xlu1 %v5692_v24, %s4289_s8  ;;  %v6087_v39 = vpop.permute.xlu0 %2777 }
 0x7ac   : > { %v2694_v58 = vpop.permute.xlu1 %2693  ;;  %2377 = vrot.lane.b32.xlu0 %v2355_v14, %s4286_s4  ;;  %v2736_v14 = vmul.f32 %v6091_v36, %v5814_v44  ;;  %v2351_v44 = vmul.f32 %v5675_v17, %v5993_v59 }
 0x7ad   : > { %v2716_v2 = vadd.f32 %v2694_v58, %v2666_v4 }
 0x7ae   : > { %2243 = vrot.lane.b32.xlu1 %v5696_v1, %s4287_s14  ;;  %v6101_v24 = vpop.permute.xlu0 %2923 }
 0x7af   : > { %v6106_v48 = vadd.f32 %v2734_v55, %v2716_v2  ;;  %v2455_v55 = vmul.f32 %v5729_v35, %v6065_v54 }
 0x7b0   : > { %v2480_v18 = vpop.permute.xlu1 %2479  ;;  %2545 = vrot.lane.b32.xlu0 %v2527_v57, %s4290_s9 }
 0x7b1   : > { %v2496_v23 = vadd.f32 %v2480_v18, %v2446_v10  ;;  %v2627_v10 = vmul.f32 %v6620_v45, %v6093_v34  ;;  %v6145_v18 = vld [vmem:[#allocation3 + $0x32] sm:$0xff] }
 0x7b2   : > { %2197 = vrot.lane.b32.xlu1 %v6617_v47, %s4289_s8  ;;  %v6113_v1 = vpop.permute.xlu0 %2877  ;;  %v2570_v47 = vadd.f32 %v6030_v19, %v2520_v26 }
 0x7b3   : > { %v2522_v33 = vadd.f32 %v2514_v42, %v2496_v23  ;;  %v2303_v42 = vmul.f32 %v5633_v38, %v6042_v25 }
 0x7b4   : > { %v2648_v41 = vpop.permute.xlu1 %2647  ;;  %2427 = vrot.lane.b32.xlu0 %v2405_v37, %s4289_s8  ;;  %v2579_v37 = vmul.f32 %v5775_v61, %v6145_v18 }
 0x7b5   : > { %v2668_v21 = vadd.f32 %v2648_v41, %v2618_v29  ;;  %v6156_v41 = vld [vmem:[#allocation3 + $0x3] sm:$0xff] }
 0x7b6   : > { %2247 = vrot.lane.b32.xlu1 %v6618_v28, %s4287_s14  ;;  %v6121_v52 = vpop.permute.xlu0 %2831  ;;  %v2451_v28 = vmul.f32 %v5729_v35, %v5993_v59  ;;  %v2751_v19 = vmul.f32 %v5819_v11, %v6156_v41 }
 0x7b7   : > { %v2718_v4 = vadd.f32 %v6038_v8, %v2668_v21 }
 0x7b8   : > { %v2602_v58 = vpop.permute.xlu1 %2601  ;;  %2691 = vrot.lane.b32.xlu0 %v2675_v0, %s4287_s14  ;;  %v6167_v0 = vld [vmem:[#allocation3 + $0x4a] sm:$0xff] }
 0x7b9   : > { %v6129_v7 = vadd.f32 %v2736_v14, %v2718_v4  ;;  %v2620_v29 = vadd.f32 %v2602_v58, %v2570_v47  ;;  %v2403_v4 = vmul.f32 %v5698_v53, %v6042_v25  ;;  %v2738_v58 = vmul.f32 %v6091_v36, %v5629_v56 }
 0x7ba   : > { %2415 = vrot.lane.b32.xlu1 %v6619_v60, %s4289_s8  ;;  %v6133_v2 = vpop.permute.xlu0 %2999  ;;  %v2453_v53 = vmul.f32 %v5729_v35, %v6042_v25  ;;  %v2801_v47 = vmul.f32 %v5827_v51, %v6156_v41 }
 0x7bb   : > { %v2670_v26 = vadd.f32 %v6050_v63, %v2620_v29 }
 0x7bc   : > { %v2770_v57 = vpop.permute.xlu1 %2769  ;;  %2477 = vrot.lane.b32.xlu0 %v2455_v55, %s4287_s14 }
 0x7be   : > { %2369 = vrot.lane.b32.xlu1 %v2351_v44, %s4286_s4  ;;  %v6141_v8 = vpop.permute.xlu0 %3049  ;;  %v2531_v44 = vmul.f32 %v5767_v27, %v6167_v0 }
 0x7c0   : > { %v2556_v23 = vpop.permute.xlu1 %2555  ;;  %2645 = vrot.lane.b32.xlu0 %v2627_v10, %s4289_s8 }
 0x7c1   : > { %v2572_v63 = vadd.f32 %v2556_v23, %v2522_v33  ;;  %v2625_v33 = vmul.f32 %v6620_v45, %v6054_v30 }
 0x7c2   : > { %2323 = vrot.lane.b32.xlu1 %v2303_v42, %s4290_s9  ;;  %v6152_v17 = vpop.permute.xlu0 %3003 }
 0x7c3   : > { %v2622_v29 = vadd.f32 %v6060_v40, %v2572_v63  ;;  %v2055_v40 = vmul.f32 %v5893_v13, %v5664_v3 }
 0x7c4   : > { %v2820_v21 = vpop.permute.xlu1 %2819  ;;  %2599 = vrot.lane.b32.xlu0 %v2579_v37, %s4286_s4  ;;  %v2792_v37 = vadd.f32 %v2770_v57, %v6106_v48  ;;  %v6199_v48 = vld [vmem:[#allocation3 + $0x1b] sm:$0xff] }
 0x7c6   : > { %2469 = vrot.lane.b32.xlu1 %v2451_v28, %s4287_s14  ;;  %v6162_v38 = vpop.permute.xlu0 %3053  ;;  %v2842_v23 = vadd.f32 %v2820_v21, %v2792_v37  ;;  %v2577_v21 = vmul.f32 %v5775_v61, %v6093_v34 }
 0x7c8   : > { %v2702_v14 = vpop.permute.xlu1 %2701  ;;  %2767 = vrot.lane.b32.xlu0 %v2751_v19, %s4290_s9 }
 0x7c9   : > { %v2720_v60 = vadd.f32 %v2702_v14, %v2670_v26  ;;  %v2581_v26 = vmul.f32 %v5775_v61, %v6167_v0  ;;  %v6195_v14 = vstv %s3928_s17  ;;  %v2529_v61 = vmul.f32 %v5767_v27, %v6145_v18 }
 0x7ca   : > { %2423 = vrot.lane.b32.xlu1 %v2403_v4, %s4289_s8  ;;  %v6175_v55 = vpop.permute.xlu0 %3007  ;;  %v2677_v27 = vmul.f32 %v5793_v43, %v6093_v34 }
 0x7cb   : > { %v2746_v10 = vadd.f32 %v2738_v58, %v2720_v60 }
 0x7cc   : > { %v2870_v42 = vpop.permute.xlu1 %2869  ;;  %2553 = vrot.lane.b32.xlu0 %v2531_v44, %s4290_s9  ;;  %v2960_v44 = vmul.f32 %v6195_v14, %v5943_v5  ;;  %v2057_v5 = vmul.f32 %v5893_v13, %v5668_v32 }
 0x7cd   : > { %v2892_v4 = vadd.f32 %v2870_v42, %v2842_v23  ;;  %v2753_v42 = vmul.f32 %v5819_v11, %v6199_v48 }
 0x7ce   : > { %2473 = vrot.lane.b32.xlu1 %v2453_v53, %s4287_s14  ;;  %v6183_v56 = vpop.permute.xlu0 %3057  ;;  %v2794_v53 = vadd.f32 %v6072_v9, %v6129_v7  ;;  %v2631_v9 = vmul.f32 %v6620_v45, %v6167_v0 }
 0x7d0   : > { %v2656_v28 = vpop.permute.xlu1 %2655  ;;  %2817 = vrot.lane.b32.xlu0 %v2801_v47, %s4286_s4  ;;  %v2844_v23 = vadd.f32 %v6079_v16, %v2794_v53 }
 0x7d1   : > { %v2672_v19 = vadd.f32 %v2656_v28, %v2622_v29  ;;  %v2740_v28 = vmul.f32 %v6091_v36, %v5640_v50 }
 0x7d2   : > { %2641 = vrot.lane.b32.xlu1 %v2625_v33, %s4289_s8  ;;  %v2090_v35 = vpop.permute.xlu0 %2089 }
 0x7d3   : > { %v2113_v58 = vadd.f32 %v2090_v35, %v2055_v40 }
 0x7d4   : > { %v2920_v57 = vpop.permute.xlu1 %2919  ;;  %2603 = vrot.lane.b32.xlu0 %v2581_v26, %s4286_s4 }
 0x7d5   : > { %v2942_v60 = vadd.f32 %v2920_v57, %v2892_v4  ;;  %v2962_v4 = vmul.f32 %v6195_v14, %v5856_v20  ;;  %v2796_v57 = vadd.f32 %v6087_v39, %v2746_v10  ;;  %v2679_v10 = vmul.f32 %v5793_v43, %v6145_v18 }
 0x7d6   : > { %2595 = vrot.lane.b32.xlu1 %v2577_v21, %s4286_s4  ;;  %v2140_v63 = vpop.permute.xlu0 %2139 }
 0x7d7   : > { %v6209_v3 = vadd.f32 %v2140_v63, %v2113_v58  ;;  %v2968_v47 = vadd.f32 %v2960_v44, %v2942_v60  ;;  %v2629_v58 = vmul.f32 %v6620_v45, %v6145_v18  ;;  %v2059_v63 = vmul.f32 %v5893_v13, %v5673_v62 }
 0x7d8   : > { %v2706_v37 = vpop.permute.xlu1 %2705  ;;  %2771 = vrot.lane.b32.xlu0 %v2753_v42, %s4290_s9 }
 0x7d9   : > { %v2722_v29 = vadd.f32 %v2706_v37, %v2672_v19  ;;  %v2901_v19 = vmul.f32 %v5638_v22, %v6156_v41  ;;  %v6621_v37 = vld [vmem:[#allocation23_spill] sm:$0xff] }
 0x7da   : > { %2549 = vrot.lane.b32.xlu1 %v2529_v61, %s4290_s9  ;;  %v2094_v33 = vpop.permute.xlu0 %2093  ;;  %v2853_v62 = vmul.f32 %v6621_v37, %v6199_v48 }
 0x7db   : > { %v2115_v7 = vadd.f32 %v2094_v33, %v2057_v5  ;;  %v2748_v35 = vadd.f32 %v2740_v28, %v2722_v29  ;;  %v6254_v29 = vld [vmem:[#allocation3 + $0x33] sm:$0xff]  ;;  %v2851_v28 = vmul.f32 %v6621_v37, %v6156_v41 }
 0x7dc   : > { %v2874_v26 = vpop.permute.xlu1 %2873  ;;  %2653 = vrot.lane.b32.xlu0 %v2631_v9, %s4289_s8  ;;  %v6264_v9 = vld [vmem:[#allocation3 + $0x4] sm:$0xff] }
 0x7dd   : > { %v2894_v32 = vadd.f32 %v2874_v26, %v2844_v23  ;;  %v2803_v23 = vmul.f32 %v5827_v51, %v6199_v48 }
 0x7de   : > { %2695 = vrot.lane.b32.xlu1 %v2677_v27, %s4287_s14  ;;  %v2144_v50 = vpop.permute.xlu0 %2143  ;;  %v2061_v27 = vmul.f32 %v5893_v13, %v5962_v46  ;;  %v2964_v13 = vmul.f32 %v6195_v14, %v5876_v6  ;;  %v6623_v6 = vld [vmem:[#allocation21_spill] sm:$0xff] }
 0x7df   : > { %v2944_v40 = vadd.f32 %v6101_v24, %v2894_v32  ;;  %v6233_v16 = vadd.f32 %v2144_v50, %v2115_v7  ;;  %v2681_v24 = vmul.f32 %v5793_v43, %v6167_v0  ;;  %v6622_v32 = vld [vmem:[#allocation20_spill] sm:$0xff] }
 0x7e0   : > { %v2828_v21 = vpop.permute.xlu1 %2827  ;;  %2917 = vrot.lane.b32.xlu0 %v2901_v19, %s4287_s14  ;;  %v2977_v50 = vmul.f32 %v6622_v32, %v6264_v9 }
 0x7e1   : > { %v6239_v60 = vadd.f32 %v2962_v4, %v2944_v40  ;;  %v2846_v44 = vadd.f32 %v2828_v21, %v2796_v57  ;;  %v6275_v40 = vld [vmem:[#allocation3 + $0x4b] sm:$0xff]  ;;  %v2755_v21 = vmul.f32 %v5819_v11, %v6254_v29 }
 0x7e2   : > { %2649 = vrot.lane.b32.xlu1 %v2629_v58, %s4289_s8  ;;  %v2098_v20 = vpop.permute.xlu0 %2097 }
 0x7e3   : > { %v2117_v42 = vadd.f32 %v2098_v20, %v2059_v63  ;;  %v2896_v4 = vadd.f32 %v6113_v1, %v2846_v44  ;;  %v2757_v63 = vmul.f32 %v5819_v11, %v6275_v40  ;;  %v2903_v20 = vmul.f32 %v5638_v22, %v6199_v48 }
 0x7e4   : > { %v2996_v39 = vpop.permute.xlu1 %2995  ;;  %2703 = vrot.lane.b32.xlu0 %v2681_v24, %s4287_s14  ;;  %v2855_v11 = vmul.f32 %v6621_v37, %v6254_v29 }
 0x7e5   : > { %v3018_v45 = vadd.f32 %v2996_v39, %v2968_v47  ;;  %v2805_v47 = vmul.f32 %v5827_v51, %v6254_v29  ;;  %v3027_v39 = vmul.f32 %v6623_v6, %v6264_v9 }
 0x7e6   : > { %2699 = vrot.lane.b32.xlu1 %v2679_v10, %s4287_s14  ;;  %v2148_v53 = vpop.permute.xlu0 %2147 }
 0x7e7   : > { %v6252_v61 = vadd.f32 %v2148_v53, %v2117_v42 }
 0x7e8   : > { %v2782_v5 = vpop.permute.xlu1 %2781  ;;  %2871 = vrot.lane.b32.xlu0 %v2853_v62, %s4289_s8 }
 0x7e9   : > { %v2798_v33 = vadd.f32 %v2782_v5, %v2748_v35  ;;  %v3175_v5 = vlaneseq }
 0x7ea   : > { %2867 = vrot.lane.b32.xlu1 %v2851_v28, %s4289_s8  ;;  %v6260_v43 = vpop.permute.xlu0 %2315 }
 0x7ec   : > { %v3046_v7 = vpop.permute.xlu1 %3045  ;;  %2825 = vrot.lane.b32.xlu0 %v2805_v47, %s4286_s4  ;;  %v2807_v47 = vmul.f32 %v5827_v51, %v6275_v40 }
 0x7ed   : > { %v3068_v26 = vadd.f32 %v3046_v7, %v3018_v45  ;;  %v2848_v45 = vadd.f32 %v6121_v52, %v2798_v33  ;;  %v6302_v7 = vld [vmem:[#allocation3 + $0x1c] sm:$0xff]  ;;  %v6306_v52 = vshrl.u32 %v3175_v5, 7 }
 0x7ee   : > { %2821 = vrot.lane.b32.xlu1 %v2803_v23, %s4286_s4  ;;  %v2102_v35 = vpop.permute.xlu0 %2101  ;;  %v6304_v23 = vand.u32 127, %v3175_v5 }
 0x7ef   : > { %v2119_v19 = vadd.f32 %v2102_v35, %v2061_v27  ;;  %v3183_v35 = vadd.s32 8, %v6306_v52 }
 0x7f0   : > { %v2928_v57 = vpop.permute.xlu1 %2927  ;;  %2993 = vrot.lane.b32.xlu0 %v2977_v50, %s4290_s9  ;;  %v3184_v50 = vmul.u32 4, %v6304_v23 }
 0x7f1   : > { %v2946_v46 = vadd.f32 %v2928_v57, %v2896_v4  ;;  %v3020_v57 = vadd.f32 %v6133_v2, %v6239_v60  ;;  %v2857_v60 = vmul.f32 %v6621_v37, %v6275_v40  ;;  %v6350_v37 = vld [vmem:[#allocation3 + $0x34] sm:$0xff] }
 0x7f2   : > { %2775 = vrot.lane.b32.xlu1 %v2755_v21, %s4290_s9  ;;  %v6283_v58 = vpop.permute.xlu0 %2365  ;;  %vm3185_vm10 = vcmp.eq.s32.totalorder %v6306_v52, %v3184_v50  ;;  %vm3186_vm11 = vcmp.eq.s32.totalorder %v3183_v35, %v3184_v50 }
 0x7f3   : > { %v2972_v1 = vadd.f32 %v2964_v13, %v2946_v46  ;;  %v3077_v13 = vmul.f32 %v5742_v12, %v6264_v9  ;;  %vm6324_vm12 = vmpackc.low %vm3186_vm11, %vm3185_vm10  ;;  %v4292_v46 = vmov 0.0|0.0  }
 0x7f4   : > { %v3096_v44 = vpop.permute.xlu1 %3095  ;;  %2779 = vrot.lane.b32.xlu0 %v2757_v63, %s4290_s9  ;;  %v6626_v63 = vld [vmem:[#allocation16_spill] sm:$0xff]  ;;  %4067 = vmatprep.subr.bf16.mxu1 %v4292_v46 }
 0x7f5   : > { %v3118_v24 = vadd.f32 %v3096_v44, %v3068_v26  ;;  %v2905_v26 = vmul.f32 %v5638_v22, %v6254_v29  ;;  %v2966_v44 = vmul.f32 %v6195_v14, %v6626_v63  ;;  %v3022_v5 = vadd.f32 %v6152_v17, %v2972_v1 }
 0x7f6   : > { %2921 = vrot.lane.b32.xlu1 %v2903_v20, %s4287_s14  ;;  %v2152_v42 = vpop.permute.xlu0 %2151 }
 0x7f7   : > { %v2169_v10 = vadd.f32 %v2152_v42, %v2119_v19  ;;  %v2979_v19 = vmul.f32 %v6622_v32, %v6302_v7  ;;  %v3072_v17 = vadd.f32 %v6162_v38, %v3022_v5 }
 0x7f8   : > { %v2882_v53 = vpop.permute.xlu1 %2881  ;;  %3043 = vrot.lane.b32.xlu0 %v3027_v39, %s4286_s4  ;;  %v3070_v39 = vadd.f32 %v6141_v8, %v3020_v57 }
 0x7f9   : > { %v2898_v62 = vadd.f32 %v2882_v53, %v2848_v45  ;;  %v3029_v45 = vmul.f32 %v6623_v6, %v6302_v7 }
 0x7fa   : > { %2875 = vrot.lane.b32.xlu1 %v2855_v11, %s4289_s8  ;;  %v6298_v28 = vpop.permute.xlu0 %2319 }
 0x7fc   : > { %v3146_v33 = vpop.permute.xlu1 %3145  ;;  %2829 = vrot.lane.b32.xlu0 %v2807_v47, %s4286_s4  ;;  %v2287_v47 = vmul.f32 %v5912_v15, %v6065_v54  ;;  %v3129_v54 = vmul.f32 %v5744_v31, %v6302_v7 }
 0x7fd   : > { %v6311_v27 = vadd.f32 %v3146_v33, %v3118_v24  ;;  %v4291_v24 = vmov 1.0|1.0  }
 0x7fe   : > { %2925 = vrot.lane.b32.xlu1 %v2905_v26, %s4287_s14  ;;  %v2202_v51 = vpop.permute.xlu0 %2201  ;;  %4064 = vmatprep.subr.msk.bf16.mxu0 %vm6324_vm12, %v4291_v24  ;;  %v2981_v26 = vmul.f32 %v6622_v32, %v6350_v37 }
 0x7ff   : > { %v2219_v4 = vadd.f32 %v2202_v51, %v2169_v10  ;;  %4066 = vmatpush3.bf16.msk.msra.mxu0 %vm6324_vm12, %v4291_v24 }
 0x800   : > { %v2932_v21 = vpop.permute.xlu1 %2931  ;;  %2997 = vrot.lane.b32.xlu0 %v2979_v19, %s4290_s9  ;;  %4071 = vmatprep.subr.msk.bf16.mxu0 %vm6324_vm12, %v4291_v24  ;;  %v2907_v19 = vmul.f32 %v5638_v22, %v6275_v40  ;;  %v3081_v22 = vmul.f32 %v5742_v12, %v6350_v37 }
 0x801   : > { %v2948_v20 = vadd.f32 %v2932_v21, %v2898_v62  ;;  %v3127_v62 = vmul.f32 %v5744_v31, %v6264_v9  ;;  %v3079_v21 = vmul.f32 %v5742_v12, %v6302_v7 }
 0x802   : > { %3093 = vrot.lane.b32.xlu1 %v3077_v13, %s4289_s8  ;;  %v6334_v2 = vpop.permute.xlu0 %2465 }
 0x803   : > { %v6341_v42 = vadd.f32 %v2966_v44, %v2948_v20  ;;  %v3031_v44 = vmul.f32 %v6623_v6, %v6350_v37  ;;  %v6385_v20 = vld [vmem:[#allocation3 + $0x4c] sm:$0xff] }
 0x804   : > { %v3100_v10 = vpop.permute.xlu1 %3099  ;;  %2879 = vrot.lane.b32.xlu0 %v2857_v60, %s4289_s8 }
 0x805   : > { %v3120_v53 = vadd.f32 %v3100_v10, %v3070_v39  ;;  %v3131_v39 = vmul.f32 %v5744_v31, %v6350_v37 }
 0x806   : > { %3047 = vrot.lane.b32.xlu1 %v3029_v45, %s4286_s4  ;;  %v2252_v11 = vpop.permute.xlu0 %2251  ;;  %v2983_v45 = vmul.f32 %v6622_v32, %v6385_v20  ;;  %v6628_v32 = vld [vmem:[#allocation18_spill] sm:$0xff] }
 0x807   : > { %v2269_v8 = vadd.f32 %v2252_v11, %v2219_v4 }
 0x808   : > { %v3150_v33 = vpop.permute.xlu1 %3149  ;;  %3143 = vrot.lane.b32.xlu0 %v3127_v62, %s4287_s14 }
 0x809   : > { %v6361_v35 = vadd.f32 %v3150_v33, %v3120_v53  ;;  %v2295_v50 = vadd.f32 %v2287_v47, %v2269_v8  ;;  %v4155_v8 = vld [vmem:[#allocation3 + $0x1] sm:$0xff]  ;;  %v6627_v33 = vld [vmem:[#allocation17_spill] sm:$0xff] }
 0x80a   : > { %3001 = vrot.lane.b32.xlu1 %v2981_v26, %s4290_s9  ;;  %v6364_v51 = vpop.permute.xlu0 %2419  ;;  %v2281_v5 = vmul.f32 %v4155_v8, %v5912_v15 }
 0x80c   : > { %v3104_v1 = vpop.permute.xlu1 %3103  ;;  %2929 = vrot.lane.b32.xlu0 %v2907_v19, %s4287_s14  ;;  %v3033_v19 = vmul.f32 %v6623_v6, %v6385_v20  ;;  %v2283_v6 = vmul.f32 %v5912_v15, %v5993_v59  ;;  %v2285_v59 = vmul.f32 %v5912_v15, %v6042_v25 }
 0x80d   : > { %v3122_v4 = vadd.f32 %v3104_v1, %v3072_v17 }
 0x80e   : > { %3147 = vrot.lane.b32.xlu1 %v3129_v54, %s4287_s14  ;;  %v6373_v57 = vpop.permute.xlu0 %2373  ;;  %v3083_v54 = vmul.f32 %v5742_v12, %v6385_v20 }
 0x810   : > { %v3154_v13 = vpop.permute.xlu1 %3153  ;;  %3097 = vrot.lane.b32.xlu0 %v3079_v21, %s4289_s8 }
 0x811   : > { %v6380_v38 = vadd.f32 %v3154_v13, %v3122_v4 }
 0x812   : > { %3101 = vrot.lane.b32.xlu1 %v3081_v22, %s4289_s8  ;;  %v2542_v63 = vpop.permute.xlu0 %2541 }
 0x814   : > { %v2190_v60 = vpop.permute.xlu1 %2189  ;;  %3051 = vrot.lane.b32.xlu0 %v3031_v44, %s4286_s4 }
 0x815   : > { %v2213_v53 = vadd.f32 %v2190_v60, %v6209_v3  ;;  %v3133_v60 = vmul.f32 %v5744_v31, %v6385_v20 }
 0x816   : > { %3151 = vrot.lane.b32.xlu1 %v3131_v39, %s4287_s14  ;;  %v2328_v10 = vpop.permute.xlu0 %2327 }
 0x817   : > { %v2345_v11 = vadd.f32 %v2328_v10, %v2295_v50 }
 0x818   : > { %v2240_v62 = vpop.permute.xlu1 %2239  ;;  %3005 = vrot.lane.b32.xlu0 %v2983_v45, %s4290_s9  ;;  %s3974_s9 = sshll.u32 %s4344_s24, 8  ;;  %s4295_s24 = smov [#allocation10]  }
 0x819   : > { %v2263_v47 = vadd.f32 %v2240_v62, %v2213_v53  ;;  %s6494_s0 = scalar_lea.hbm %s6542_s3, %s3974_s9  ;;  %s4214_s25 = sshll.u32 %s4295_s24, 4  ;;  %s4215_s25 = int_to_ptr.vmem [resolvable:$false] %s4214_s25 }
 0x81a   : > { %3107 = vrot.lane.b32.xlu1 %v6627_v33, %s4289_s8  ;;  %v2592_v26 = vpop.permute.xlu0 %2591  ;;  %v2507_v33 = vmul.f32 %v5991_v49, %v6054_v30  ;;  %s4216_s11 = scalar_lea.vmem %s4215_s25, 512 }
 0x81b   : > { %v2289_v17 = vadd.f32 %v2281_v5, %v2263_v47 }
 0x81c   : > { %v2194_v1 = vpop.permute.xlu1 %2193  ;;  %3055 = vrot.lane.b32.xlu0 %v3033_v19, %s4286_s4  ;;  %s3902_s4 = sshll.u32 %s4427_s10, 4 }
 0x81d   : > { %v2339_v3 = vadd.f32 %v6260_v43, %v2289_v17  ;;  %v2215_v4 = vadd.f32 %v2194_v1, %v6233_v16 }
 0x81e   : > { %3157 = vrot.lane.b32.xlu1 %v6628_v32, %s4287_s14  ;;  %v2378_v50 = vpop.permute.xlu0 %2377 }
 0x81f   : > { %v2395_v21 = vadd.f32 %v2378_v50, %v2345_v11  ;;  %v2389_v13 = vadd.f32 %v6283_v58, %v2339_v3 }
 0x820   : > { %v2244_v22 = vpop.permute.xlu1 %2243  ;;  %3105 = vrot.lane.b32.xlu0 %v3083_v54, %s4289_s8 }
 0x821   : > { %v2265_v44 = vadd.f32 %v2244_v22, %v2215_v4 }
 0x822   : > { %v2546_v43 = vpop.permute.xlu0 %2545 }
 0x823   : > { %v2291_v39 = vadd.f32 %v2283_v6, %v2265_v44 }
 0x824   : > { %v2198_v10 = vpop.permute.xlu1 %2197  ;;  %3155 = vrot.lane.b32.xlu0 %v3133_v60, %s4287_s14  ;;  %s146_s14 = scalar_lea.vmem [#allocation10], %s3902_s4 }
 0x825   : > { %v2341_v12 = vadd.f32 %v6298_v28, %v2291_v39  ;;  %v2217_v58 = vadd.f32 %v2198_v10, %v6252_v61  ;;  %v2513_v61 = vmul.f32 %v5991_v49, %v6167_v0  ;;  %s3821_s8 = sshll.u32 %s146_s14, 4  ;;  %s6489_s8 = int_to_ptr.vmem [resolvable:$true] %s3821_s8 }
 0x826   : > { %v2428_v16 = vpop.permute.xlu0 %2427  ;;  %s4210_s28 = scalar_lea.vmem %s6489_s8, 256  ;;  %p4217_p4 = scmp.lt.s32.totalorder %s6489_s8, %s4215_s25 }
 0x827   : > { %v2445_v45 = vadd.f32 %v2428_v16, %v2395_v21  ;;  %p4211_p2 = scmp.ne.s32.totalorder %s6489_s8, %s4210_s28  ;;  %p4218_p6 = scmp.lt.s32.totalorder %s4216_s11, %s4210_s28 }
 0x828   : > { %v2248_v53 = vpop.permute.xlu1 %2247 }
 0x829   : > { %v2267_v11 = vadd.f32 %v2248_v53, %v2217_v58  ;;  %p4212_p8 = pnand %p4211_p2, %p6629_p7  ;;  %p4219_p10 = por %p4218_p6, %p4217_p4 }
 0x82a   : > { %v2692_v62 = vpop.permute.xlu0 %2691 }
 0x82b   : > { %v2293_v8 = vadd.f32 %v2285_v59, %v2267_v11  ;;  %p4213_p9 = pneg %p4212_p8 }
 0x82c   : > { %v2416_v5 = vpop.permute.xlu1 %2415 }
 0x82d   : > { %v2439_v47 = vadd.f32 %v2416_v5, %v2389_v13  ;;  %p4220_p12 = pnand %p4219_p10, %p4213_p9 }
 0x82e   : > { %v2478_v31 = vpop.permute.xlu0 %2477 }
 0x82f   : > { %v2489_v19 = vadd.f32 %v6334_v2, %v2439_v47  ;;  %v2495_v28 = vadd.f32 %v2478_v31, %v2445_v45  ;;  %v2509_v2 = vmul.f32 %v5991_v49, %v6093_v34  ;;  %v2733_v34 = vmul.f32 %v6091_v36, %v6156_v41 }
 0x830   : > { %v2370_v17 = vpop.permute.xlu1 %2369 }
 0x831   : > { %v2515_v1 = vadd.f32 %v2507_v33, %v2489_v19  ;;  %v2391_v3 = vadd.f32 %v2370_v17, %v2341_v12  ;;  %v2521_v32 = vadd.f32 %v2513_v61, %v2495_v28 }
 0x832   : > { %v2646_v50 = vpop.permute.xlu0 %2645 }
 0x833   : > { %v2441_v15 = vadd.f32 %v6364_v51, %v2391_v3  ;;  %v2565_v25 = vadd.f32 %v2542_v63, %v2515_v1  ;;  %v2511_v63 = vmul.f32 %v5991_v49, %v6145_v18  ;;  %v2735_v49 = vmul.f32 %v6091_v36, %v6199_v48 }
 0x834   : > { %v2324_v54 = vpop.permute.xlu1 %2323 }
 0x835   : > { %v2343_v4 = vadd.f32 %v2324_v54, %v2293_v8  ;;  %v2615_v21 = vadd.f32 %v2592_v26, %v2565_v25 }
 0x836   : > { %v2600_v13 = vpop.permute.xlu0 %2599 }
 0x837   : > { %v2393_v30 = vadd.f32 %v6373_v57, %v2343_v4 }
 0x838   : > { %v2470_v22 = vpop.permute.xlu1 %2469 }
 0x839   : > { %v2491_v6 = vadd.f32 %v2470_v22, %v2441_v15  ;;  %v2737_v22 = vmul.f32 %v6091_v36, %v6254_v29 }
 0x83a   : > { %v2768_v0 = vpop.permute.xlu0 %2767 }
 0x83b   : > { %v2517_v44 = vadd.f32 %v2509_v2, %v2491_v6 }
 0x83c   : > { %v2424_v60 = vpop.permute.xlu1 %2423 }
 0x83d   : > { %v2567_v39 = vadd.f32 %v2546_v43, %v2517_v44  ;;  %v2443_v12 = vadd.f32 %v2424_v60, %v2393_v30 }
 0x83e   : > { %v2554_v10 = vpop.permute.xlu0 %2553 }
 0x83f   : > { %v2571_v28 = vadd.f32 %v2554_v10, %v2521_v32 }
 0x840   : > { %v2474_v16 = vpop.permute.xlu1 %2473 }
 0x841   : > { %v2493_v51 = vadd.f32 %v2474_v16, %v2443_v12  ;;  %v2959_v12 = vmul.f32 %v6195_v14, %v6264_v9 }
 0x842   : > { %v2818_v26 = vpop.permute.xlu0 %2817 }
 0x843   : > { %v2519_v58 = vadd.f32 %v2511_v63, %v2493_v51 }
 0x844   : > { %v2642_v45 = vpop.permute.xlu1 %2641 }
 0x845   : > { %v2665_v57 = vadd.f32 %v2642_v45, %v2615_v21 }
 0x846   : > { %v2604_v53 = vpop.permute.xlu0 %2603 }
 0x847   : > { %v2715_v11 = vadd.f32 %v2692_v62, %v2665_v57  ;;  %v2621_v1 = vadd.f32 %v2604_v53, %v2571_v28 }
 0x848   : > { %v2596_v59 = vpop.permute.xlu1 %2595 }
 0x849   : > { %v2741_v8 = vadd.f32 %v2733_v34, %v2715_v11  ;;  %v2617_v43 = vadd.f32 %v2596_v59, %v2567_v39 }
 0x84a   : > { %v2772_v5 = vpop.permute.xlu0 %2771 }
 0x84b   : > { %v2667_v33 = vadd.f32 %v2646_v50, %v2617_v43  ;;  %v2791_v21 = vadd.f32 %v2768_v0, %v2741_v8  ;;  %v2739_v50 = vmul.f32 %v6091_v36, %v6275_v40 }
 0x84c   : > { %v2550_v47 = vpop.permute.xlu1 %2549 }
 0x84d   : > { %v2569_v61 = vadd.f32 %v2550_v47, %v2519_v58  ;;  %v2841_v6 = vadd.f32 %v2818_v26, %v2791_v21  ;;  %v2961_v26 = vmul.f32 %v6195_v14, %v6302_v7  ;;  %v2965_v21 = vmul.f32 %v6195_v14, %v6385_v20 }
 0x84e   : > { %v2654_v31 = vpop.permute.xlu0 %2653 }
 0x84f   : > { %v2671_v41 = vadd.f32 %v2654_v31, %v2621_v1  ;;  %v2619_v62 = vadd.f32 %v2600_v13, %v2569_v61  ;;  %v2963_v31 = vmul.f32 %v6195_v14, %v6350_v37 }
 0x850   : > { %v2696_v19 = vpop.permute.xlu1 %2695 }
 0x851   : > { %v2717_v18 = vadd.f32 %v2696_v19, %v2667_v33 }
 0x852   : > { %v2918_v17 = vpop.permute.xlu0 %2917 }
 0x853   : > { %v2743_v3 = vadd.f32 %v2735_v49, %v2717_v18 }
 0x854   : > { %v2650_v15 = vpop.permute.xlu1 %2649 }
 0x855   : > { %v2669_v54 = vadd.f32 %v2650_v15, %v2619_v62  ;;  %v2793_v16 = vadd.f32 %v2772_v5, %v2743_v3 }
 0x856   : > { %v2704_v25 = vpop.permute.xlu0 %2703 }
 0x857   : > { %v2721_v4 = vadd.f32 %v2704_v25, %v2671_v41 }
 0x858   : > { %v2700_v30 = vpop.permute.xlu1 %2699 }
 0x859   : > { %v2719_v32 = vadd.f32 %v2700_v30, %v2669_v54  ;;  %v2747_v48 = vadd.f32 %v2739_v50, %v2721_v4 }
 0x85a   : > { %v2872_v2 = vpop.permute.xlu0 %2871 }
 0x85b   : > { %v2745_v44 = vadd.f32 %v2737_v22, %v2719_v32 }
 0x85c   : > { %v2868_v60 = vpop.permute.xlu1 %2867 }
 0x85d   : > { %v2891_v39 = vadd.f32 %v2868_v60, %v2841_v6 }
 0x85e   : > { %v2826_v10 = vpop.permute.xlu0 %2825 }
 0x85f   : > { %v2941_v13 = vadd.f32 %v2918_v17, %v2891_v39 }
 0x860   : > { %v2822_v0 = vpop.permute.xlu1 %2821 }
 0x861   : > { %v2967_v51 = vadd.f32 %v2959_v12, %v2941_v13  ;;  %v2843_v63 = vadd.f32 %v2822_v0, %v2793_v16 }
 0x862   : > { %v2994_v40 = vpop.permute.xlu0 %2993 }
 0x863   : > { %v2893_v57 = vadd.f32 %v2872_v2, %v2843_v63  ;;  %v3017_v61 = vadd.f32 %v2994_v40, %v2967_v51 }
 0x864   : > { %v2776_v58 = vpop.permute.xlu1 %2775 }
 0x865   : > { %v2795_v29 = vadd.f32 %v2776_v58, %v2745_v44 }
 0x866   : > { %v2780_v45 = vpop.permute.xlu0 %2779 }
 0x867   : > { %v2845_v8 = vadd.f32 %v2826_v10, %v2795_v29  ;;  %v2797_v1 = vadd.f32 %v2780_v45, %v2747_v48 }
 0x868   : > { %v2922_v36 = vpop.permute.xlu1 %2921 }
 0x869   : > { %v2943_v53 = vadd.f32 %v2922_v36, %v2893_v57 }
 0x86a   : > { %v3044_v34 = vpop.permute.xlu0 %3043 }
 0x86b   : > { %v2969_v11 = vadd.f32 %v2961_v26, %v2943_v53  ;;  %v3067_v18 = vadd.f32 %v3044_v34, %v3017_v61 }
 0x86c   : > { %v2876_v59 = vpop.permute.xlu1 %2875 }
 0x86d   : > { %v2895_v9 = vadd.f32 %v2876_v59, %v2845_v8 }
 0x86e   : > { %v2830_v43 = vpop.permute.xlu0 %2829 }
 0x86f   : > { %v2847_v15 = vadd.f32 %v2830_v43, %v2797_v1 }
 0x870   : > { %v2926_v47 = vpop.permute.xlu1 %2925 }
 0x871   : > { %v2945_v5 = vadd.f32 %v2926_v47, %v2895_v9 }
 0x872   : > { %v2998_v33 = vpop.permute.xlu0 %2997 }
 0x873   : > { %v2971_v19 = vadd.f32 %v2963_v31, %v2945_v5  ;;  %v3019_v54 = vadd.f32 %v2998_v33, %v2969_v11 }
 0x874   : > { %v3094_v28 = vpop.permute.xlu1 %3093 }
 0x875   : > { %v3117_v7 = vadd.f32 %v3094_v28, %v3067_v18 }
 0x876   : > { %v2880_v49 = vpop.permute.xlu0 %2879 }
 0x877   : > { %v2897_v25 = vadd.f32 %v2880_v49, %v2847_v15 }
 0x878   : > { %v3048_v17 = vpop.permute.xlu1 %3047 }
 0x879   : > { %v3069_v30 = vadd.f32 %v3048_v17, %v3019_v54 }
 0x87a   : > { %v3144_v3 = vpop.permute.xlu0 %3143 }
 0x87b   : > { %v3167_v41 = vadd.f32 %v3144_v3, %v3117_v7 }
 0x87c   : > { %v3002_v62 = vpop.permute.xlu1 %3001 }
 0x87d   : > { %4011 = vmatprep.mubr.msk.f32.mxu0 %vm3191_vm13, %v3167_v41  ;;  %v3021_v2 = vadd.f32 %v3002_v62, %v2971_v19 }
 0x87e   : > { %4012 = vmatmul.mubr.msk.f32.vlgmr.msra.gmra.mrb[0].mxu0 %vm3191_vm13, %v6311_v27  ;;  %v2930_v37 = vpop.permute.xlu0 %2929 }
 0x87f   : > { %v2947_v4 = vadd.f32 %v2930_v37, %v2897_v25  ;;  %4073 = vmatpush3.bf16.msk.msra.mxu0 %vm6324_vm12, %v4291_v24 }
 0x880   : > { %v3148_v50 = vpop.permute.xlu1 %3147  ;;  %4078 = vmatprep.subr.msk.bf16.mxu0 %vm6324_vm12, %v4291_v24 }
 0x881   : > { %v2973_v32 = vadd.f32 %v2965_v21, %v2947_v4 }
 0x882   : > { %v3098_v22 = vpop.permute.xlu0 %3097 }
 0x883   : > { %v3119_v48 = vadd.f32 %v3098_v22, %v3069_v30 }
 0x884   : > { %v3102_v27 = vpop.permute.xlu1 %3101 }
 0x885   : > { %v3169_v6 = vadd.f32 %v3148_v50, %v3119_v48 }
 0x886   : > { %v3052_v44 = vpop.permute.xlu0 %3051 }
 0x887   : > { %v3071_v60 = vadd.f32 %v3052_v44, %v3021_v2  ;;  %4025 = vmatprep.mubr.msk.f32.mxu0 %vm3191_vm13, %v3169_v6 }
 0x888   : > { %4026 = vmatmul.mubr.msk.f32.vlgmr.msra.gmra.mrb[2].mxu0 %vm3191_vm13, %v6361_v35  ;;  %v3152_v14 = vpop.permute.xlu1 %3151  ;;  %v3024_v35 = vadd.f32 %v6175_v55, %v6341_v42  ;;  %v3179_v55 = vmul.u32 4, %v6306_v52 }
 0x889   : > { %v3121_v20 = vadd.f32 %v3102_v27, %v3071_v60  ;;  %4080 = vmatpush3.bf16.msk.msra.mxu0 %vm6324_vm12, %v4291_v24 }
 0x88a   : > { %v3006_v39 = vpop.permute.xlu0 %3005  ;;  %4085 = vmatprep.subr.msk.bf16.mxu0 %vm6324_vm12, %v4291_v24  ;;  %v3074_v40 = vadd.f32 %v6183_v56, %v3024_v35  ;;  %vm3180_vm15 = vcmp.eq.s32.totalorder %v6304_v23, %v3179_v55 }
 0x88b   : > { %v3171_v10 = vadd.f32 %v3152_v14, %v3121_v20  ;;  %v3023_v0 = vadd.f32 %v3006_v39, %v2973_v32 }
 0x88c   : > { %v3108_v12 = vpop.permute.xlu1 %3107 }
 0x88d   : > { %4039 = vmatprep.mubr.msk.f32.mxu0 %vm3191_vm13, %v3171_v10  ;;  %v3124_v45 = vadd.f32 %v3108_v12, %v3074_v40 }
 0x88e   : > { %4040 = vmatmul.mubr.msk.f32.vlgmr.msra.gmra.mrb[4].mxu0 %vm3191_vm13, %v6380_v38  ;;  %v3056_v13 = vpop.permute.xlu0 %3055 }
 0x88f   : > { %4087 = vmatpush3.bf16.msk.msra.mxu0 %vm6324_vm12, %v4291_v24  ;;  %v3073_v51 = vadd.f32 %v3056_v13, %v3023_v0  ;;  %v4294_v24 = vmov 0.0  }
 0x890   : > { %v3158_v63 = vpop.permute.xlu1 %3157  ;;  %4018 = vmatprep.mubr.msk.f32.mxu1 %vm4293_vm14, %v4294_v24  ;;  %v3933_v53 = vsel %vm3180_vm15, 1.0, %v4294_v24 }
 0x891   : > { %v3174_v38 = vadd.f32 %v3158_v63, %v3124_v45 }
 0x892   : > { %v3106_v16 = vpop.permute.xlu0 %3105 }
 0x893   : > { %v3123_v58 = vadd.f32 %v3106_v16, %v3073_v51 }
 0x896   : > { %v3156_v57 = vpop.permute.xlu0 %3155 }
 0x897   : > { %v3173_v36 = vadd.f32 %v3156_v57, %v3123_v58 }
 0x899   : > { %4053 = vmatprep.mubr.msk.f32.mxu0 %vm3191_vm13, %v3173_v36 }
 0x89a   : > { %4054 = vmatmul.mubr.msk.f32.vlgmr.msra.gmra.mrb[6].mxu0 %vm3191_vm13, %v3174_v38 }
 0x951   : > { %v4013_v42 = vpop.f32.mrb[0].mxu0 }
 0x952   : > { %v3264_v56 = vpop.f32.mrb[1].mxu0 }
 0x953   : > { %v4068_v29 = vpack.c.bf16 %v4013_v42, %v3264_v56 }
 0x955   : > { %4069 = vmatpush3.bf16.msra.mxu1 %v4068_v29 }
 0x956   : > { %4074 = vmatprep.subr.bf16.mxu1 %v4292_v46 }
 0x958   : > { %4019 = vmatmul.mubr.msk.f32.vlgmr.msra.gmra.mrb[0].mxu1 %vm3191_vm13, %v3933_v53 }
 0x959   : > { %4032 = vmatprep.mubr.msk.f32.mxu1 %vm4293_vm14, %v4294_v24 }
 0x95b   : > { %v4027_v26 = vpop.f32.mrb[2].mxu0 }
 0x95c   : > { %v3420_v34 = vpop.f32.mrb[3].mxu0 }
 0x95d   : > { %v4075_v11 = vpack.c.bf16 %v4027_v26, %v3420_v34 }
 0x95f   : > { %4076 = vmatpush3.bf16.msra.mxu1 %v4075_v11 }
 0x960   : > { %4081 = vmatprep.subr.bf16.mxu1 %v4292_v46 }
 0x961   : > { %v4041_v59 = vpop.f32.mrb[4].mxu0 }
 0x962   : > { %v3573_v52 = vpop.f32.mrb[5].mxu0  ;;  %4033 = vmatmul.mubr.msk.f32.vlgmr.msra.gmra.mrb[2].mxu1 %vm3191_vm13, %v3933_v53 }
 0x963   : > { %v4082_v8 = vpack.c.bf16 %v4041_v59, %v3573_v52  ;;  %4046 = vmatprep.mubr.msk.f32.mxu1 %vm4293_vm14, %v4294_v24 }
 0x965   : > { %4083 = vmatpush3.bf16.msra.mxu1 %v4082_v8 }
 0x966   : > { %4088 = vmatprep.subr.bf16.mxu1 %v4292_v46 }
 0x968   : > { %4047 = vmatmul.mubr.msk.f32.vlgmr.msra.gmra.mrb[4].mxu1 %vm3191_vm13, %v3933_v53 }
 0x969   : > { %4060 = vmatprep.mubr.msk.f32.mxu1 %vm4293_vm14, %v4294_v24 }
 0x96d   : > { %v4055_v23 = vpop.f32.mrb[6].mxu0 }
 0x96e   : > { %v3726_v43 = vpop.f32.mrb[7].mxu0 }
 0x96f   : > { %v4089_v9 = vpack.c.bf16 %v4055_v23, %v3726_v43 }
 0x971   : > { %4090 = vmatpush3.bf16.msra.mxu1 %v4089_v9 }
 0x974   : > { %4061 = vmatmul.mubr.msk.f32.vlgmr.msra.gmra.mrb[6].mxu1 %vm3191_vm13, %v3933_v53 }
 0xa2b   : > { %v3342_v47 = vpop.f32.mrb[0].mxu1 }
 0xa2c   : > { %3347 = vst.msk [vmem:[%s146_s14] sm:$0xf] %vm3346_vm0, %v3342_v47  ;;  %v4020_v5 = vpop.f32.mrb[1].mxu1 }
 0xa35   : > { %v3495_v31 = vpop.f32.mrb[2].mxu1 }
 0xa36   : > { %3946 = vst.msk [vmem:[%s146_s14 + $0x4] sm:$0xf] %vm3346_vm0, %v3495_v31  ;;  %v4034_v33 = vpop.f32.mrb[3].mxu1 }
 0xa3b   : > { %v3648_v19 = vpop.f32.mrb[4].mxu1 }
 0xa3c   : > { %3952 = vst.msk [vmem:[%s146_s14 + $0x8] sm:$0xf] %vm3346_vm0, %v3648_v19  ;;  %v4048_v28 = vpop.f32.mrb[5].mxu1 }
 0xa47   : > { %v3801_v61 = vpop.f32.mrb[6].mxu1 }
 0xa48   : > { %3958 = vst.msk [vmem:[%s146_s14 + $0xc] sm:$0xf] %vm3346_vm0, %v3801_v61  ;;  %v4062_v49 = vpop.f32.mrb[7].mxu1 }
 0xa49   : > { %4223 = shalt.err (!%p4220_p12)
}
 0xa4a   : > { %s4224_s27 = scalar_lea.hbm %s6494_s0, 256  ;;  %s4228_s16 = scalar_lea.hbm %s6542_s3, 512 }
 0xa4b   : > { %p4225_p0 = scmp.ne.s32.totalorder %s6494_s0, %s4224_s27  ;;  %p4229_p5 = scmp.lt.u32.totalorder %s6494_s0, %s6542_s3 }
 0xa4c   : > { %p4230_p11 = scmp.lt.u32.totalorder %s4228_s16, %s4224_s27  ;;  %p4232_p2 = scmp.lt.u32.totalorder %s4224_s27, %s6494_s0 }
 0xa4d   : > { %p4226_p1 = pnand %p4225_p0, %p6629_p7 }
 0xa4e   : > { %p4231_p13 = por %p4230_p11, %p4229_p5 }
 0xa4f   : > { %p4227_p3 = pneg %p4226_p1 }
 0xa50   : > { %p4233_p8 = por %p4232_p2, %p4231_p13 }
 0xa52   : > { %p4234_p9 = pnand %p4233_p8, %p4227_p3 }
 0xa54   : > { %4237 = shalt.err (!%p4234_p9)
}
 0xa55   : > { %s4296_s17 = smov 64  }
 0xa56   : > { %4093 = dma.vmem_to_hbm [thread:$0]  (%p6629_p7), %s6489_s8, 256, %s6494_s0, %s3808_s12, %s4296_s17, %s4296_s17, %s4288_s15  }
 0xa57 PF: > { %s3836_s4 = sand.u32 1, %s4266_s1   ;;  %p6630_p4 = scmp.ne.s32.totalorder %s6561_s6, 0 }
 0xa58   : > { %p6631_p6 = scmp.ge.s32.totalorder %s4278_s23, 2  ;;  %s3837_s14 = scalar_lea.sflag [#allocation9], %s3836_s4 }
 0xa5a   : > { %p4100_p10 = pnand %p6631_p6, %p6630_p4 }
 0xa5c   : > { %4261 = dma.done.wait (!%p4100_p10), %s3837_s14, 256  }
 0xa5d   : > { %4263 = vsyncadd (!%p4100_p10), %s3837_s14, 4294967040  ;;  %p26_p12 = scmp.ge.s32.totalorder %s4348_s26, 4   ;;  %s6632_s1 = smov %s4270_s21 }
 0xa5e   : > { %s6633_s21 = smov %s4274_s22  ;;  %s6634_s22 = smov %s4360_s29 }
 0xa5f   : > { %s6635_s23 = smov %s4348_s26  ;;  %28 = sbr.rel (!%p26_p12) target bundleno = 30 (0x1e), region = 72 }
 0xa66   :  { %3842 = vsyncpa [#allocation8], 1 }
 0xa67   :  { %3844 = vsyncpa [#allocation8 + $0x1], 1 }
 0xa68   :  { %3845 = vsyncpa [#allocation9], 1 }
 0xa69   :  { %3847 = vsyncpa [#allocation9 + $0x1], 1 }

</bundles_post_ra>
